<compile_context>
chip_gen: v7x
topology: tpu7x:2x2x1
jax: 0.10.0
libtpu: 0.0.40
codegen_flags: <defaults>
</compile_context>

<pallas_src>
import jax
import jax.numpy as jnp
from jax import lax
from jax.experimental import pallas as pl
from jax.experimental.pallas import tpu as pltpu


def mh_conv_attention(x_nchw, w_cpe_pt, w_qkv_pt, rel_pos, w_out_pt, *,
                      num_heads, window_size):
    """Pallas TPU implementation of MHConvAttention.forward (NCHW in / NCHW out)."""
    B, C, H, W = x_nchw.shape
    nh = num_heads
    hd = C // nh
    ws = window_size
    pad = ws // 2
    N = H * W
    f32 = jnp.float32
    bf16 = jnp.bfloat16
    scaling = float(hd) ** (-0.5)

    # batch block size: fuse images per grid step, but keep >= 2 grid steps so
    # v7x's two TensorCores both get work; cap to keep VMEM modest.
    if B >= 2:
        bt = max(d for d in range(1, min(B // 2, 8) + 1) if B % d == 0)
    else:
        bt = 1

    # -------- layout: channels on sublanes, spatial (N = H*W) on lanes ----------
    x = x_nchw.reshape(B, C, N).astype(f32)          # free reshape, no HBM transpose

    # -------- precomputed per-tap combined (weight * boundary-mask) tables ------
    yy = jnp.arange(H, dtype=jnp.int32)[:, None]
    xx = jnp.arange(W, dtype=jnp.int32)[None, :]

    def tap_mask(dy, dx):
        ok = (yy + dy >= 0) & (yy + dy < H) & (xx + dx >= 0) & (xx + dx < W)
        return ok.astype(f32).reshape(N)

    # cpe: depthwise 3x3; the "+ x" residual is folded into the centre tap weight
    w_cpe = w_cpe_pt[:, 0, :, :].astype(f32)          # (C, 3, 3)
    cpe_offsets = []
    cpe_tabs = []
    for dy in (-1, 0, 1):
        for dx in (-1, 0, 1):
            wc = w_cpe[:, dy + 1, dx + 1]
            if dy == 0 and dx == 0:
                wc = wc + 1.0                          # residual folded in
            cpe_offsets.append(dy * W + dx)
            cpe_tabs.append(wc[:, None] * tap_mask(dy, dx)[None, :])
    wcpe_tab = jnp.stack(cpe_tabs)                     # (9, C, N)

    # rel-pos: depthwise ws x ws on v; head-shared weights tiled to all C channels
    w_pos = jnp.tile(rel_pos.astype(f32), (nh, 1, 1))  # (C, ws, ws), chan c -> rel_pos[c % hd]
    pos_offsets = []
    pos_tabs = []
    for dy in range(-pad, pad + 1):
        for dx in range(-pad, pad + 1):
            wc = w_pos[:, dy + pad, dx + pad]
            pos_offsets.append(dy * W + dx)
            pos_tabs.append(wc[:, None] * tap_mask(dy, dx)[None, :])
    wpos_tab = jnp.stack(pos_tabs)                     # (ws*ws, C, N)

    # fused projections (out, in), bf16 for the MXU
    wqkv = w_qkv_pt[:, :, 0, 0].astype(bf16)           # (3C, C)
    wout = w_out_pt[:, :, 0, 0].astype(bf16)           # (C, C)

    # block-diagonal head mask with the content q-scaling folded in (C, C)
    head_id = jnp.arange(C, dtype=jnp.int32) // hd
    lam_mask = (head_id[:, None] == head_id[None, :]).astype(f32) * scaling

    # ---------------- kernel (bt images per grid step) --------------------------
    def kernel(x_ref, wcpe_ref, wpos_ref, wqkv_ref, mask_ref, wout_ref, out_ref):

        def dwconv(img, tab_ref, offsets):
            # depthwise conv over the flat (C, N) image via static lane rolls;
            # boundary masks are pre-folded into the (C, N) tap tables.
            acc = None
            for t, off in enumerate(offsets):
                sh = img if off == 0 else pltpu.roll(img, shift=(-off) % N, axis=1)
                term = sh * tab_ref[t]
                acc = term if acc is None else acc + term
            return acc

        for bi in range(bt):
            xv = x_ref[bi]                                          # (C, N) f32

            # cpe 3x3 depthwise conv + residual (folded into centre tap)
            s = dwconv(xv, wcpe_ref, cpe_offsets)                   # (C, N)

            # fused qkv projection, already transposed: (3C, C) @ (C, N)
            qkv = jnp.dot(wqkv_ref[...], s.astype(bf16),
                          preferred_element_type=f32)               # (3C, N)
            q = qkv[:C]
            k = qkv[C:2 * C]
            v = qkv[2 * C:]

            # content branch: softmax over spatial positions (lane-axis reduce)
            ke = jnp.exp(k - jnp.max(k, axis=1, keepdims=True))
            inv = pl.reciprocal(jnp.sum(ke, axis=1, keepdims=True), approx=False)
            ks = ke * inv

            lam = lax.dot_general(ks.astype(bf16), v.astype(bf16),
                                  (((1,), (1,)), ((), ())),
                                  preferred_element_type=f32)       # (C_i, C_o)
            lam = lam * mask_ref[...]      # block-diagonal heads + folded q-scaling
            co = lax.dot_general(lam.astype(bf16), q.astype(bf16),
                                 (((0,), (0,)), ((), ())),
                                 preferred_element_type=f32)        # (C_o, N)

            # position branch: head-shared ws x ws depthwise conv of v
            pos = dwconv(v, wpos_ref, pos_offsets)                  # (C, N)

            res = co + q * pos                                      # (C, N)

            # fused output projection; (C, N) store is lane-dense
            out_ref[bi] = jnp.dot(wout_ref[...], res.astype(bf16),
                                  preferred_element_type=f32)

    out = pl.pallas_call(
        kernel,
        out_shape=jax.ShapeDtypeStruct((B, C, N), f32),
        grid=(B // bt,),
        in_specs=[
            pl.BlockSpec((bt, C, N), lambda b: (b, 0, 0)),
            pl.BlockSpec((9, C, N), lambda b: (0, 0, 0)),
            pl.BlockSpec((ws * ws, C, N), lambda b: (0, 0, 0)),
            pl.BlockSpec((3 * C, C), lambda b: (0, 0)),
            pl.BlockSpec((C, C), lambda b: (0, 0)),
            pl.BlockSpec((C, C), lambda b: (0, 0)),
        ],
        out_specs=pl.BlockSpec((bt, C, N), lambda b: (b, 0, 0)),
        compiler_params=pltpu.CompilerParams(
            dimension_semantics=("parallel",),
            vmem_limit_bytes=32 * 1024 * 1024),
    )(x, wcpe_tab, wpos_tab, wqkv, lam_mask, wout)

    # (B, C, N) -> (B, C, H, W): pure reshape, no HBM transpose needed
    return out.reshape(B, C, H, W)


# ---------------- pure-JAX reference (mirrors the PyTorch forward in NCHW) -------
def reference_forward(x, w_cpe, w_qkv, rel_pos, w_out, nh):
    B, C, H, W = x.shape
    hd = C // nh
    scaling = float(hd) ** (-0.5)
    dn = ('NCHW', 'OIHW', 'NCHW')
    prec = jax.lax.Precision.HIGHEST

    cpe = jax.lax.conv_general_dilated(x, w_cpe, window_strides=(1, 1),
                                       padding=((1, 1), (1, 1)),
                                       feature_group_count=C,
                                       dimension_numbers=dn, precision=prec)
    s = cpe + x
    qkv = jax.lax.conv_general_dilated(s, w_qkv, window_strides=(1, 1),
                                       padding=((0, 0), (0, 0)),
                                       dimension_numbers=dn, precision=prec)
    q, k, v = jnp.split(qkv, 3, axis=1)
    q = q.reshape(B * nh, hd, H, W)
    k = k.reshape(B * nh, hd, H, W)
    v = v.reshape(B * nh, hd, H, W)
    qf = q.reshape(B * nh, hd, H * W)
    kf = k.reshape(B * nh, hd, H * W)
    vf = v.reshape(B * nh, hd, H * W)
    ks = jax.nn.softmax(kf, axis=-1)
    lam = jnp.einsum('bin,bon->bio', ks, vf, precision=prec)
    co = jnp.einsum('bin,bio->bon', qf * scaling, lam, precision=prec).reshape(B * nh, hd, H, W)
    pos_lam = jax.lax.conv_general_dilated(v, rel_pos[:, None, :, :], window_strides=(1, 1),
                                           padding=((2, 2), (2, 2)),
                                           feature_group_count=hd,
                                           dimension_numbers=dn, precision=prec)
    res = (co + q * pos_lam).reshape(B, C, H, W)
    out = jax.lax.conv_general_dilated(res, w_out, window_strides=(1, 1),
                                       padding=((0, 0), (0, 0)),
                                       dimension_numbers=dn, precision=prec)
    return out


if __name__ == "__main__":
    B, C, H, W = 2, 32, 16, 16
    num_heads, window_size = 4, 5
    hd = C // num_heads

    key = jax.random.PRNGKey(0)
    kx_, k1, k2, k3, k4 = jax.random.split(key, 5)
    x = jax.random.normal(kx_, (B, C, H, W), jnp.float32)
    # deterministic synthetic parameters (shapes follow the module's __init__)
    rel_pos = 0.02 * jax.random.normal(k1, (hd, window_size, window_size), jnp.float32)
    w_qkv = 0.1 * jax.random.normal(k2, (3 * C, C, 1, 1), jnp.float32)
    w_cpe = 0.1 * jax.random.normal(k3, (C, 1, 3, 3), jnp.float32)
    w_out = 0.1 * jax.random.normal(k4, (C, C, 1, 1), jnp.float32)

    out = mh_conv_attention(x, w_cpe, w_qkv, rel_pos, w_out,
                            num_heads=num_heads, window_size=window_size)
    out = jax.block_until_ready(out)

    ref = reference_forward(x, w_cpe, w_qkv, rel_pos, w_out, num_heads)
    err = float(jnp.max(jnp.abs(out - ref)))
    scale = float(jnp.max(jnp.abs(ref))) + 1e-6
    assert err / scale < 5e-2, f"kernel/reference mismatch: rel_err={err / scale:.3e}"
    print("KERNEL_OK")
</pallas_src>

<mosaic_0001>
module attributes {stable_mosaic.version = 11 : i64} {
  func.func @kernel(%arg0: i32, %arg1: memref<1x32x256xf32, #tpu.memory_space<vmem>>, %arg2: memref<9x32x256xf32, #tpu.memory_space<vmem>>, %arg3: memref<25x32x256xf32, #tpu.memory_space<vmem>>, %arg4: memref<96x32xbf16, #tpu.memory_space<vmem>>, %arg5: memref<32x32xf32, #tpu.memory_space<vmem>>, %arg6: memref<32x32xbf16, #tpu.memory_space<vmem>>, %arg7: memref<1x32x256xf32, #tpu.memory_space<vmem>>) attributes {dimension_semantics = [#tpu.dimension_semantics<parallel>], iteration_bounds = array<i64: 2>, scalar_prefetch = 0 : i64, scratch_operands = 0 : i64, tpu.core_type = #tpu.core_type<tc>, window_params = [{transform_indices = @transform_0, window_bounds = array<i64: 1, 32, 256>}, {pipeline_mode = #tpu.pipeline_mode<synchronous>, transform_indices = @transform_1, window_bounds = array<i64: 9, 32, 256>}, {pipeline_mode = #tpu.pipeline_mode<synchronous>, transform_indices = @transform_2, window_bounds = array<i64: 25, 32, 256>}, {pipeline_mode = #tpu.pipeline_mode<synchronous>, transform_indices = @transform_3, window_bounds = array<i64: 96, 32>}, {pipeline_mode = #tpu.pipeline_mode<synchronous>, transform_indices = @transform_4, window_bounds = array<i64: 32, 32>}, {pipeline_mode = #tpu.pipeline_mode<synchronous>, transform_indices = @transform_5, window_bounds = array<i64: 32, 32>}, {transform_indices = @transform_6, window_bounds = array<i64: 1, 32, 256>}]} {
    %c0 = arith.constant 0 : index
    %c0_0 = arith.constant 0 : index
    %c0_1 = arith.constant 0 : index
    %0 = vector.load %arg1[%c0, %c0_0, %c0_1] : memref<1x32x256xf32, #tpu.memory_space<vmem>>, vector<1x32x256xf32>
    %1 = vector.shape_cast %0 : vector<1x32x256xf32> to vector<32x256xf32>
    %c17_i32 = arith.constant 17 : i32
    %2 = tpu.dynamic_rotate %1 by %c17_i32 dim 1 : vector<32x256xf32>, i32 -> vector<32x256xf32>
    %c0_2 = arith.constant 0 : index
    %c0_3 = arith.constant 0 : index
    %c0_4 = arith.constant 0 : index
    %3 = vector.load %arg2[%c0_2, %c0_3, %c0_4] : memref<9x32x256xf32, #tpu.memory_space<vmem>>, vector<1x32x256xf32>
    %4 = vector.shape_cast %3 : vector<1x32x256xf32> to vector<32x256xf32>
    %5 = arith.mulf %2, %4 : vector<32x256xf32>
    %c16_i32 = arith.constant 16 : i32
    %6 = tpu.dynamic_rotate %1 by %c16_i32 dim 1 : vector<32x256xf32>, i32 -> vector<32x256xf32>
    %c1 = arith.constant 1 : index
    %c0_5 = arith.constant 0 : index
    %c0_6 = arith.constant 0 : index
    %7 = vector.load %arg2[%c1, %c0_5, %c0_6] : memref<9x32x256xf32, #tpu.memory_space<vmem>>, vector<1x32x256xf32>
    %8 = vector.shape_cast %7 : vector<1x32x256xf32> to vector<32x256xf32>
    %9 = arith.mulf %6, %8 : vector<32x256xf32>
    %10 = arith.addf %5, %9 : vector<32x256xf32>
    %c15_i32 = arith.constant 15 : i32
    %11 = tpu.dynamic_rotate %1 by %c15_i32 dim 1 : vector<32x256xf32>, i32 -> vector<32x256xf32>
    %c2 = arith.constant 2 : index
    %c0_7 = arith.constant 0 : index
    %c0_8 = arith.constant 0 : index
    %12 = vector.load %arg2[%c2, %c0_7, %c0_8] : memref<9x32x256xf32, #tpu.memory_space<vmem>>, vector<1x32x256xf32>
    %13 = vector.shape_cast %12 : vector<1x32x256xf32> to vector<32x256xf32>
    %14 = arith.mulf %11, %13 : vector<32x256xf32>
    %15 = arith.addf %10, %14 : vector<32x256xf32>
    %c1_i32 = arith.constant 1 : i32
    %16 = tpu.dynamic_rotate %1 by %c1_i32 dim 1 : vector<32x256xf32>, i32 -> vector<32x256xf32>
    %c3 = arith.constant 3 : index
    %c0_9 = arith.constant 0 : index
    %c0_10 = arith.constant 0 : index
    %17 = vector.load %arg2[%c3, %c0_9, %c0_10] : memref<9x32x256xf32, #tpu.memory_space<vmem>>, vector<1x32x256xf32>
    %18 = vector.shape_cast %17 : vector<1x32x256xf32> to vector<32x256xf32>
    %19 = arith.mulf %16, %18 : vector<32x256xf32>
    %20 = arith.addf %15, %19 : vector<32x256xf32>
    %c4 = arith.constant 4 : index
    %c0_11 = arith.constant 0 : index
    %c0_12 = arith.constant 0 : index
    %21 = vector.load %arg2[%c4, %c0_11, %c0_12] : memref<9x32x256xf32, #tpu.memory_space<vmem>>, vector<1x32x256xf32>
    %22 = vector.shape_cast %21 : vector<1x32x256xf32> to vector<32x256xf32>
    %23 = arith.mulf %1, %22 : vector<32x256xf32>
    %24 = arith.addf %20, %23 : vector<32x256xf32>
    %c255_i32 = arith.constant 255 : i32
    %25 = tpu.dynamic_rotate %1 by %c255_i32 dim 1 : vector<32x256xf32>, i32 -> vector<32x256xf32>
    %c5 = arith.constant 5 : index
    %c0_13 = arith.constant 0 : index
    %c0_14 = arith.constant 0 : index
    %26 = vector.load %arg2[%c5, %c0_13, %c0_14] : memref<9x32x256xf32, #tpu.memory_space<vmem>>, vector<1x32x256xf32>
    %27 = vector.shape_cast %26 : vector<1x32x256xf32> to vector<32x256xf32>
    %28 = arith.mulf %25, %27 : vector<32x256xf32>
    %29 = arith.addf %24, %28 : vector<32x256xf32>
    %c241_i32 = arith.constant 241 : i32
    %30 = tpu.dynamic_rotate %1 by %c241_i32 dim 1 : vector<32x256xf32>, i32 -> vector<32x256xf32>
    %c6 = arith.constant 6 : index
    %c0_15 = arith.constant 0 : index
    %c0_16 = arith.constant 0 : index
    %31 = vector.load %arg2[%c6, %c0_15, %c0_16] : memref<9x32x256xf32, #tpu.memory_space<vmem>>, vector<1x32x256xf32>
    %32 = vector.shape_cast %31 : vector<1x32x256xf32> to vector<32x256xf32>
    %33 = arith.mulf %30, %32 : vector<32x256xf32>
    %34 = arith.addf %29, %33 : vector<32x256xf32>
    %c240_i32 = arith.constant 240 : i32
    %35 = tpu.dynamic_rotate %1 by %c240_i32 dim 1 : vector<32x256xf32>, i32 -> vector<32x256xf32>
    %c7 = arith.constant 7 : index
    %c0_17 = arith.constant 0 : index
    %c0_18 = arith.constant 0 : index
    %36 = vector.load %arg2[%c7, %c0_17, %c0_18] : memref<9x32x256xf32, #tpu.memory_space<vmem>>, vector<1x32x256xf32>
    %37 = vector.shape_cast %36 : vector<1x32x256xf32> to vector<32x256xf32>
    %38 = arith.mulf %35, %37 : vector<32x256xf32>
    %39 = arith.addf %34, %38 : vector<32x256xf32>
    %c239_i32 = arith.constant 239 : i32
    %40 = tpu.dynamic_rotate %1 by %c239_i32 dim 1 : vector<32x256xf32>, i32 -> vector<32x256xf32>
    %c8 = arith.constant 8 : index
    %c0_19 = arith.constant 0 : index
    %c0_20 = arith.constant 0 : index
    %41 = vector.load %arg2[%c8, %c0_19, %c0_20] : memref<9x32x256xf32, #tpu.memory_space<vmem>>, vector<1x32x256xf32>
    %42 = vector.shape_cast %41 : vector<1x32x256xf32> to vector<32x256xf32>
    %43 = arith.mulf %40, %42 : vector<32x256xf32>
    %44 = arith.addf %39, %43 : vector<32x256xf32>
    %c0_21 = arith.constant 0 : index
    %c0_22 = arith.constant 0 : index
    %45 = vector.load %arg4[%c0_21, %c0_22] : memref<96x32xbf16, #tpu.memory_space<vmem>>, vector<96x32xbf16>
    %46 = arith.truncf %44 : vector<32x256xf32> to vector<32x256xbf16>
    %cst = arith.constant dense<0.000000e+00> : vector<96x256xf32>
    %47 = tpu.matmul %45, %46, %cst {dimension_numbers = #tpu.dot_dimension_numbers<[1], [0], [0], [1], [0, 0, 1, 1], [], []>} : vector<96x32xbf16>, vector<32x256xbf16>, vector<96x256xf32> -> vector<96x256xf32>
    %48 = vector.extract_strided_slice %47 {offsets = [0, 0], sizes = [32, 256], strides = [1, 1]} : vector<96x256xf32> to vector<32x256xf32>
    %49 = vector.extract_strided_slice %47 {offsets = [32, 0], sizes = [32, 256], strides = [1, 1]} : vector<96x256xf32> to vector<32x256xf32>
    %50 = vector.extract_strided_slice %47 {offsets = [64, 0], sizes = [32, 256], strides = [1, 1]} : vector<96x256xf32> to vector<32x256xf32>
    %cst_23 = arith.constant dense<0xFF800000> : vector<32xf32>
    %51 = vector.multi_reduction <maximumf>, %49, %cst_23 [1] : vector<32x256xf32> to vector<32xf32>
    %52 = vector.shape_cast %51 : vector<32xf32> to vector<32x1xf32>
    %53 = vector.broadcast %52 : vector<32x1xf32> to vector<32x256xf32>
    %54 = arith.subf %49, %53 : vector<32x256xf32>
    %55 = math.exp %54 : vector<32x256xf32>
    %cst_24 = arith.constant dense<0.000000e+00> : vector<32xf32>
    %56 = vector.multi_reduction <add>, %55, %cst_24 [1] : vector<32x256xf32> to vector<32xf32>
    %57 = vector.shape_cast %56 : vector<32xf32> to vector<32x1xf32>
    %58 = tpu.reciprocal %57 : vector<32x1xf32> -> vector<32x1xf32>
    %59 = vector.broadcast %58 : vector<32x1xf32> to vector<32x256xf32>
    %60 = arith.mulf %55, %59 : vector<32x256xf32>
    %61 = arith.truncf %60 : vector<32x256xf32> to vector<32x256xbf16>
    %62 = arith.truncf %50 : vector<32x256xf32> to vector<32x256xbf16>
    %cst_25 = arith.constant dense<0.000000e+00> : vector<32x32xf32>
    %63 = tpu.matmul %61, %62, %cst_25 {dimension_numbers = #tpu.dot_dimension_numbers<[1], [1], [0], [0], [0, 0, 1, 0], [], []>} : vector<32x256xbf16>, vector<32x256xbf16>, vector<32x32xf32> -> vector<32x32xf32>
    %c0_26 = arith.constant 0 : index
    %c0_27 = arith.constant 0 : index
    %64 = vector.load %arg5[%c0_26, %c0_27] : memref<32x32xf32, #tpu.memory_space<vmem>>, vector<32x32xf32>
    %65 = arith.mulf %63, %64 : vector<32x32xf32>
    %66 = arith.truncf %65 : vector<32x32xf32> to vector<32x32xbf16>
    %67 = arith.truncf %48 : vector<32x256xf32> to vector<32x256xbf16>
    %cst_28 = arith.constant dense<0.000000e+00> : vector<32x256xf32>
    %68 = tpu.matmul %66, %67, %cst_28 {dimension_numbers = #tpu.dot_dimension_numbers<[0], [0], [1], [1], [0, 1, 1, 1], [], []>} : vector<32x32xbf16>, vector<32x256xbf16>, vector<32x256xf32> -> vector<32x256xf32>
    %c34_i32 = arith.constant 34 : i32
    %69 = tpu.dynamic_rotate %50 by %c34_i32 dim 1 : vector<32x256xf32>, i32 -> vector<32x256xf32>
    %c0_29 = arith.constant 0 : index
    %c0_30 = arith.constant 0 : index
    %c0_31 = arith.constant 0 : index
    %70 = vector.load %arg3[%c0_29, %c0_30, %c0_31] : memref<25x32x256xf32, #tpu.memory_space<vmem>>, vector<1x32x256xf32>
    %71 = vector.shape_cast %70 : vector<1x32x256xf32> to vector<32x256xf32>
    %72 = arith.mulf %69, %71 : vector<32x256xf32>
    %c33_i32 = arith.constant 33 : i32
    %73 = tpu.dynamic_rotate %50 by %c33_i32 dim 1 : vector<32x256xf32>, i32 -> vector<32x256xf32>
    %c1_32 = arith.constant 1 : index
    %c0_33 = arith.constant 0 : index
    %c0_34 = arith.constant 0 : index
    %74 = vector.load %arg3[%c1_32, %c0_33, %c0_34] : memref<25x32x256xf32, #tpu.memory_space<vmem>>, vector<1x32x256xf32>
    %75 = vector.shape_cast %74 : vector<1x32x256xf32> to vector<32x256xf32>
    %76 = arith.mulf %73, %75 : vector<32x256xf32>
    %77 = arith.addf %72, %76 : vector<32x256xf32>
    %c32_i32 = arith.constant 32 : i32
    %78 = tpu.dynamic_rotate %50 by %c32_i32 dim 1 : vector<32x256xf32>, i32 -> vector<32x256xf32>
    %c2_35 = arith.constant 2 : index
    %c0_36 = arith.constant 0 : index
    %c0_37 = arith.constant 0 : index
    %79 = vector.load %arg3[%c2_35, %c0_36, %c0_37] : memref<25x32x256xf32, #tpu.memory_space<vmem>>, vector<1x32x256xf32>
    %80 = vector.shape_cast %79 : vector<1x32x256xf32> to vector<32x256xf32>
    %81 = arith.mulf %78, %80 : vector<32x256xf32>
    %82 = arith.addf %77, %81 : vector<32x256xf32>
    %c31_i32 = arith.constant 31 : i32
    %83 = tpu.dynamic_rotate %50 by %c31_i32 dim 1 : vector<32x256xf32>, i32 -> vector<32x256xf32>
    %c3_38 = arith.constant 3 : index
    %c0_39 = arith.constant 0 : index
    %c0_40 = arith.constant 0 : index
    %84 = vector.load %arg3[%c3_38, %c0_39, %c0_40] : memref<25x32x256xf32, #tpu.memory_space<vmem>>, vector<1x32x256xf32>
    %85 = vector.shape_cast %84 : vector<1x32x256xf32> to vector<32x256xf32>
    %86 = arith.mulf %83, %85 : vector<32x256xf32>
    %87 = arith.addf %82, %86 : vector<32x256xf32>
    %c30_i32 = arith.constant 30 : i32
    %88 = tpu.dynamic_rotate %50 by %c30_i32 dim 1 : vector<32x256xf32>, i32 -> vector<32x256xf32>
    %c4_41 = arith.constant 4 : index
    %c0_42 = arith.constant 0 : index
    %c0_43 = arith.constant 0 : index
    %89 = vector.load %arg3[%c4_41, %c0_42, %c0_43] : memref<25x32x256xf32, #tpu.memory_space<vmem>>, vector<1x32x256xf32>
    %90 = vector.shape_cast %89 : vector<1x32x256xf32> to vector<32x256xf32>
    %91 = arith.mulf %88, %90 : vector<32x256xf32>
    %92 = arith.addf %87, %91 : vector<32x256xf32>
    %c18_i32 = arith.constant 18 : i32
    %93 = tpu.dynamic_rotate %50 by %c18_i32 dim 1 : vector<32x256xf32>, i32 -> vector<32x256xf32>
    %c5_44 = arith.constant 5 : index
    %c0_45 = arith.constant 0 : index
    %c0_46 = arith.constant 0 : index
    %94 = vector.load %arg3[%c5_44, %c0_45, %c0_46] : memref<25x32x256xf32, #tpu.memory_space<vmem>>, vector<1x32x256xf32>
    %95 = vector.shape_cast %94 : vector<1x32x256xf32> to vector<32x256xf32>
    %96 = arith.mulf %93, %95 : vector<32x256xf32>
    %97 = arith.addf %92, %96 : vector<32x256xf32>
    %c17_i32_47 = arith.constant 17 : i32
    %98 = tpu.dynamic_rotate %50 by %c17_i32_47 dim 1 : vector<32x256xf32>, i32 -> vector<32x256xf32>
    %c6_48 = arith.constant 6 : index
    %c0_49 = arith.constant 0 : index
    %c0_50 = arith.constant 0 : index
    %99 = vector.load %arg3[%c6_48, %c0_49, %c0_50] : memref<25x32x256xf32, #tpu.memory_space<vmem>>, vector<1x32x256xf32>
    %100 = vector.shape_cast %99 : vector<1x32x256xf32> to vector<32x256xf32>
    %101 = arith.mulf %98, %100 : vector<32x256xf32>
    %102 = arith.addf %97, %101 : vector<32x256xf32>
    %c16_i32_51 = arith.constant 16 : i32
    %103 = tpu.dynamic_rotate %50 by %c16_i32_51 dim 1 : vector<32x256xf32>, i32 -> vector<32x256xf32>
    %c7_52 = arith.constant 7 : index
    %c0_53 = arith.constant 0 : index
    %c0_54 = arith.constant 0 : index
    %104 = vector.load %arg3[%c7_52, %c0_53, %c0_54] : memref<25x32x256xf32, #tpu.memory_space<vmem>>, vector<1x32x256xf32>
    %105 = vector.shape_cast %104 : vector<1x32x256xf32> to vector<32x256xf32>
    %106 = arith.mulf %103, %105 : vector<32x256xf32>
    %107 = arith.addf %102, %106 : vector<32x256xf32>
    %c15_i32_55 = arith.constant 15 : i32
    %108 = tpu.dynamic_rotate %50 by %c15_i32_55 dim 1 : vector<32x256xf32>, i32 -> vector<32x256xf32>
    %c8_56 = arith.constant 8 : index
    %c0_57 = arith.constant 0 : index
    %c0_58 = arith.constant 0 : index
    %109 = vector.load %arg3[%c8_56, %c0_57, %c0_58] : memref<25x32x256xf32, #tpu.memory_space<vmem>>, vector<1x32x256xf32>
    %110 = vector.shape_cast %109 : vector<1x32x256xf32> to vector<32x256xf32>
    %111 = arith.mulf %108, %110 : vector<32x256xf32>
    %112 = arith.addf %107, %111 : vector<32x256xf32>
    %c14_i32 = arith.constant 14 : i32
    %113 = tpu.dynamic_rotate %50 by %c14_i32 dim 1 : vector<32x256xf32>, i32 -> vector<32x256xf32>
    %c9 = arith.constant 9 : index
    %c0_59 = arith.constant 0 : index
    %c0_60 = arith.constant 0 : index
    %114 = vector.load %arg3[%c9, %c0_59, %c0_60] : memref<25x32x256xf32, #tpu.memory_space<vmem>>, vector<1x32x256xf32>
    %115 = vector.shape_cast %114 : vector<1x32x256xf32> to vector<32x256xf32>
    %116 = arith.mulf %113, %115 : vector<32x256xf32>
    %117 = arith.addf %112, %116 : vector<32x256xf32>
    %c2_i32 = arith.constant 2 : i32
    %118 = tpu.dynamic_rotate %50 by %c2_i32 dim 1 : vector<32x256xf32>, i32 -> vector<32x256xf32>
    %c10 = arith.constant 10 : index
    %c0_61 = arith.constant 0 : index
    %c0_62 = arith.constant 0 : index
    %119 = vector.load %arg3[%c10, %c0_61, %c0_62] : memref<25x32x256xf32, #tpu.memory_space<vmem>>, vector<1x32x256xf32>
    %120 = vector.shape_cast %119 : vector<1x32x256xf32> to vector<32x256xf32>
    %121 = arith.mulf %118, %120 : vector<32x256xf32>
    %122 = arith.addf %117, %121 : vector<32x256xf32>
    %c1_i32_63 = arith.constant 1 : i32
    %123 = tpu.dynamic_rotate %50 by %c1_i32_63 dim 1 : vector<32x256xf32>, i32 -> vector<32x256xf32>
    %c11 = arith.constant 11 : index
    %c0_64 = arith.constant 0 : index
    %c0_65 = arith.constant 0 : index
    %124 = vector.load %arg3[%c11, %c0_64, %c0_65] : memref<25x32x256xf32, #tpu.memory_space<vmem>>, vector<1x32x256xf32>
    %125 = vector.shape_cast %124 : vector<1x32x256xf32> to vector<32x256xf32>
    %126 = arith.mulf %123, %125 : vector<32x256xf32>
    %127 = arith.addf %122, %126 : vector<32x256xf32>
    %c12 = arith.constant 12 : index
    %c0_66 = arith.constant 0 : index
    %c0_67 = arith.constant 0 : index
    %128 = vector.load %arg3[%c12, %c0_66, %c0_67] : memref<25x32x256xf32, #tpu.memory_space<vmem>>, vector<1x32x256xf32>
    %129 = vector.shape_cast %128 : vector<1x32x256xf32> to vector<32x256xf32>
    %130 = arith.mulf %50, %129 : vector<32x256xf32>
    %131 = arith.addf %127, %130 : vector<32x256xf32>
    %c255_i32_68 = arith.constant 255 : i32
    %132 = tpu.dynamic_rotate %50 by %c255_i32_68 dim 1 : vector<32x256xf32>, i32 -> vector<32x256xf32>
    %c13 = arith.constant 13 : index
    %c0_69 = arith.constant 0 : index
    %c0_70 = arith.constant 0 : index
    %133 = vector.load %arg3[%c13, %c0_69, %c0_70] : memref<25x32x256xf32, #tpu.memory_space<vmem>>, vector<1x32x256xf32>
    %134 = vector.shape_cast %133 : vector<1x32x256xf32> to vector<32x256xf32>
    %135 = arith.mulf %132, %134 : vector<32x256xf32>
    %136 = arith.addf %131, %135 : vector<32x256xf32>
    %c254_i32 = arith.constant 254 : i32
    %137 = tpu.dynamic_rotate %50 by %c254_i32 dim 1 : vector<32x256xf32>, i32 -> vector<32x256xf32>
    %c14 = arith.constant 14 : index
    %c0_71 = arith.constant 0 : index
    %c0_72 = arith.constant 0 : index
    %138 = vector.load %arg3[%c14, %c0_71, %c0_72] : memref<25x32x256xf32, #tpu.memory_space<vmem>>, vector<1x32x256xf32>
    %139 = vector.shape_cast %138 : vector<1x32x256xf32> to vector<32x256xf32>
    %140 = arith.mulf %137, %139 : vector<32x256xf32>
    %141 = arith.addf %136, %140 : vector<32x256xf32>
    %c242_i32 = arith.constant 242 : i32
    %142 = tpu.dynamic_rotate %50 by %c242_i32 dim 1 : vector<32x256xf32>, i32 -> vector<32x256xf32>
    %c15 = arith.constant 15 : index
    %c0_73 = arith.constant 0 : index
    %c0_74 = arith.constant 0 : index
    %143 = vector.load %arg3[%c15, %c0_73, %c0_74] : memref<25x32x256xf32, #tpu.memory_space<vmem>>, vector<1x32x256xf32>
    %144 = vector.shape_cast %143 : vector<1x32x256xf32> to vector<32x256xf32>
    %145 = arith.mulf %142, %144 : vector<32x256xf32>
    %146 = arith.addf %141, %145 : vector<32x256xf32>
    %c241_i32_75 = arith.constant 241 : i32
    %147 = tpu.dynamic_rotate %50 by %c241_i32_75 dim 1 : vector<32x256xf32>, i32 -> vector<32x256xf32>
    %c16 = arith.constant 16 : index
    %c0_76 = arith.constant 0 : index
    %c0_77 = arith.constant 0 : index
    %148 = vector.load %arg3[%c16, %c0_76, %c0_77] : memref<25x32x256xf32, #tpu.memory_space<vmem>>, vector<1x32x256xf32>
    %149 = vector.shape_cast %148 : vector<1x32x256xf32> to vector<32x256xf32>
    %150 = arith.mulf %147, %149 : vector<32x256xf32>
    %151 = arith.addf %146, %150 : vector<32x256xf32>
    %c240_i32_78 = arith.constant 240 : i32
    %152 = tpu.dynamic_rotate %50 by %c240_i32_78 dim 1 : vector<32x256xf32>, i32 -> vector<32x256xf32>
    %c17 = arith.constant 17 : index
    %c0_79 = arith.constant 0 : index
    %c0_80 = arith.constant 0 : index
    %153 = vector.load %arg3[%c17, %c0_79, %c0_80] : memref<25x32x256xf32, #tpu.memory_space<vmem>>, vector<1x32x256xf32>
    %154 = vector.shape_cast %153 : vector<1x32x256xf32> to vector<32x256xf32>
    %155 = arith.mulf %152, %154 : vector<32x256xf32>
    %156 = arith.addf %151, %155 : vector<32x256xf32>
    %c239_i32_81 = arith.constant 239 : i32
    %157 = tpu.dynamic_rotate %50 by %c239_i32_81 dim 1 : vector<32x256xf32>, i32 -> vector<32x256xf32>
    %c18 = arith.constant 18 : index
    %c0_82 = arith.constant 0 : index
    %c0_83 = arith.constant 0 : index
    %158 = vector.load %arg3[%c18, %c0_82, %c0_83] : memref<25x32x256xf32, #tpu.memory_space<vmem>>, vector<1x32x256xf32>
    %159 = vector.shape_cast %158 : vector<1x32x256xf32> to vector<32x256xf32>
    %160 = arith.mulf %157, %159 : vector<32x256xf32>
    %161 = arith.addf %156, %160 : vector<32x256xf32>
    %c238_i32 = arith.constant 238 : i32
    %162 = tpu.dynamic_rotate %50 by %c238_i32 dim 1 : vector<32x256xf32>, i32 -> vector<32x256xf32>
    %c19 = arith.constant 19 : index
    %c0_84 = arith.constant 0 : index
    %c0_85 = arith.constant 0 : index
    %163 = vector.load %arg3[%c19, %c0_84, %c0_85] : memref<25x32x256xf32, #tpu.memory_space<vmem>>, vector<1x32x256xf32>
    %164 = vector.shape_cast %163 : vector<1x32x256xf32> to vector<32x256xf32>
    %165 = arith.mulf %162, %164 : vector<32x256xf32>
    %166 = arith.addf %161, %165 : vector<32x256xf32>
    %c226_i32 = arith.constant 226 : i32
    %167 = tpu.dynamic_rotate %50 by %c226_i32 dim 1 : vector<32x256xf32>, i32 -> vector<32x256xf32>
    %c20 = arith.constant 20 : index
    %c0_86 = arith.constant 0 : index
    %c0_87 = arith.constant 0 : index
    %168 = vector.load %arg3[%c20, %c0_86, %c0_87] : memref<25x32x256xf32, #tpu.memory_space<vmem>>, vector<1x32x256xf32>
    %169 = vector.shape_cast %168 : vector<1x32x256xf32> to vector<32x256xf32>
    %170 = arith.mulf %167, %169 : vector<32x256xf32>
    %171 = arith.addf %166, %170 : vector<32x256xf32>
    %c225_i32 = arith.constant 225 : i32
    %172 = tpu.dynamic_rotate %50 by %c225_i32 dim 1 : vector<32x256xf32>, i32 -> vector<32x256xf32>
    %c21 = arith.constant 21 : index
    %c0_88 = arith.constant 0 : index
    %c0_89 = arith.constant 0 : index
    %173 = vector.load %arg3[%c21, %c0_88, %c0_89] : memref<25x32x256xf32, #tpu.memory_space<vmem>>, vector<1x32x256xf32>
    %174 = vector.shape_cast %173 : vector<1x32x256xf32> to vector<32x256xf32>
    %175 = arith.mulf %172, %174 : vector<32x256xf32>
    %176 = arith.addf %171, %175 : vector<32x256xf32>
    %c224_i32 = arith.constant 224 : i32
    %177 = tpu.dynamic_rotate %50 by %c224_i32 dim 1 : vector<32x256xf32>, i32 -> vector<32x256xf32>
    %c22 = arith.constant 22 : index
    %c0_90 = arith.constant 0 : index
    %c0_91 = arith.constant 0 : index
    %178 = vector.load %arg3[%c22, %c0_90, %c0_91] : memref<25x32x256xf32, #tpu.memory_space<vmem>>, vector<1x32x256xf32>
    %179 = vector.shape_cast %178 : vector<1x32x256xf32> to vector<32x256xf32>
    %180 = arith.mulf %177, %179 : vector<32x256xf32>
    %181 = arith.addf %176, %180 : vector<32x256xf32>
    %c223_i32 = arith.constant 223 : i32
    %182 = tpu.dynamic_rotate %50 by %c223_i32 dim 1 : vector<32x256xf32>, i32 -> vector<32x256xf32>
    %c23 = arith.constant 23 : index
    %c0_92 = arith.constant 0 : index
    %c0_93 = arith.constant 0 : index
    %183 = vector.load %arg3[%c23, %c0_92, %c0_93] : memref<25x32x256xf32, #tpu.memory_space<vmem>>, vector<1x32x256xf32>
    %184 = vector.shape_cast %183 : vector<1x32x256xf32> to vector<32x256xf32>
    %185 = arith.mulf %182, %184 : vector<32x256xf32>
    %186 = arith.addf %181, %185 : vector<32x256xf32>
    %c222_i32 = arith.constant 222 : i32
    %187 = tpu.dynamic_rotate %50 by %c222_i32 dim 1 : vector<32x256xf32>, i32 -> vector<32x256xf32>
    %c24 = arith.constant 24 : index
    %c0_94 = arith.constant 0 : index
    %c0_95 = arith.constant 0 : index
    %188 = vector.load %arg3[%c24, %c0_94, %c0_95] : memref<25x32x256xf32, #tpu.memory_space<vmem>>, vector<1x32x256xf32>
    %189 = vector.shape_cast %188 : vector<1x32x256xf32> to vector<32x256xf32>
    %190 = arith.mulf %187, %189 : vector<32x256xf32>
    %191 = arith.addf %186, %190 : vector<32x256xf32>
    %192 = arith.mulf %48, %191 : vector<32x256xf32>
    %193 = arith.addf %68, %192 : vector<32x256xf32>
    %c0_96 = arith.constant 0 : index
    %c0_97 = arith.constant 0 : index
    %194 = vector.load %arg6[%c0_96, %c0_97] : memref<32x32xbf16, #tpu.memory_space<vmem>>, vector<32x32xbf16>
    %195 = arith.truncf %193 : vector<32x256xf32> to vector<32x256xbf16>
    %cst_98 = arith.constant dense<0.000000e+00> : vector<32x256xf32>
    %196 = tpu.matmul %194, %195, %cst_98 {dimension_numbers = #tpu.dot_dimension_numbers<[1], [0], [0], [1], [0, 0, 1, 1], [], []>} : vector<32x32xbf16>, vector<32x256xbf16>, vector<32x256xf32> -> vector<32x256xf32>
    %c0_99 = arith.constant 0 : index
    %c0_100 = arith.constant 0 : index
    %c0_101 = arith.constant 0 : index
    %197 = vector.load %arg7[%c0_99, %c0_100, %c0_101] : memref<1x32x256xf32, #tpu.memory_space<vmem>>, vector<1x32x256xf32>
    %198 = vector.shape_cast %197 : vector<1x32x256xf32> to vector<32x256xf32>
    %199 = vector.shape_cast %196 : vector<32x256xf32> to vector<1x32x256xf32>
    tpu.vector_store %arg7[%c0_99, %c0_100, %c0_101], %199 {strides = array<i32>} : memref<1x32x256xf32, #tpu.memory_space<vmem>>, vector<1x32x256xf32>,
    return
  }
  func.func @transform_0(%arg0: i32) -> (i32, i32, i32) {
    %c0_i32 = arith.constant 0 : i32
    %c0_i32_0 = arith.constant 0 : i32
    %c0_i32_1 = arith.constant 0 : i32
    return %arg0, %c0_i32, %c0_i32_0 : i32, i32, i32
  }
  func.func @transform_1(%arg0: i32) -> (i32, i32, i32) {
    %c0_i32 = arith.constant 0 : i32
    %c0_i32_0 = arith.constant 0 : i32
    %c0_i32_1 = arith.constant 0 : i32
    %c0_i32_2 = arith.constant 0 : i32
    return %c0_i32, %c0_i32_0, %c0_i32_1 : i32, i32, i32
  }
  func.func @transform_2(%arg0: i32) -> (i32, i32, i32) {
    %c0_i32 = arith.constant 0 : i32
    %c0_i32_0 = arith.constant 0 : i32
    %c0_i32_1 = arith.constant 0 : i32
    %c0_i32_2 = arith.constant 0 : i32
    return %c0_i32, %c0_i32_0, %c0_i32_1 : i32, i32, i32
  }
  func.func @transform_3(%arg0: i32) -> (i32, i32) {
    %c0_i32 = arith.constant 0 : i32
    %c0_i32_0 = arith.constant 0 : i32
    %c0_i32_1 = arith.constant 0 : i32
    return %c0_i32, %c0_i32_0 : i32, i32
  }
  func.func @transform_4(%arg0: i32) -> (i32, i32) {
    %c0_i32 = arith.constant 0 : i32
    %c0_i32_0 = arith.constant 0 : i32
    %c0_i32_1 = arith.constant 0 : i32
    return %c0_i32, %c0_i32_0 : i32, i32
  }
  func.func @transform_5(%arg0: i32) -> (i32, i32) {
    %c0_i32 = arith.constant 0 : i32
    %c0_i32_0 = arith.constant 0 : i32
    %c0_i32_1 = arith.constant 0 : i32
    return %c0_i32, %c0_i32_0 : i32, i32
  }
  func.func @transform_6(%arg0: i32) -> (i32, i32, i32) {
    %c0_i32 = arith.constant 0 : i32
    %c0_i32_0 = arith.constant 0 : i32
    %c0_i32_1 = arith.constant 0 : i32
    return %arg0, %c0_i32, %c0_i32_0 : i32, i32, i32
  }
}

</mosaic_0001>

<bundles_post_ra>
// kernel: tpu_custom_call.1
= control target key start
LH: loop header
LB: loop body
LE: loop exit
PB: predicated region body
PF: predicated region fallthrough
CT: control target
= control target key end

     0   :  { %11 = vsyncpa [#allocation3], 0  ;;  %s5042_s0 = inlined_call_operand.hbm [shape: f32[2,32,256], index: 0, kind: input, shape index: {}]   ;;  %s5043_s1 = inlined_call_operand.hbm [shape: f32[9,32,256], index: 1, kind: input, shape index: {}]   ;;  %s5044_s2 = inlined_call_operand.hbm [shape: f32[25,32,256], index: 2, kind: input, shape index: {}]   ;;  %s5045_s3 = inlined_call_operand.vmem [shape: bf16[96,32], index: 3, kind: input, shape index: {}]   ;;  %s5046_s4 = inlined_call_operand.vmem [shape: f32[32,32], index: 4, kind: input, shape index: {}]   ;;  %s5047_s5 = inlined_call_operand.vmem [shape: bf16[32,32], index: 5, kind: input, shape index: {}]   ;;  %s5048_s6 = inlined_call_operand.hbm [shape: f32[2,32,256], index: 6, kind: output, shape index: {}]  }
   0x1   :  { %13 = vsyncpa [#allocation3 + $0x1], 0 }
   0x2   :  { %14 = vsyncpa [#allocation6], 0 }
   0x3   :  { %15 = vsyncpa [#allocation4], 0 }
   0x4   :  { %17 = vsyncpa [#allocation4 + $0x1], 0  ;;  %s2887_s21 = smov 0   ;;  %s2889_s22 = smov 0  }
   0x5   :  { %s2891_s23 = smov 0   ;;  %s2893_s24 = smov 0  }
   0x6 LB: > { %s2908_s25 = sadd.s32 4294967295, %s2818_s24   ;;  %s2497_s26 = sadd.s32 4294967294, %s2818_s24   ;;  %s2818_s24 = sphi %s2893_s24, %s5267_s24   ;;  %s2814_s23 = sphi %s2891_s23, %s5266_s23   ;;  %s2810_s22 = sphi %s2889_s22, %s5265_s22   ;;  %s2806_s21 = sphi %s2887_s21, %s5264_s21  }
   0x7   : > { %p43_p0 = scmp.ne.s32.totalorder %s2810_s22, %s2806_s21  ;;  %p5049_p1 = scmp.eq.s32.totalorder %s2908_s25, 0 }
   0x8   : > { %p178_p3 = scmp.eq.s32.totalorder %s2497_s26, 1  ;;  %p2498_p5 = scmp.ge.s32.totalorder %s2818_s24, 1 }
   0x9   : > { %p2917_p4 = por %p5049_p1, %p43_p0  ;;  %p185_p7 = scmp.lt.s32.totalorder %s2818_s24, 3 }
   0xa   : > { %p2922_p6 = por %p178_p3, %p43_p0  ;;  %s2820_s30 = smov [#allocation5]  }
   0xb   : > { %s5118_s27 = scalar_select %p2917_p4, 1, 0 }
   0xc   : > { %s5119_s28 = scalar_select %p2922_p6, 1, 0 }
   0xd   : > { %p2927_p8 = pnand %p2498_p5, %p185_p7  ;;  %s197_s7 = sshll.u32 %s2820_s30, 4  ;;  %s2931_s7 = int_to_ptr.vmem [resolvable:$true] %s197_s7 }
   0xe   : > { %s2821_s9 = smov [#allocation7]   ;;  %s2662_s13 = scalar_lea.hbm %s5043_s1, 9216 }
   0xf   : > { %p2547_p9 = pneg %p2927_p8  ;;  %s210_s10 = sshll.u32 %s2821_s9, 4  ;;  %s2942_s10 = int_to_ptr.vmem [resolvable:$true] %s210_s10 }
  0x10   : > { %p2663_p12 = scmp.ne.s32.totalorder %s5043_s1, %s2662_s13  ;;  %p2669_p5 = scmp.lt.u32.totalorder %s2662_s13, %s5043_s1 }
  0x11   : > { %p2938_p11 = pnand %p2547_p9, %p5049_p1 }
  0x13   : > { %p2664_p13 = pneg %p2938_p11 }
  0x15   : > { %p2665_p0 = pnand %p2664_p13, %p2663_p12 }
  0x17   : > { %p2666_p3 = pneg %p2665_p0 }
  0x19   : > { %p2671_p7 = pnand %p2669_p5, %p2666_p3 }
  0x1b   : > { %2674 = shalt.err (!%p2671_p7)
}
  0x1c   : > { %s2675_s18 = scalar_lea.vmem %s2931_s7, 9216  ;;  %p2683_p2 = scmp.lt.s32.totalorder %s2931_s7, %s2931_s7 }
  0x1d   : > { %p2676_p9 = scmp.ne.s32.totalorder %s2931_s7, %s2675_s18  ;;  %p2684_p12 = scmp.lt.s32.totalorder %s2675_s18, %s2675_s18 }
  0x1f   : > { %p2678_p10 = pnand %p2676_p9, %p2664_p13  ;;  %p2685_p0 = por %p2684_p12, %p2683_p2 }
  0x21   : > { %p2679_p1 = pneg %p2678_p10 }
  0x23   : > { %p2686_p6 = pnand %p2685_p0, %p2679_p1 }
  0x25   : > { %2689 = shalt.err (!%p2686_p6)
}
  0x26   : > { %s2822_s19 = smov 256   ;;  %s2823_s20 = smov 16  }
  0x27   : > { %2550 = dma.hbm_to_vmem [thread:$0]  (!%p2938_p11), %s5043_s1, 9216, %s2931_s7, [#allocation6], %s2822_s19, %s2822_s19, %s2823_s20  }
  0x28   : > { %s2690_s12 = scalar_lea.hbm %s5044_s2, 25600 }
  0x29   : > { %p2691_p1 = scmp.ne.s32.totalorder %s5044_s2, %s2690_s12  ;;  %p2697_p10 = scmp.lt.u32.totalorder %s2690_s12, %s5044_s2 }
  0x2b   : > { %p2693_p2 = pnand %p2691_p1, %p2664_p13 }
  0x2d   : > { %p2694_p6 = pneg %p2693_p2 }
  0x2f   : > { %p2699_p3 = pnand %p2697_p10, %p2694_p6 }
  0x31   : > { %2702 = shalt.err (!%p2699_p3)
}
  0x32   : > { %s2703_s7 = scalar_lea.vmem %s2942_s10, 25600  ;;  %p2711_p12 = scmp.lt.s32.totalorder %s2942_s10, %s2942_s10 }
  0x33   : > { %p2704_p5 = scmp.ne.s32.totalorder %s2942_s10, %s2703_s7  ;;  %p2712_p0 = scmp.lt.s32.totalorder %s2703_s7, %s2703_s7 }
  0x35   : > { %p2706_p7 = pnand %p2704_p5, %p2664_p13  ;;  %p2713_p1 = por %p2712_p0, %p2711_p12 }
  0x37   : > { %p2707_p9 = pneg %p2706_p7 }
  0x39   : > { %p2714_p2 = pnand %p2713_p1, %p2707_p9 }
  0x3b   : > { %2717 = shalt.err (!%p2714_p2)
}
  0x3c   : > { %2553 = dma.hbm_to_vmem [thread:$0]  (!%p2938_p11), %s5044_s2, 25600, %s2942_s10, [#allocation6], %s2822_s19, %s2822_s19, %s2823_s20  }
  0x3d   : > { %s3003_s8 = sadd.s32 1, %s2818_s24   ;;  %s30_s26 = sadd.s32 1, %s2814_s23 }
  0x3e   : > { %s27_s30 = ssub.s32 %s2818_s24, %s3003_s8  ;;  %p37_p13 = scmp.ne.s32.totalorder %s2814_s23, %s2810_s22 }
  0x3f   : > { %p28_p6 = scmp.eq.s32.totalorder %s27_s30, 0  ;;  %p38_p10 = scmp.eq.s32.totalorder %s2818_s24, 0 }
  0x40   : > { %p5122_p3 = scmp.eq.s32.totalorder %s2908_s25, 1  ;;  %p2564_p7 = scmp.lt.s32.totalorder %s2818_s24, 2 }
  0x41   : > { %s3019_s11 = scalar_select %p28_p6, %s2814_s23, %s30_s26  }
  0x42   : > { %p3013_p5 = por %p5122_p3, %p37_p13  ;;  %p39_p9 = por %p38_p10, %p37_p13 }
  0x43   : > { %s233_s12 = sand.u32 1, %s2814_s23   ;;  %s2533_s10 = sshll.u32 %s2818_s24, 10 }
  0x44   : > { %s5123_s9 = scalar_select %p3013_p5, 1, 0 }
  0x45   : > { %s2502_s13 = sshll.u32 %s233_s12, 6  ;;  %s3026_s16 = scalar_lea.hbm %s5042_s0, %s2533_s10 }
  0x46   : > { %s237_s7 = scalar_lea.vmem [#allocation2], %s2502_s13  ;;  %p3030_p11 = pnand %p2564_p7, %p39_p9 }
  0x47   : > { %s244_s17 = sshll.u32 %s237_s7, 4  ;;  %s3034_s26 = scalar_lea.sflag [#allocation3], %s233_s12  ;;  %s3028_s17 = int_to_ptr.vmem [resolvable:$true] %s244_s17 }
  0x48   : > { %s2718_s30 = scalar_lea.hbm %s3026_s16, 1024  ;;  %p2720_p0 = pneg %p3030_p11 }
  0x49   : > { %p2719_p12 = scmp.ne.s32.totalorder %s3026_s16, %s2718_s30  ;;  %s2723_s14 = scalar_lea.hbm %s5042_s0, 2048 }
  0x4a   : > { %p2724_p13 = scmp.lt.u32.totalorder %s3026_s16, %s5042_s0  ;;  %p2725_p6 = scmp.lt.u32.totalorder %s2723_s14, %s2718_s30 }
  0x4b   : > { %p2721_p1 = pnand %p2720_p0, %p2719_p12  ;;  %p2727_p3 = scmp.lt.u32.totalorder %s2718_s30, %s3026_s16 }
  0x4c   : > { %p2726_p10 = por %p2725_p6, %p2724_p13 }
  0x4d   : > { %p2722_p2 = pneg %p2721_p1 }
  0x4e   : > { %p2728_p7 = por %p2727_p3, %p2726_p10 }
  0x50   : > { %p2729_p9 = pnand %p2728_p7, %p2722_p2 }
  0x52   : > { %2732 = shalt.err (!%p2729_p9)
}
  0x53   : > { %s2733_s12 = scalar_lea.vmem %s3028_s17, 1024  ;;  %s2824_s13 = smov [#allocation2]  }
  0x54   : > { %p2734_p12 = scmp.ne.s32.totalorder %s3028_s17, %s2733_s12  ;;  %s2738_s10 = sshll.u32 %s2824_s13, 4  ;;  %s2739_s10 = int_to_ptr.vmem [resolvable:$false] %s2738_s10 }
  0x55   : > { %s2740_s15 = scalar_lea.vmem %s2739_s10, 2048  ;;  %p2741_p4 = scmp.lt.s32.totalorder %s3028_s17, %s2739_s10 }
  0x56   : > { %p2736_p1 = pnand %p2734_p12, %p2720_p0  ;;  %p2742_p13 = scmp.lt.s32.totalorder %s2740_s15, %s2733_s12 }
  0x58   : > { %p2737_p5 = pneg %p2736_p1  ;;  %p2743_p6 = por %p2742_p13, %p2741_p4 }
  0x5a   : > { %p2744_p10 = pnand %p2743_p6, %p2737_p5 }
  0x5c   : > { %2747 = shalt.err (!%p2744_p10)
}
  0x5d   : > { %2557 = dma.hbm_to_vmem [thread:$0]  (!%p3030_p11), %s3026_s16, 1024, %s3028_s17, %s3034_s26, %s2822_s19, %s2822_s19, %s2823_s20  }
  0x5e   : > { %256 = sbr.rel (%p2927_p8) target bundleno = 1706 (0x6aa), region = 44 }
  0x65   : > { %s3068_s30 = sand.u32 1, %s2810_s22   ;;  %p5125_p4 = scmp.ne.s32.totalorder %s5118_s27, 0 }
  0x66   : > { %s5066_s14 = sshll.u32 %s3068_s30, 6  ;;  %s259_s7 = scalar_lea.sflag [#allocation3], %s3068_s30 }
  0x67   : > { %s262_s18 = scalar_lea.vmem [#allocation2], %s5066_s14 }
  0x68   : > { %2793 = dma.done.wait (%p5125_p4), %s259_s7, 1024  }
  0x69   : > { %2795 = vsyncadd (%p5125_p4), %s259_s7, 4294966272  ;;  %p5126_p5 = scmp.eq.s32.totalorder %s2908_s25, 0 }
  0x6b   : > { %2797 = dma.done.wait (%p5126_p5), [#allocation6], 34816   ;;  %p5127_p8 = pmov %p5126_p5 }
  0x6c   : > { %v3082_v0 = vld [vmem:[%s262_s18 + $0x8] sm:$0xff]  ;;  %v3084_v1 = vld [vmem:[%s262_s18] sm:$0xff]  ;;  %s2825_s29 = smov 17   ;;  %v3090_v2 = vld [vmem:[%s262_s18 + $0x18] sm:$0xff]  ;;  %s5108_s27 = smov 16   ;;  %v5052_v12 = vmov 0   ;;  %v324_v43 = vlaneseq }
  0x6d   : > { %2799 = vsyncadd (%p5127_p8), [#allocation6], 4294932480  ;;  %316 = vrot.lane.b32.xlu1 %v3082_v0, %s2825_s29  ;;  %308 = vrot.lane.b32.xlu0 %v3084_v1, %s2825_s29  ;;  %v3092_v3 = vld [vmem:[%s262_s18 + $0x10] sm:$0xff]  ;;  %s2827_s19 = smov 15   ;;  %v3116_v5 = vld [vmem:[%s262_s18 + $0x20] sm:$0xff]  ;;  %s2828_s20 = smov 1  }
  0x6e   : > { %v3114_v4 = vld [vmem:[%s262_s18 + $0x30] sm:$0xff]  ;;  %v3122_v6 = vld [vmem:[%s262_s18 + $0x38] sm:$0xff]  ;;  %v3124_v7 = vld [vmem:[%s262_s18 + $0x28] sm:$0xff]  ;;  %s2829_s16 = smov 127   ;;  %s2830_s17 = smov 113   ;;  %823 = vmatprep.mubr.bf16.mxu0 %v5052_v12  ;;  %v3289_v46 = vand.u32 127, %v324_v43 }
  0x6f   : > { %s2831_s26 = smov 112   ;;  %s2832_s12 = smov 111   ;;  %v504_v47 = vld [vmem:[#allocation5 + $0x110] sm:$0xff]  ;;  %v505_v48 = vld [vmem:[#allocation5 + $0x118] sm:$0xff]  ;;  %v335_v51 = vld [vmem:[#allocation5] sm:$0xff]  ;;  %vm5107_vm8 = vcmask 261120  }
  0x70   : > { %vm367_vm0 = vcmp.lt.s32.totalorder %v3289_v46, 16  ;;  %vm326_vm1 = vcmp.lt.s32.totalorder %v3289_v46, 17  ;;  %v379_v52 = vld [vmem:[#allocation5 + $0x50] sm:$0xff]  ;;  %vm417_vm2 = vcmp.lt.s32.totalorder %v3289_v46, 15  ;;  %vm5109_vm3 = vcmp.lt.s32.totalorder %v3289_v46, 1  ;;  %v502_v55 = vld [vmem:[#allocation5 + $0x100] sm:$0xff] }
  0x71   : > { %318 = vrot.lane.b32.xlu1 %v3090_v2, %s2825_s29  ;;  %310 = vrot.lane.b32.xlu0 %v3092_v3, %s2825_s29  ;;  %v3300_v53 = vmul.f32 %v504_v47, %v3092_v3  ;;  %v3303_v54 = vmul.f32 %v505_v48, %v3090_v2  ;;  %v503_v56 = vld [vmem:[#allocation5 + $0x108] sm:$0xff]  ;;  %v380_v57 = vld [vmem:[#allocation5 + $0x58] sm:$0xff]  ;;  %v377_v60 = vld [vmem:[#allocation5 + $0x40] sm:$0xff]  ;;  %vm542_vm4 = vcmp.lt.s32.totalorder %v3289_v46, 127  ;;  %vm5113_vm5 = vcmp.lt.s32.totalorder %v3289_v46, 113  ;;  %s2834_s13 = smov 33  }
  0x72   : > { %v378_v61 = vld [vmem:[#allocation5 + $0x48] sm:$0xff]  ;;  %v429_v12 = vld [vmem:[#allocation5 + $0x90] sm:$0xff]  ;;  %vm642_vm6 = vcmp.lt.s32.totalorder %v3289_v46, 112  ;;  %vm692_vm7 = vcmp.lt.s32.totalorder %v3289_v46, 111  ;;  %s2835_s10 = smov 34   ;;  %s2836_s15 = smov 32  }
  0x73   : > { %5138 = vst [vmem:[#allocation22_spill] sm:$0xff] %v3300_v53  ;;  %5139 = vst [vmem:[#allocation23_spill] sm:$0xff] %v3303_v54  ;;  %s2837_s7 = smov 31   ;;  %s2838_s14 = smov 30   ;;  %vm1031_vm9 = vcmp.lt.s32.totalorder %v3289_v46, 34  ;;  %vm1072_vm10 = vcmp.lt.s32.totalorder %v3289_v46, 33 }
  0x74   : > { %s2839_s18 = smov 18   ;;  %vm1122_vm11 = vcmp.lt.s32.totalorder %v3289_v46, 32  ;;  %vm1172_vm12 = vcmp.lt.s32.totalorder %v3289_v46, 31  ;;  %vm1222_vm13 = vcmp.lt.s32.totalorder %v3289_v46, 30  ;;  %vm1272_vm14 = vcmp.lt.s32.totalorder %v3289_v46, 18  ;;  %p5260_p0 = scmp.ne.s32.totalorder %s5123_s9, 0 }
  0x75   : > { %353 = vrot.lane.b32.xlu1 %v3092_v3, %s5108_s27  ;;  %351 = vrot.lane.b32.xlu0 %v3084_v1, %s5108_s27  ;;  %vm1469_vm15 = vcmp.lt.s32.totalorder %v3289_v46, 14 }
  0x79   : > { %361 = vrot.lane.b32.xlu1 %v3090_v2, %s5108_s27  ;;  %359 = vrot.lane.b32.xlu0 %v3082_v0, %s5108_s27 }
  0x7d   : > { %403 = vrot.lane.b32.xlu1 %v3092_v3, %s2827_s19  ;;  %401 = vrot.lane.b32.xlu0 %v3084_v1, %s2827_s19 }
  0x81   : > { %411 = vrot.lane.b32.xlu1 %v3090_v2, %s2827_s19  ;;  %409 = vrot.lane.b32.xlu0 %v3082_v0, %s2827_s19 }
  0x85   : > { %314 = vrot.lane.b32.xlu1 %v3114_v4, %s2825_s29  ;;  %312 = vrot.lane.b32.xlu0 %v3116_v5, %s2825_s29 }
  0x89   : > { %322 = vrot.lane.b32.xlu1 %v3122_v6, %s2825_s29  ;;  %320 = vrot.lane.b32.xlu0 %v3124_v7, %s2825_s29 }
  0x8d   : > { %357 = vrot.lane.b32.xlu1 %v3114_v4, %s5108_s27  ;;  %355 = vrot.lane.b32.xlu0 %v3116_v5, %s5108_s27 }
  0x91   : > { %365 = vrot.lane.b32.xlu1 %v3122_v6, %s5108_s27  ;;  %363 = vrot.lane.b32.xlu0 %v3124_v7, %s5108_s27 }
  0x95   : > { %453 = vrot.lane.b32.xlu1 %v3092_v3, %s2828_s20  ;;  %451 = vrot.lane.b32.xlu0 %v3084_v1, %s2828_s20 }
  0x99   : > { %461 = vrot.lane.b32.xlu1 %v3090_v2, %s2828_s20  ;;  %459 = vrot.lane.b32.xlu0 %v3082_v0, %s2828_s20 }
  0x9d   : > { %407 = vrot.lane.b32.xlu1 %v3114_v4, %s2827_s19  ;;  %405 = vrot.lane.b32.xlu0 %v3116_v5, %s2827_s19 }
  0xa1   : > { %415 = vrot.lane.b32.xlu1 %v3122_v6, %s2827_s19  ;;  %413 = vrot.lane.b32.xlu0 %v3124_v7, %s2827_s19 }
  0xa5   : > { %457 = vrot.lane.b32.xlu1 %v3114_v4, %s2828_s20  ;;  %455 = vrot.lane.b32.xlu0 %v3116_v5, %s2828_s20 }
  0xa9   : > { %465 = vrot.lane.b32.xlu1 %v3122_v6, %s2828_s20  ;;  %463 = vrot.lane.b32.xlu0 %v3124_v7, %s2828_s20 }
  0xad   : > { %528 = vrot.lane.b32.xlu1 %v3092_v3, %s2829_s16  ;;  %526 = vrot.lane.b32.xlu0 %v3084_v1, %s2829_s16 }
  0xb1   : > { %536 = vrot.lane.b32.xlu1 %v3090_v2, %s2829_s16  ;;  %534 = vrot.lane.b32.xlu0 %v3082_v0, %s2829_s16 }
  0xb5   : > { %578 = vrot.lane.b32.xlu1 %v3092_v3, %s2830_s17  ;;  %576 = vrot.lane.b32.xlu0 %v3084_v1, %s2830_s17 }
  0xb9   : > { %586 = vrot.lane.b32.xlu1 %v3090_v2, %s2830_s17  ;;  %584 = vrot.lane.b32.xlu0 %v3082_v0, %s2830_s17 }
  0xbd   : > { %532 = vrot.lane.b32.xlu1 %v3114_v4, %s2829_s16  ;;  %530 = vrot.lane.b32.xlu0 %v3116_v5, %s2829_s16 }
  0xc1   : > { %540 = vrot.lane.b32.xlu1 %v3122_v6, %s2829_s16  ;;  %538 = vrot.lane.b32.xlu0 %v3124_v7, %s2829_s16 }
  0xc5   : > { %628 = vrot.lane.b32.xlu1 %v3092_v3, %s2831_s26  ;;  %626 = vrot.lane.b32.xlu0 %v3084_v1, %s2831_s26 }
  0xc9   : > { %636 = vrot.lane.b32.xlu1 %v3090_v2, %s2831_s26  ;;  %634 = vrot.lane.b32.xlu0 %v3082_v0, %s2831_s26 }
  0xcd   : > { %582 = vrot.lane.b32.xlu1 %v3114_v4, %s2830_s17  ;;  %580 = vrot.lane.b32.xlu0 %v3116_v5, %s2830_s17 }
  0xd1   : > { %590 = vrot.lane.b32.xlu1 %v3122_v6, %s2830_s17  ;;  %588 = vrot.lane.b32.xlu0 %v3124_v7, %s2830_s17 }
  0xd5   : > { %678 = vrot.lane.b32.xlu1 %v3092_v3, %s2832_s12  ;;  %676 = vrot.lane.b32.xlu0 %v3084_v1, %s2832_s12  ;;  %v336_v3 = vld [vmem:[#allocation5 + $0x8] sm:$0xff] }
  0xd9   : > { %686 = vrot.lane.b32.xlu1 %v3090_v2, %s2832_s12  ;;  %684 = vrot.lane.b32.xlu0 %v3082_v0, %s2832_s12 }
  0xdd   : > { %632 = vrot.lane.b32.xlu1 %v3114_v4, %s2831_s26  ;;  %630 = vrot.lane.b32.xlu0 %v3116_v5, %s2831_s26 }
  0xdf   : > { %v3214_v8 = vpop.permute.xlu1 %316  ;;  %v3216_v9 = vpop.permute.xlu0 %308 }
  0xe0   : > { %v327_v2 = vsel %vm326_vm1, %v3216_v9, %v3214_v8  ;;  %v331_v43 = vsel %vm326_vm1, %v3214_v8, %v3216_v9 }
  0xe1   : > { %640 = vrot.lane.b32.xlu1 %v3122_v6, %s2831_s26  ;;  %638 = vrot.lane.b32.xlu0 %v3124_v7, %s2831_s26 }
  0xe3   : > { %v3222_v10 = vpop.permute.xlu1 %318  ;;  %v3224_v11 = vpop.permute.xlu0 %310 }
  0xe4   : > { %v328_v47 = vsel %vm326_vm1, %v3224_v11, %v3222_v10 }
  0xe5   : > { %682 = vrot.lane.b32.xlu1 %v3114_v4, %s2832_s12  ;;  %680 = vrot.lane.b32.xlu0 %v3116_v5, %s2832_s12 }
  0xe7   : > { %v354_v13 = vpop.permute.xlu1 %353  ;;  %v352_v14 = vpop.permute.xlu0 %351 }
  0xe9   : > { %690 = vrot.lane.b32.xlu1 %v3122_v6, %s2832_s12  ;;  %688 = vrot.lane.b32.xlu0 %v3124_v7, %s2832_s12 }
  0xeb   : > { %v362_v15 = vpop.permute.xlu1 %361  ;;  %v360_v16 = vpop.permute.xlu0 %359 }
  0xec   : > { %v369_v58 = vsel %vm367_vm0, %v354_v13, %v362_v15  ;;  %v373_v59 = vsel %vm367_vm0, %v362_v15, %v354_v13  ;;  %v368_v62 = vsel %vm367_vm0, %v352_v14, %v360_v16  ;;  %v372_v63 = vsel %vm367_vm0, %v360_v16, %v352_v14  ;;  %v337_v13 = vld [vmem:[#allocation5 + $0x10] sm:$0xff]  ;;  %v338_v15 = vld [vmem:[#allocation5 + $0x18] sm:$0xff] }
  0xed   : > { %v332_v14 = vsel %vm326_vm1, %v3222_v10, %v3224_v11  ;;  %v508_v10 = vld [vmem:[#allocation5 + $0x130] sm:$0xff]  ;;  %v387_v11 = vmul.f32 %v379_v52, %v373_v59  ;;  %v346_v54 = vmul.f32 %v338_v15, %v328_v47 }
  0xef   : > { %v3235_v17 = vpop.permute.xlu1 %403  ;;  %v3237_v18 = vpop.permute.xlu0 %401 }
  0xf3   : > { %v412_v19 = vpop.permute.xlu1 %411  ;;  %v3239_v20 = vpop.permute.xlu0 %409 }
  0xf4   : > { %v419_v8 = vsel %vm417_vm2, %v3235_v17, %v412_v19  ;;  %v423_v9 = vsel %vm417_vm2, %v412_v19, %v3235_v17  ;;  %v427_v19 = vld [vmem:[#allocation5 + $0x80] sm:$0xff]  ;;  %v422_v52 = vsel %vm417_vm2, %v3239_v20, %v3237_v18 }
  0xf5   : > { %v437_v53 = vmul.f32 %v429_v12, %v423_v9 }
  0xf7   : > { %v3241_v21 = vpop.permute.xlu1 %314  ;;  %v3243_v22 = vpop.permute.xlu0 %312 }
  0xfb   : > { %v3245_v23 = vpop.permute.xlu1 %322  ;;  %v3247_v24 = vpop.permute.xlu0 %320 }
  0xff   : > { %v3249_v25 = vpop.permute.xlu1 %357  ;;  %v3251_v26 = vpop.permute.xlu0 %355 }
 0x103   : > { %v3253_v27 = vpop.permute.xlu1 %365  ;;  %v3255_v28 = vpop.permute.xlu0 %363 }
 0x107   : > { %v3257_v29 = vpop.permute.xlu1 %453  ;;  %v3259_v30 = vpop.permute.xlu0 %451 }
 0x10b   : > { %v3261_v31 = vpop.permute.xlu1 %461  ;;  %v3263_v32 = vpop.permute.xlu0 %459 }
 0x10f   : > { %v3265_v33 = vpop.permute.xlu1 %407  ;;  %v3267_v34 = vpop.permute.xlu0 %405 }
 0x113   : > { %v3269_v35 = vpop.permute.xlu1 %415  ;;  %v3271_v36 = vpop.permute.xlu0 %413 }
 0x117   : > { %v3273_v37 = vpop.permute.xlu1 %457  ;;  %v3275_v38 = vpop.permute.xlu0 %455 }
 0x118   : > { %5128 = vst [vmem:[#allocation12_spill] sm:$0xff] %v3273_v37  ;;  %5129 = vst [vmem:[#allocation13_spill] sm:$0xff] %v3275_v38  ;;  %v430_v38 = vld [vmem:[#allocation5 + $0x98] sm:$0xff] }
 0x119   : > { %v509_v37 = vld [vmem:[#allocation5 + $0x138] sm:$0xff]  ;;  %v438_v17 = vmul.f32 %v430_v38, %v419_v8 }
 0x11a   : > { %v3361_v12 = vmul.f32 %v509_v37, %v3122_v6  ;;  %v341_v37 = vld [vmem:[#allocation5 + $0x30] sm:$0xff] }
 0x11b   : > { %v3277_v39 = vpop.permute.xlu1 %465  ;;  %v3279_v40 = vpop.permute.xlu0 %463 }
 0x11c   : > { %5130 = vst [vmem:[#allocation14_spill] sm:$0xff] %v3277_v39  ;;  %5131 = vst [vmem:[#allocation15_spill] sm:$0xff] %v3279_v40  ;;  %v3340_v40 = vmul.f32 %v503_v56, %v3082_v0  ;;  %v506_v39 = vld [vmem:[#allocation5 + $0x120] sm:$0xff]  ;;  %v428_v0 = vld [vmem:[#allocation5 + $0x88] sm:$0xff]  ;;  %v3358_v56 = vmul.f32 %v508_v10, %v3114_v4  ;;  %v469_v4 = vsel %vm5109_vm3, %v3257_v29, %v3261_v31 }
 0x11d   : > { %5142 = vst [vmem:[#allocation26_spill] sm:$0xff] %v3361_v12  ;;  %v3364_v38 = vmul.f32 %v506_v39, %v3116_v5  ;;  %v473_v5 = vsel %vm5109_vm3, %v3261_v31, %v3257_v29  ;;  %v330_v39 = vsel %vm326_vm1, %v3241_v21, %v3245_v23  ;;  %v384_v29 = vld [vmem:[#allocation5 + $0x78] sm:$0xff]  ;;  %v371_v31 = vsel %vm367_vm0, %v3249_v25, %v3253_v27 }
 0x11e   : > { %v392_v9 = vmul.f32 %v384_v29, %v371_v31  ;;  %v554_v31 = vld [vmem:[#allocation5 + $0x150] sm:$0xff] }
 0x11f   : > { %v3281_v41 = vpop.permute.xlu1 %528  ;;  %v3283_v42 = vpop.permute.xlu0 %526  ;;  %5143 = vst [vmem:[#allocation27_spill] sm:$0xff] %v3364_v38 }
 0x120   : > { %5132 = vst [vmem:[#allocation16_spill] sm:$0xff] %v3281_v41  ;;  %5133 = vst [vmem:[#allocation17_spill] sm:$0xff] %v3283_v42  ;;  %v507_v42 = vld [vmem:[#allocation5 + $0x128] sm:$0xff]  ;;  %v344_v41 = vmul.f32 %v336_v3, %v327_v2  ;;  %v342_v3 = vld [vmem:[#allocation5 + $0x38] sm:$0xff] }
 0x121   : > { %v381_v2 = vld [vmem:[#allocation5 + $0x60] sm:$0xff] }
 0x123   : > { %v3285_v44 = vpop.permute.xlu1 %536  ;;  %v3287_v45 = vpop.permute.xlu0 %534 }
 0x124   : > { %5134 = vst [vmem:[#allocation18_spill] sm:$0xff] %v3285_v44  ;;  %5135 = vst [vmem:[#allocation19_spill] sm:$0xff] %v3287_v45  ;;  %v343_v45 = vmul.f32 %v335_v51, %v331_v43  ;;  %v345_v44 = vmul.f32 %v337_v13, %v332_v14  ;;  %v382_v43 = vld [vmem:[#allocation5 + $0x68] sm:$0xff] }
 0x127   : > { %v3292_v49 = vpop.permute.xlu1 %578  ;;  %v3294_v50 = vpop.permute.xlu0 %576 }
 0x128   : > { %5136 = vst [vmem:[#allocation20_spill] sm:$0xff] %v3292_v49  ;;  %5137 = vst [vmem:[#allocation21_spill] sm:$0xff] %v3294_v50  ;;  %v3343_v50 = vmul.f32 %v502_v55, %v3084_v1  ;;  %v388_v49 = vmul.f32 %v380_v57, %v369_v58  ;;  %v418_v1 = vsel %vm417_vm2, %v3237_v18, %v3239_v20 }
 0x129   : > { %v3367_v57 = vmul.f32 %v507_v42, %v3124_v7  ;;  %v395_v58 = vadd.f32 %v387_v11, %v345_v44  ;;  %v435_v20 = vmul.f32 %v427_v19, %v422_v52  ;;  %v383_v42 = vld [vmem:[#allocation5 + $0x70] sm:$0xff]  ;;  %v350_v19 = vmul.f32 %v342_v3, %v330_v39  ;;  %v431_v39 = vld [vmem:[#allocation5 + $0xa0] sm:$0xff] }
 0x12a   : > { %v396_v59 = vadd.f32 %v388_v49, %v346_v54  ;;  %v375_v49 = vsel %vm367_vm0, %v3253_v27, %v3249_v25  ;;  %v472_v54 = vsel %vm5109_vm3, %v3263_v32, %v3259_v30  ;;  %v370_v25 = vsel %vm367_vm0, %v3251_v26, %v3255_v28 }
 0x12b   : > { %v3329_v16 = vpop.permute.xlu1 %586  ;;  %v3331_v48 = vpop.permute.xlu0 %584  ;;  %5144 = vst [vmem:[#allocation28_spill] sm:$0xff] %v3367_v57  ;;  %v445_v6 = vadd.f32 %v437_v53, %v395_v58  ;;  %v477_v53 = vld [vmem:[#allocation5 + $0xc0] sm:$0xff]  ;;  %v374_v27 = vsel %vm367_vm0, %v3255_v28, %v3251_v26  ;;  %v391_v8 = vmul.f32 %v383_v42, %v375_v49  ;;  %v5145_v49 = vld [vmem:[#allocation22_spill] sm:$0xff] }
 0x12c   : > { %5140 = vst [vmem:[#allocation24_spill] sm:$0xff] %v3329_v16  ;;  %5141 = vst [vmem:[#allocation25_spill] sm:$0xff] %v3331_v48  ;;  %v385_v48 = vmul.f32 %v377_v60, %v372_v63  ;;  %v386_v16 = vmul.f32 %v378_v61, %v368_v62  ;;  %v436_v61 = vmul.f32 %v428_v0, %v418_v1  ;;  %v479_v62 = vld [vmem:[#allocation5 + $0xd0] sm:$0xff]  ;;  %v480_v63 = vld [vmem:[#allocation5 + $0xd8] sm:$0xff] }
 0x12d   : > { %v446_v7 = vadd.f32 %v438_v17, %v396_v59  ;;  %v487_v13 = vmul.f32 %v479_v62, %v473_v5  ;;  %v488_v15 = vmul.f32 %v480_v63, %v469_v4  ;;  %v485_v10 = vmul.f32 %v477_v53, %v472_v54  ;;  %v433_v59 = vld [vmem:[#allocation5 + $0xb0] sm:$0xff]  ;;  %v555_v54 = vld [vmem:[#allocation5 + $0x158] sm:$0xff] }
 0x12e   : > { %v393_v60 = vadd.f32 %v385_v48, %v343_v45  ;;  %v394_v18 = vadd.f32 %v386_v16, %v344_v41  ;;  %v334_v41 = vsel %vm326_vm1, %v3245_v23, %v3241_v21  ;;  %v478_v21 = vld [vmem:[#allocation5 + $0xc8] sm:$0xff]  ;;  %v468_v23 = vsel %vm5109_vm3, %v3259_v30, %v3263_v32  ;;  %v339_v16 = vld [vmem:[#allocation5 + $0x20] sm:$0xff]  ;;  %v5147_v3 = vld [vmem:[#allocation18_spill] sm:$0xff] }
 0x12f   : > { %v3353_v55 = vpop.permute.xlu1 %532  ;;  %v3355_v51 = vpop.permute.xlu0 %530  ;;  %v329_v30 = vsel %vm326_vm1, %v3243_v22, %v3247_v24  ;;  %v333_v32 = vsel %vm326_vm1, %v3247_v24, %v3243_v22  ;;  %v340_v48 = vld [vmem:[#allocation5 + $0x28] sm:$0xff]  ;;  %v486_v26 = vmul.f32 %v478_v21, %v468_v23  ;;  %v349_v17 = vmul.f32 %v341_v37, %v334_v41  ;;  %v5146_v21 = vld [vmem:[#allocation23_spill] sm:$0xff] }
 0x130   : > { %v443_v47 = vadd.f32 %v435_v20, %v393_v60  ;;  %v444_v14 = vadd.f32 %v436_v61, %v394_v18  ;;  %v389_v0 = vmul.f32 %v381_v2, %v374_v27  ;;  %v390_v1 = vmul.f32 %v382_v43, %v370_v25  ;;  %v434_v60 = vld [vmem:[#allocation5 + $0xb8] sm:$0xff]  ;;  %v432_v41 = vld [vmem:[#allocation5 + $0xa8] sm:$0xff]  ;;  %v5148_v2 = vld [vmem:[#allocation16_spill] sm:$0xff] }
 0x131   : > { %v495_v52 = vadd.f32 %v487_v13, %v445_v6  ;;  %v496_v58 = vadd.f32 %v488_v15, %v446_v7  ;;  %v421_v22 = vsel %vm417_vm2, %v3265_v33, %v3269_v35  ;;  %v425_v24 = vsel %vm417_vm2, %v3269_v35, %v3265_v33  ;;  %v553_v25 = vld [vmem:[#allocation5 + $0x148] sm:$0xff]  ;;  %v5149_v27 = vld [vmem:[#allocation19_spill] sm:$0xff] }
 0x132   : > { %v347_v18 = vmul.f32 %v339_v16, %v333_v32  ;;  %v348_v20 = vmul.f32 %v340_v48, %v329_v30  ;;  %v399_v61 = vadd.f32 %v391_v8, %v349_v17  ;;  %v400_v62 = vadd.f32 %v392_v9, %v350_v19  ;;  %v5150_v13 = vld [vmem:[#allocation17_spill] sm:$0xff]  ;;  %v484_v17 = vld [vmem:[#allocation5 + $0xf8] sm:$0xff]  ;;  %v5151_v19 = vld [vmem:[#allocation14_spill] sm:$0xff] }
 0x133   : > { %v3386_v44 = vpop.permute.xlu1 %540  ;;  %v3388_v45 = vpop.permute.xlu0 %538  ;;  %v493_v63 = vadd.f32 %v485_v10, %v443_v47  ;;  %v494_v4 = vadd.f32 %v486_v26, %v444_v14  ;;  %v441_v7 = vmul.f32 %v433_v59, %v425_v24  ;;  %v442_v37 = vmul.f32 %v434_v60, %v421_v22  ;;  %v483_v26 = vld [vmem:[#allocation5 + $0xf0] sm:$0xff]  ;;  %v605_v22 = vld [vmem:[#allocation5 + $0x198] sm:$0xff]  ;;  %v5153_v24 = vld [vmem:[#allocation24_spill] sm:$0xff] }
 0x134   : > { %v420_v33 = vsel %vm417_vm2, %v3267_v34, %v3271_v36  ;;  %v424_v35 = vsel %vm417_vm2, %v3271_v36, %v3267_v34  ;;  %v3444_v42 = vadd.f32 %v389_v0, %v347_v18  ;;  %v3446_v29 = vadd.f32 %v390_v1, %v348_v20  ;;  %v552_v36 = vld [vmem:[#allocation5 + $0x140] sm:$0xff]  ;;  %v604_v60 = vld [vmem:[#allocation5 + $0x190] sm:$0xff] }
 0x135   : > { %v520_v53 = vadd.f32 %v5145_v49, %v495_v52  ;;  %v521_v23 = vadd.f32 %v5146_v21, %v496_v58  ;;  %v544_v43 = vsel %vm542_vm4, %v5148_v2, %v5147_v3  ;;  %v548_v34 = vsel %vm542_vm4, %v5147_v3, %v5148_v2  ;;  %v5152_v0 = vld [vmem:[#allocation12_spill] sm:$0xff] }
 0x136   : > { %v543_v15 = vsel %vm542_vm4, %v5150_v13, %v5149_v27  ;;  %v547_v47 = vsel %vm542_vm4, %v5149_v27, %v5150_v13  ;;  %v439_v14 = vmul.f32 %v431_v39, %v424_v35  ;;  %v440_v30 = vmul.f32 %v432_v41, %v420_v33  ;;  %v5154_v18 = vld [vmem:[#allocation20_spill] sm:$0xff]  ;;  %v5157_v35 = vld [vmem:[#allocation15_spill] sm:$0xff]  ;;  %v653_v27 = vld [vmem:[#allocation5 + $0x1c8] sm:$0xff] }
 0x137   : > { %v3422_v28 = vpop.permute.xlu1 %628  ;;  %v3424_v11 = vpop.permute.xlu0 %626  ;;  %v519_v32 = vadd.f32 %v3340_v40, %v494_v4  ;;  %v518_v16 = vadd.f32 %v3343_v50, %v493_v63  ;;  %v449_v9 = vadd.f32 %v441_v7, %v399_v61  ;;  %v450_v10 = vadd.f32 %v442_v37, %v400_v62  ;;  %v602_v62 = vld [vmem:[#allocation5 + $0x180] sm:$0xff]  ;;  %v603_v63 = vld [vmem:[#allocation5 + $0x188] sm:$0xff] }
 0x138   : > { %v471_v1 = vsel %vm5109_vm3, %v5152_v0, %v5151_v19  ;;  %v475_v40 = vsel %vm5109_vm3, %v5151_v19, %v5152_v0  ;;  %v562_v52 = vmul.f32 %v554_v31, %v544_v43  ;;  %v563_v50 = vmul.f32 %v555_v54, %v548_v34  ;;  %v5155_v4 = vld [vmem:[#allocation25_spill] sm:$0xff]  ;;  %v654_v54 = vld [vmem:[#allocation5 + $0x1d0] sm:$0xff]  ;;  %v655_v43 = vld [vmem:[#allocation5 + $0x1d8] sm:$0xff] }
 0x139   : > { %v560_v58 = vmul.f32 %v552_v36, %v543_v15  ;;  %v561_v59 = vmul.f32 %v553_v25, %v547_v47  ;;  %v594_v20 = vsel %vm5113_vm5, %v5154_v18, %v5153_v24  ;;  %v598_v61 = vsel %vm5113_vm5, %v5153_v24, %v5154_v18  ;;  %v5156_v7 = vld [vmem:[#allocation21_spill] sm:$0xff]  ;;  %v652_v25 = vld [vmem:[#allocation5 + $0x1c0] sm:$0xff] }
 0x13a   : > { %v593_v37 = vsel %vm5113_vm5, %v5156_v7, %v5155_v4  ;;  %v597_v39 = vsel %vm5113_vm5, %v5155_v4, %v5156_v7  ;;  %v491_v41 = vmul.f32 %v483_v26, %v475_v40  ;;  %v492_v33 = vmul.f32 %v484_v17, %v471_v1  ;;  %v5158_v31 = vld [vmem:[#allocation13_spill] sm:$0xff]  ;;  %v481_v47 = vld [vmem:[#allocation5 + $0xe0] sm:$0xff] }
 0x13b   : > { %v637_v5 = vpop.permute.xlu1 %636  ;;  %v635_v6 = vpop.permute.xlu0 %634  ;;  %v470_v49 = vsel %vm5109_vm3, %v5158_v31, %v5157_v35  ;;  %v474_v21 = vsel %vm5109_vm3, %v5157_v35, %v5158_v31  ;;  %v482_v26 = vld [vmem:[#allocation5 + $0xe8] sm:$0xff]  ;;  %v612_v17 = vmul.f32 %v604_v60, %v594_v20  ;;  %v613_v19 = vmul.f32 %v605_v22, %v598_v61  ;;  %v704_v20 = vld [vmem:[#allocation5 + $0x210] sm:$0xff] }
 0x13c   : > { %v644_v34 = vsel %vm642_vm6, %v3422_v28, %v637_v5  ;;  %v648_v36 = vsel %vm642_vm6, %v637_v5, %v3422_v28  ;;  %v643_v13 = vsel %vm642_vm6, %v3424_v11, %v635_v6  ;;  %v647_v15 = vsel %vm642_vm6, %v635_v6, %v3424_v11 }
 0x13d   : > { %v610_v0 = vmul.f32 %v602_v62, %v593_v37  ;;  %v611_v1 = vmul.f32 %v603_v63, %v597_v39  ;;  %v570_v40 = vadd.f32 %v562_v52, %v520_v53  ;;  %v571_v24 = vadd.f32 %v563_v50, %v521_v23  ;;  %v559_v39 = vld [vmem:[#allocation5 + $0x178] sm:$0xff] }
 0x13e   : > { %v568_v18 = vadd.f32 %v560_v58, %v518_v16  ;;  %v569_v28 = vadd.f32 %v561_v59, %v519_v32  ;;  %v662_v5 = vmul.f32 %v654_v54, %v644_v34  ;;  %v663_v4 = vmul.f32 %v655_v43, %v648_v36  ;;  %v556_v34 = vld [vmem:[#allocation5 + $0x160] sm:$0xff]  ;;  %v557_v36 = vld [vmem:[#allocation5 + $0x168] sm:$0xff] }
 0x13f   : > { %v3468_v48 = vpop.permute.xlu1 %582  ;;  %v3470_v8 = vpop.permute.xlu0 %580  ;;  %v660_v7 = vmul.f32 %v652_v25, %v643_v13  ;;  %v661_v35 = vmul.f32 %v653_v27, %v647_v15  ;;  %v447_v38 = vadd.f32 %v439_v14, %v3444_v42  ;;  %v448_v11 = vadd.f32 %v440_v30, %v3446_v29  ;;  %v702_v29 = vld [vmem:[#allocation5 + $0x200] sm:$0xff]  ;;  %v703_v14 = vld [vmem:[#allocation5 + $0x208] sm:$0xff]  ;;  %v705_v30 = vld [vmem:[#allocation5 + $0x218] sm:$0xff] }
 0x140   : > { %v489_v6 = vmul.f32 %v481_v47, %v474_v21  ;;  %v490_v12 = vmul.f32 %v482_v26, %v470_v49  ;;  %v620_v60 = vadd.f32 %v612_v17, %v570_v40  ;;  %v618_v22 = vadd.f32 %v610_v0, %v568_v18  ;;  %v609_v18 = vld [vmem:[#allocation5 + $0x1b8] sm:$0xff] }
 0x141   : > { %v619_v61 = vadd.f32 %v611_v1, %v569_v28  ;;  %v621_v53 = vadd.f32 %v613_v19, %v571_v24  ;;  %v499_v23 = vadd.f32 %v491_v41, %v449_v9  ;;  %v500_v16 = vadd.f32 %v492_v33, %v450_v10  ;;  %v608_v1 = vld [vmem:[#allocation5 + $0x1b0] sm:$0xff] }
 0x142   : > { %v546_v32 = vsel %vm542_vm4, %v3353_v55, %v3386_v44  ;;  %v550_v42 = vsel %vm542_vm4, %v3386_v44, %v3353_v55  ;;  %v668_v62 = vadd.f32 %v660_v7, %v618_v22  ;;  %v670_v9 = vadd.f32 %v662_v5, %v620_v60  ;;  %v558_v44 = vld [vmem:[#allocation5 + $0x170] sm:$0xff]  ;;  %v607_v5 = vld [vmem:[#allocation5 + $0x1a8] sm:$0xff]  ;;  %v5161_v22 = vld [vmem:[#allocation28_spill] sm:$0xff] }
 0x143   : > { %v3505_v3 = vpop.permute.xlu1 %590  ;;  %v3507_v2 = vpop.permute.xlu0 %588  ;;  %v669_v58 = vadd.f32 %v661_v35, %v619_v61  ;;  %v671_v59 = vadd.f32 %v663_v4, %v621_v53  ;;  %v497_v54 = vadd.f32 %v489_v6, %v447_v38  ;;  %v498_v43 = vadd.f32 %v490_v12, %v448_v11  ;;  %v5160_v6 = vld [vmem:[#allocation27_spill] sm:$0xff] }
 0x144   : > { %v545_v25 = vsel %vm542_vm4, %v3355_v51, %v3388_v45  ;;  %v566_v38 = vmul.f32 %v558_v44, %v546_v32  ;;  %v567_v12 = vmul.f32 %v559_v39, %v550_v42  ;;  %v596_v28 = vsel %vm5113_vm5, %v3468_v48, %v3505_v3  ;;  %v659_v53 = vld [vmem:[#allocation5 + $0x1f8] sm:$0xff] }
 0x145   : > { %v564_v19 = vmul.f32 %v556_v34, %v545_v25  ;;  %v595_v4 = vsel %vm5113_vm5, %v3470_v8, %v3507_v2  ;;  %v599_v7 = vsel %vm5113_vm5, %v3507_v2, %v3470_v8  ;;  %v524_v35 = vadd.f32 %v3358_v56, %v499_v23  ;;  %v656_v8 = vld [vmem:[#allocation5 + $0x1e0] sm:$0xff]  ;;  %v657_v2 = vld [vmem:[#allocation5 + $0x1e8] sm:$0xff] }
 0x146   : > { %v522_v60 = vadd.f32 %v5160_v6, %v497_v54  ;;  %v706_v54 = vld [vmem:[#allocation5 + $0x220] sm:$0xff] }
 0x147   : > { %v679_v31 = vpop.permute.xlu1 %678  ;;  %v677_v57 = vpop.permute.xlu0 %676 }
 0x14b   : > { %v687_v52 = vpop.permute.xlu1 %686  ;;  %v685_v50 = vpop.permute.xlu0 %684 }
 0x14c   : > { %v694_v10 = vsel %vm692_vm7, %v679_v31, %v687_v52  ;;  %v698_v63 = vsel %vm692_vm7, %v687_v52, %v679_v31  ;;  %v693_v37 = vsel %vm692_vm7, %v677_v57, %v685_v50  ;;  %v697_v55 = vsel %vm692_vm7, %v685_v50, %v677_v57  ;;  %v5159_v31 = vld [vmem:[#allocation26_spill] sm:$0xff] }
 0x14d   : > { %v712_v41 = vmul.f32 %v704_v20, %v694_v10  ;;  %v710_v33 = vmul.f32 %v702_v29, %v693_v37  ;;  %v711_v49 = vmul.f32 %v703_v14, %v697_v55  ;;  %v713_v21 = vmul.f32 %v705_v30, %v698_v63 }
 0x14e   : > { %v549_v57 = vsel %vm542_vm4, %v3388_v45, %v3355_v51  ;;  %v600_v51 = vsel %vm5113_vm5, %v3505_v3, %v3468_v48  ;;  %v606_v45 = vld [vmem:[#allocation5 + $0x1a0] sm:$0xff]  ;;  %v525_v11 = vadd.f32 %v5159_v31, %v500_v16  ;;  %v523_v48 = vadd.f32 %v5161_v22, %v498_v43  ;;  %v658_v3 = vld [vmem:[#allocation5 + $0x1f0] sm:$0xff]  ;;  %v707_v43 = vld [vmem:[#allocation5 + $0x228] sm:$0xff] }
 0x14f   : > { %v633_v27 = vpop.permute.xlu1 %632  ;;  %v631_v13 = vpop.permute.xlu0 %630  ;;  %v719_v15 = vadd.f32 %v711_v49, %v669_v58  ;;  %v721_v47 = vadd.f32 %v713_v21, %v671_v59  ;;  %v718_v26 = vadd.f32 %v710_v33, %v668_v62  ;;  %v720_v17 = vadd.f32 %v712_v41, %v670_v9  ;;  %v708_v49 = vld [vmem:[#allocation5 + $0x230] sm:$0xff]  ;;  %v709_v21 = vld [vmem:[#allocation5 + $0x238] sm:$0xff]  ;;  %v2634_v31 = vld [vmem:[%s5045_s3 + $0x20] sm:$0xff]  }
 0x150   : > { %v565_v0 = vmul.f32 %v557_v36, %v549_v57  ;;  %v616_v16 = vmul.f32 %v608_v1, %v596_v28  ;;  %v617_v29 = vmul.f32 %v609_v18, %v600_v51  ;;  %v614_v14 = vmul.f32 %v606_v45, %v595_v4  ;;  %v2630_v45 = vld [vmem:[%s5045_s3] sm:$0xff]   ;;  %v2631_v4 = vld [vmem:[%s5045_s3 + $0x8] sm:$0xff]  }
 0x151   : > { %v739_v40 = vpack.c.bf16 %v721_v47, %v719_v15  ;;  %v738_v24 = vpack.c.bf16 %v720_v17, %v718_v26  ;;  %v615_v30 = vmul.f32 %v607_v5, %v599_v7  ;;  %v574_v52 = vadd.f32 %v566_v38, %v524_v35  ;;  %v2632_v7 = vld [vmem:[%s5045_s3 + $0x10] sm:$0xff]   ;;  %v2633_v35 = vld [vmem:[%s5045_s3 + $0x18] sm:$0xff]  }
 0x152   : > { %v575_v50 = vadd.f32 %v567_v12, %v525_v11  ;;  %v572_v58 = vadd.f32 %v564_v19, %v522_v60  ;;  %v573_v59 = vadd.f32 %v565_v0, %v523_v48  ;;  %v5162_v5 = vmov 0   ;;  %v2635_v11 = vld [vmem:[%s5045_s3 + $0x28] sm:$0xff]  }
 0x153   : > { %v641_v20 = vpop.permute.xlu1 %640  ;;  %791 = vmatprep.subr.bf16.mxu0 %v739_v40  ;;  %v639_v61 = vpop.permute.xlu0 %638  ;;  %v624_v44 = vadd.f32 %v616_v16, %v574_v52 }
 0x154   : > { %v646_v32 = vsel %vm642_vm6, %v633_v27, %v641_v20  ;;  %v650_v42 = vsel %vm642_vm6, %v641_v20, %v633_v27  ;;  %v645_v56 = vsel %vm642_vm6, %v631_v13, %v639_v61  ;;  %v649_v23 = vsel %vm642_vm6, %v639_v61, %v631_v13  ;;  %792 = vmatpush1.bf16.msra.mxu0 %v738_v24 }
 0x155   : > { %v666_v62 = vmul.f32 %v658_v3, %v646_v32  ;;  %v667_v9 = vmul.f32 %v659_v53, %v650_v42  ;;  %v664_v10 = vmul.f32 %v656_v8, %v645_v56  ;;  %v665_v63 = vmul.f32 %v657_v2, %v649_v23 }
 0x156   : > { %v625_v39 = vadd.f32 %v617_v29, %v575_v50  ;;  %v622_v41 = vadd.f32 %v614_v14, %v572_v58  ;;  %v623_v33 = vadd.f32 %v615_v30, %v573_v59 }
 0x157   : > { %v683_v37 = vpop.permute.xlu1 %682  ;;  %v681_v55 = vpop.permute.xlu0 %680  ;;  %v674_v34 = vadd.f32 %v666_v62, %v624_v44 }
 0x158   : > { %v675_v36 = vadd.f32 %v667_v9, %v625_v39  ;;  %v672_v25 = vadd.f32 %v664_v10, %v622_v41  ;;  %v673_v57 = vadd.f32 %v665_v63, %v623_v33 }
 0x15b   : > { %v691_v27 = vpop.permute.xlu1 %690  ;;  %v689_v13 = vpop.permute.xlu0 %688 }
 0x15c   : > { %v696_v15 = vsel %vm692_vm7, %v683_v37, %v691_v27  ;;  %v700_v47 = vsel %vm692_vm7, %v691_v27, %v683_v37  ;;  %v695_v26 = vsel %vm692_vm7, %v681_v55, %v689_v13  ;;  %v699_v17 = vsel %vm692_vm7, %v689_v13, %v681_v55 }
 0x15d   : > { %v716_v38 = vmul.f32 %v708_v49, %v696_v15  ;;  %v717_v12 = vmul.f32 %v709_v21, %v700_v47  ;;  %v714_v19 = vmul.f32 %v706_v54, %v695_v26  ;;  %v715_v0 = vmul.f32 %v707_v43, %v699_v17 }
 0x15f   : > { %v723_v1 = vadd.f32 %v715_v0, %v673_v57  ;;  %v725_v40 = vadd.f32 %v717_v12, %v675_v36  ;;  %v722_v24 = vadd.f32 %v714_v19, %v672_v25  ;;  %v724_v18 = vadd.f32 %v716_v38, %v674_v34 }
 0x161   : > { %v741_v28 = vpack.c.bf16 %v725_v40, %v723_v1  ;;  %v740_v51 = vpack.c.bf16 %v724_v18, %v722_v24 }
 0x163   : > { %793 = vmatprep.subr.bf16.mxu0 %v741_v28 }
 0x164   : > { %794 = vmatpush1.bf16.msra.mxu0 %v740_v51 }
 0x167   : > { %2516 = vmatmul.mubr.msk.bf16.vlgmr.msra.gmra.mrb[0].mxu0 %vm5107_vm8, %v2630_v45 }
 0x168   : > { %833 = vmatprep.mubr.bf16.mxu0 %v5162_v5 }
 0x16f   : > { %2517 = vmatmul.mubr.msk.bf16.gmra.mrb[4].mxu0 %vm5107_vm8, %v2631_v4 }
 0x170   : > { %843 = vmatprep.mubr.bf16.mxu0 %v5162_v5 }
 0x177   : > { %2518 = vmatmul.mubr.msk.bf16.gmra.mrb[8].mxu0 %vm5107_vm8, %v2632_v7 }
 0x178   : > { %853 = vmatprep.mubr.bf16.mxu0 %v5162_v5 }
 0x17f   : > { %2519 = vmatmul.mubr.msk.bf16.gmra.mrb[12].mxu0 %vm5107_vm8, %v2633_v35 }
 0x180   : > { %863 = vmatprep.mubr.bf16.mxu0 %v5162_v5 }
 0x187   : > { %2520 = vmatmul.mubr.msk.bf16.gmra.mrb[16].mxu0 %vm5107_vm8, %v2634_v31 }
 0x188   : > { %873 = vmatprep.mubr.bf16.mxu0 %v5162_v5 }
 0x18f   : > { %2521 = vmatmul.mubr.msk.bf16.gmra.mrb[20].mxu0 %vm5107_vm8, %v2635_v11  ;;  %vm5112_vm8 = vcmp.lt.s32.totalorder %v3289_v46, 2 }
 0x23a   : > { %v3612_v6 = vpop.f32.mrb[0].mxu0 }
 0x23b   : > { %5163 = vst [vmem:[#allocation22_spill] sm:$0xff] %v3612_v6  ;;  %v3614_v60 = vpop.f32.mrb[1].mxu0 }
 0x23c   : > { %5164 = vst [vmem:[#allocation23_spill] sm:$0xff] %v3614_v60  ;;  %v3616_v22 = vpop.f32.mrb[2].mxu0 }
 0x23d   : > { %5165 = vst [vmem:[#allocation18_spill] sm:$0xff] %v3616_v22  ;;  %v1011_v48 = vpack.c.bf16 %v3616_v22, %v3612_v6  ;;  %v3620_v3 = vpop.f32.mrb[3].mxu0 }
 0x23e   : > { %5166 = vst [vmem:[#allocation16_spill] sm:$0xff] %v3620_v3  ;;  %v1012_v20 = vpack.c.bf16 %v3620_v3, %v3614_v60 }
 0x242   : > { %v3624_v61 = vpop.f32.mrb[4].mxu0 }
 0x243   : > { %5167 = vst [vmem:[#allocation19_spill] sm:$0xff] %v3624_v61  ;;  %v3626_v53 = vpop.f32.mrb[5].mxu0 }
 0x244   : > { %5168 = vst [vmem:[#allocation17_spill] sm:$0xff] %v3626_v53  ;;  %v3628_v32 = vpop.f32.mrb[6].mxu0 }
 0x245   : > { %5169 = vst [vmem:[#allocation14_spill] sm:$0xff] %v3628_v32  ;;  %v1013_v42 = vpack.c.bf16 %v3628_v32, %v3624_v61  ;;  %v3632_v8 = vpop.f32.mrb[7].mxu0 }
 0x246   : > { %5170 = vst [vmem:[#allocation12_spill] sm:$0xff] %v3632_v8  ;;  %v1014_v2 = vpack.c.bf16 %v3632_v8, %v3626_v53 }
 0x24a   : > { %v845_v56 = vpop.f32.mrb[8].mxu0 }
 0x24b   : > { %v847_v23 = vpop.f32.mrb[9].mxu0 }
 0x24c   : > { %v849_v16 = vpop.f32.mrb[10].mxu0  ;;  %v884_v29 = vmax.f32 %v845_v56, %v847_v23 }
 0x24d   : > { %v851_v14 = vpop.f32.mrb[11].mxu0 }
 0x24e   : > { %885 = vmax.xlane.f32.xlu0 %v884_v29  ;;  %v887_v30 = vmax.f32 %v849_v16, %v851_v14 }
 0x250   : > { %888 = vmax.xlane.f32.xlu1 %v887_v30 }
 0x252   : > { %v855_v52 = vpop.f32.mrb[12].mxu0 }
 0x253   : > { %v857_v50 = vpop.f32.mrb[13].mxu0 }
 0x254   : > { %v859_v58 = vpop.f32.mrb[14].mxu0  ;;  %v890_v59 = vmax.f32 %v855_v52, %v857_v50 }
 0x255   : > { %v861_v62 = vpop.f32.mrb[15].mxu0 }
 0x256   : > { %891 = vmax.xlane.f32.xlu0 %v890_v59  ;;  %v893_v9 = vmax.f32 %v859_v58, %v861_v62 }
 0x25a   : > { %894 = vmax.xlane.f32.xlu0 %v893_v9  ;;  %v3636_v10 = vpop.f32.mrb[16].mxu0 }
 0x25b   : > { %5171 = vst [vmem:[#allocation24_spill] sm:$0xff] %v3636_v10  ;;  %v3638_v63 = vpop.f32.mrb[17].mxu0 }
 0x25c   : > { %5172 = vst [vmem:[#allocation20_spill] sm:$0xff] %v3638_v63  ;;  %v3640_v37 = vpop.f32.mrb[18].mxu0 }
 0x25d   : > { %v3642_v55 = vpop.f32.mrb[19].mxu0  ;;  %v948_v44 = vpack.c.bf16 %v3640_v37, %v3636_v10 }
 0x25e   : > { %v949_v39 = vpack.c.bf16 %v3642_v55, %v3638_v63 }
 0x260   : > { %952 = vmatprep.subr.bf16.mxu1 %v949_v39 }
 0x261   : > { %953 = vmatpush1.bf16.xpose.msra.mxu1 %v948_v44 }
 0x262   : > { %v3648_v41 = vpop.f32.mrb[20].mxu0 }
 0x263   : > { %5173 = vst [vmem:[#allocation25_spill] sm:$0xff] %v3648_v41  ;;  %v3650_v33 = vpop.f32.mrb[21].mxu0 }
 0x264   : > { %5174 = vst [vmem:[#allocation21_spill] sm:$0xff] %v3650_v33  ;;  %v3652_v49 = vpop.f32.mrb[22].mxu0 }
 0x265   : > { %v3654_v21 = vpop.f32.mrb[23].mxu0  ;;  %v950_v54 = vpack.c.bf16 %v3652_v49, %v3648_v41 }
 0x266   : > { %v951_v43 = vpack.c.bf16 %v3654_v21, %v3650_v33 }
 0x268   : > { %954 = vmatprep.subr.bf16.mxu1 %v951_v43 }
 0x269   : > { %955 = vmatpush1.bf16.xpose.msra.mxu1 %v950_v54 }
 0x26a   : > { %2253 = vmatprep.subr.bf16.mxu1 %v1012_v20 }
 0x2db   : > { %v886_v34 = vpop.xlane.xlu0 %885 }
 0x2dc   : > { %v896_v36 = vsub.f32 %v845_v56, %v886_v34  ;;  %v897_v25 = vsub.f32 %v847_v23, %v886_v34 }
 0x2dd   : > { %v889_v57 = vpop.xlane.xlu1 %888 }
 0x2de   : > { %v904_v27 = vmul.f32 1.442695, %v896_v36  ;;  %v906_v13 = vmul.f32 1.442695, %v897_v25  ;;  %v898_v15 = vsub.f32 %v849_v16, %v889_v57  ;;  %v899_v47 = vsub.f32 %v851_v14, %v889_v57 }
 0x2e0   : > { %2638 = vpow2.f32 %v904_v27  ;;  %v908_v26 = vmul.f32 1.442695, %v898_v15  ;;  %v910_v17 = vmul.f32 1.442695, %v899_v47 }
 0x2e1   : > { %2640 = vpow2.f32 %v906_v13 }
 0x2e2   : > { %2642 = vpow2.f32 %v908_v26 }
 0x2e3   : > { %2644 = vpow2.f32 %v910_v17  ;;  %v892_v38 = vpop.xlane.xlu0 %891 }
 0x2e4   : > { %v900_v12 = vsub.f32 %v855_v52, %v892_v38  ;;  %v901_v19 = vsub.f32 %v857_v50, %v892_v38 }
 0x2e6   : > { %v912_v0 = vmul.f32 1.442695, %v900_v12  ;;  %v914_v1 = vmul.f32 1.442695, %v901_v19 }
 0x2e7   : > { %v895_v40 = vpop.xlane.xlu0 %894 }
 0x2e8   : > { %2646 = vpow2.f32 %v912_v0  ;;  %v902_v24 = vsub.f32 %v859_v58, %v895_v40  ;;  %v903_v18 = vsub.f32 %v861_v62, %v895_v40 }
 0x2e9   : > { %2648 = vpow2.f32 %v914_v1 }
 0x2ea   : > { %v3660_v28 = vpop.eup %2638  ;;  %v916_v51 = vmul.f32 1.442695, %v902_v24  ;;  %v918_v45 = vmul.f32 1.442695, %v903_v18 }
 0x2eb   : > { %v3662_v4 = vpop.eup %2640 }
 0x2ec   : > { %v3664_v7 = vpop.eup %2642  ;;  %2650 = vpow2.f32 %v916_v51  ;;  %v920_v35 = vadd.f32 %v3662_v4, %v3660_v28 }
 0x2ed   : > { %v3668_v31 = vpop.eup %2644  ;;  %2652 = vpow2.f32 %v918_v45 }
 0x2ee   : > { %921 = vadd.xlane.f32.xlu1 %v920_v35  ;;  %v923_v11 = vadd.f32 %v3668_v31, %v3664_v7 }
 0x2f0   : > { %924 = vadd.xlane.f32.xlu0 %v923_v11 }
 0x2f2   : > { %v3672_v20 = vpop.eup %2646 }
 0x2f3   : > { %v3674_v56 = vpop.eup %2648 }
 0x2f4   : > { %v926_v23 = vadd.f32 %v3674_v56, %v3672_v20 }
 0x2f6   : > { %v3678_v16 = vpop.eup %2650  ;;  %927 = vadd.xlane.f32.xlu1 %v926_v23 }
 0x2f7   : > { %v3680_v29 = vpop.eup %2652 }
 0x2f8   : > { %v929_v14 = vadd.f32 %v3680_v29, %v3678_v16 }
 0x2fa   : > { %930 = vadd.xlane.f32.xlu0 %v929_v14 }
 0x307   : > { %1056 = vrot.lane.b32.xlu1 %v3636_v10, %s2834_s13 }
 0x30b   : > { %1060 = vrot.lane.b32.xlu1 %v3648_v41, %s2834_s13 }
 0x30f   : > { %1064 = vrot.lane.b32.xlu1 %v3638_v63, %s2834_s13 }
 0x310   : > { %1015 = vrot.lane.b32.xlu0 %v3636_v10, %s2835_s10 }
 0x313   : > { %1068 = vrot.lane.b32.xlu1 %v3650_v33, %s2834_s13 }
 0x314   : > { %1017 = vrot.lane.b32.xlu0 %v3640_v37, %s2835_s10 }
 0x317   : > { %1106 = vrot.lane.b32.xlu1 %v3636_v10, %s2836_s15 }
 0x318   : > { %1019 = vrot.lane.b32.xlu0 %v3648_v41, %s2835_s10 }
 0x31b   : > { %1110 = vrot.lane.b32.xlu1 %v3648_v41, %s2836_s15 }
 0x31c   : > { %1021 = vrot.lane.b32.xlu0 %v3652_v49, %s2835_s10 }
 0x31f   : > { %1116 = vrot.lane.b32.xlu1 %v3642_v55, %s2836_s15 }
 0x320   : > { %1023 = vrot.lane.b32.xlu0 %v3638_v63, %s2835_s10 }
 0x323   : > { %1158 = vrot.lane.b32.xlu1 %v3640_v37, %s2837_s7 }
 0x324   : > { %1025 = vrot.lane.b32.xlu0 %v3642_v55, %s2835_s10 }
 0x327   : > { %1166 = vrot.lane.b32.xlu1 %v3642_v55, %s2837_s7 }
 0x328   : > { %1027 = vrot.lane.b32.xlu0 %v3650_v33, %s2835_s10 }
 0x32b   : > { %1118 = vrot.lane.b32.xlu1 %v3650_v33, %s2836_s15 }
 0x32c   : > { %1029 = vrot.lane.b32.xlu0 %v3654_v21, %s2835_s10  ;;  %s2841_s10 = smov 2  }
 0x32f   : > { %1206 = vrot.lane.b32.xlu1 %v3636_v10, %s2838_s14 }
 0x330   : > { %1058 = vrot.lane.b32.xlu0 %v3640_v37, %s2834_s13 }
 0x333   : > { %1214 = vrot.lane.b32.xlu1 %v3638_v63, %s2838_s14 }
 0x334   : > { %1062 = vrot.lane.b32.xlu0 %v3652_v49, %s2834_s13 }
 0x337   : > { %1160 = vrot.lane.b32.xlu1 %v3648_v41, %s2837_s7 }
 0x338   : > { %1066 = vrot.lane.b32.xlu0 %v3642_v55, %s2834_s13 }
 0x33b   : > { %1168 = vrot.lane.b32.xlu1 %v3650_v33, %s2837_s7 }
 0x33c   : > { %1070 = vrot.lane.b32.xlu0 %v3654_v21, %s2834_s13  ;;  %s2840_s13 = smov 14  }
 0x33f   : > { %1256 = vrot.lane.b32.xlu1 %v3636_v10, %s2839_s18 }
 0x340   : > { %1108 = vrot.lane.b32.xlu0 %v3640_v37, %s2836_s15 }
 0x343   : > { %1264 = vrot.lane.b32.xlu1 %v3638_v63, %s2839_s18 }
 0x344   : > { %1114 = vrot.lane.b32.xlu0 %v3638_v63, %s2836_s15 }
 0x347   : > { %1210 = vrot.lane.b32.xlu1 %v3648_v41, %s2838_s14 }
 0x348   : > { %1156 = vrot.lane.b32.xlu0 %v3636_v10, %s2837_s7 }
 0x34b   : > { %1218 = vrot.lane.b32.xlu1 %v3650_v33, %s2838_s14 }
 0x34c   : > { %1164 = vrot.lane.b32.xlu0 %v3638_v63, %s2837_s7 }
 0x34f   : > { %1306 = vrot.lane.b32.xlu1 %v3636_v10, %s2825_s29 }
 0x350   : > { %1112 = vrot.lane.b32.xlu0 %v3652_v49, %s2836_s15 }
 0x353   : > { %1314 = vrot.lane.b32.xlu1 %v3638_v63, %s2825_s29 }
 0x354   : > { %1120 = vrot.lane.b32.xlu0 %v3654_v21, %s2836_s15  ;;  %s2844_s15 = smov 110  }
 0x357   : > { %1260 = vrot.lane.b32.xlu1 %v3648_v41, %s2839_s18 }
 0x358   : > { %1208 = vrot.lane.b32.xlu0 %v3640_v37, %s2838_s14 }
 0x35b   : > { %1268 = vrot.lane.b32.xlu1 %v3650_v33, %s2839_s18 }
 0x35c   : > { %1216 = vrot.lane.b32.xlu0 %v3642_v55, %s2838_s14 }
 0x35f   : > { %1355 = vrot.lane.b32.xlu1 %v3636_v10, %s5108_s27 }
 0x360   : > { %1162 = vrot.lane.b32.xlu0 %v3652_v49, %s2837_s7 }
 0x363   : > { %1363 = vrot.lane.b32.xlu1 %v3638_v63, %s5108_s27 }
 0x364   : > { %1170 = vrot.lane.b32.xlu0 %v3654_v21, %s2837_s7  ;;  %s5110_s7 = smov 98  }
 0x367   : > { %1310 = vrot.lane.b32.xlu1 %v3648_v41, %s2825_s29 }
 0x368   : > { %1258 = vrot.lane.b32.xlu0 %v3640_v37, %s2839_s18 }
 0x36b   : > { %1318 = vrot.lane.b32.xlu1 %v3650_v33, %s2825_s29 }
 0x36c   : > { %1266 = vrot.lane.b32.xlu0 %v3642_v55, %s2839_s18 }
 0x36f   : > { %1404 = vrot.lane.b32.xlu1 %v3636_v10, %s2827_s19 }
 0x370   : > { %1212 = vrot.lane.b32.xlu0 %v3652_v49, %s2838_s14 }
 0x373   : > { %1412 = vrot.lane.b32.xlu1 %v3638_v63, %s2827_s19 }
 0x374   : > { %1220 = vrot.lane.b32.xlu0 %v3654_v21, %s2838_s14  ;;  %s2846_s14 = smov 97  }
 0x377   : > { %1359 = vrot.lane.b32.xlu1 %v3648_v41, %s5108_s27 }
 0x378   : > { %1308 = vrot.lane.b32.xlu0 %v3640_v37, %s2825_s29 }
 0x37b   : > { %v922_v30 = vpop.xlane.xlu1 %921  ;;  %1367 = vrot.lane.b32.xlu1 %v3650_v33, %s5108_s27 }
 0x37c   : > { %2654 = vrcp.f32 %v922_v30  ;;  %1316 = vrot.lane.b32.xlu0 %v3642_v55, %s2825_s29 }
 0x37d   : > { %v925_v52 = vpop.xlane.xlu0 %924 }
 0x37e   : > { %2656 = vrcp.f32 %v925_v52 }
 0x37f   : > { %1453 = vrot.lane.b32.xlu1 %v3636_v10, %s2840_s13 }
 0x380   : > { %1262 = vrot.lane.b32.xlu0 %v3652_v49, %s2839_s18 }
 0x383   : > { %v928_v50 = vpop.xlane.xlu1 %927  ;;  %1461 = vrot.lane.b32.xlu1 %v3638_v63, %s2840_s13 }
 0x384   : > { %1270 = vrot.lane.b32.xlu0 %v3654_v21, %s2839_s18  ;;  %2658 = vrcp.f32 %v928_v50 }
 0x386   : > { %v2655_v58 = vpop.eup %2654 }
 0x387   : > { %v931_v59 = vpop.xlane.xlu0 %930  ;;  %1408 = vrot.lane.b32.xlu1 %v3648_v41, %s2827_s19  ;;  %v937_v9 = vmul.f32 %v2655_v58, %v3662_v4  ;;  %v936_v39 = vmul.f32 %v2655_v58, %v3660_v28  ;;  %v3916_v11 = vpop.permute.xlu1 %1056 }
 0x388   : > { %v2657_v62 = vpop.eup %2656  ;;  %2660 = vrcp.f32 %v931_v59  ;;  %1357 = vrot.lane.b32.xlu0 %v3640_v37, %s5108_s27  ;;  %5182 = vst [vmem:[#allocation31_spill] sm:$0xff] %v3916_v11 }
 0x389   : > { %v939_v44 = vmul.f32 %v2657_v62, %v3668_v31  ;;  %v938_v54 = vmul.f32 %v2657_v62, %v3664_v7 }
 0x38b   : > { %v3808_v43 = vpop.permute.xlu0 %1015  ;;  %1416 = vrot.lane.b32.xlu1 %v3650_v33, %s2827_s19  ;;  %v945_v34 = vpack.c.bf16 %v939_v44, %v937_v9  ;;  %v944_v36 = vpack.c.bf16 %v938_v54, %v936_v39 }
 0x38c   : > { %5175 = vst [vmem:[#allocation15_spill] sm:$0xff] %v3808_v43  ;;  %1365 = vrot.lane.b32.xlu0 %v3642_v55, %s5108_s27 }
 0x38d   : > { %984 = vmatprep.mubr.bf16.mxu1 %v945_v34 }
 0x38e   : > { %985 = vmatmul.mubr.bf16.vlgmr.msra.gmra.mrb[0].mxu1 %v944_v36  ;;  %v2659_v25 = vpop.eup %2658 }
 0x38f   : > { %2254 = vmatpush1.bf16.msra.mxu1 %v1011_v48  ;;  %v3817_v57 = vpop.permute.xlu0 %1017  ;;  %1503 = vrot.lane.b32.xlu1 %v3636_v10, %s2841_s10  ;;  %v941_v13 = vmul.f32 %v2659_v25, %v3674_v56  ;;  %v940_v47 = vmul.f32 %v2659_v25, %v3672_v20  ;;  %v3924_v56 = vpop.permute.xlu1 %1060 }
 0x390   : > { %2255 = vmatprep.subr.bf16.mxu1 %v1014_v2  ;;  %1312 = vrot.lane.b32.xlu0 %v3652_v49, %s2825_s29  ;;  %5183 = vst [vmem:[#allocation32_spill] sm:$0xff] %v3924_v56  ;;  %v1185_v56 = vld [vmem:[#allocation7 + $0xd8] sm:$0xff] }
 0x392   : > { %v2661_v27 = vpop.eup %2660 }
 0x393   : > { %2256 = vmatpush1.bf16.msra.mxu1 %v1013_v42  ;;  %v3830_v48 = vpop.permute.xlu0 %1019  ;;  %1511 = vrot.lane.b32.xlu1 %v3638_v63, %s2841_s10  ;;  %v943_v15 = vmul.f32 %v2661_v27, %v3680_v29  ;;  %v942_v2 = vmul.f32 %v2661_v27, %v3678_v16  ;;  %v3932_v29 = vpop.permute.xlu1 %1064 }
 0x394   : > { %5176 = vst [vmem:[#allocation13_spill] sm:$0xff] %v3830_v48  ;;  %1320 = vrot.lane.b32.xlu0 %v3654_v21, %s2825_s29  ;;  %5184 = vst [vmem:[#allocation33_spill] sm:$0xff] %v3932_v29  ;;  %s2842_s29 = smov 126  }
 0x395   : > { %v947_v26 = vpack.c.bf16 %v943_v15, %v941_v13  ;;  %v946_v17 = vpack.c.bf16 %v942_v2, %v940_v47 }
 0x397   : > { %1457 = vrot.lane.b32.xlu1 %v3648_v41, %s2840_s13  ;;  %v3841_v42 = vpop.permute.xlu0 %1021  ;;  %992 = vmatprep.mubr.bf16.mxu1 %v947_v26  ;;  %v3940_v30 = vpop.permute.xlu1 %1068 }
 0x398   : > { %1406 = vrot.lane.b32.xlu0 %v3640_v37, %s2827_s19  ;;  %993 = vmatmul.mubr.bf16.gmra.mrb[4].mxu1 %v946_v17  ;;  %5185 = vst [vmem:[#allocation34_spill] sm:$0xff] %v3940_v30 }
 0x399   : > { %2285 = vmatprep.mubr.bf16.mxu1 %v5162_v5 }
 0x39b   : > { %1465 = vrot.lane.b32.xlu1 %v3650_v33, %s2840_s13  ;;  %v3848_v38 = vpop.permute.xlu0 %1023  ;;  %v3948_v58 = vpop.permute.xlu1 %1106 }
 0x39c   : > { %5177 = vst [vmem:[#allocation26_spill] sm:$0xff] %v3848_v38  ;;  %1414 = vrot.lane.b32.xlu0 %v3642_v55, %s2827_s19  ;;  %5186 = vst [vmem:[#allocation35_spill] sm:$0xff] %v3948_v58 }
 0x39f   : > { %1553 = vrot.lane.b32.xlu1 %v3636_v10, %s2828_s20  ;;  %v3854_v12 = vpop.permute.xlu0 %1025  ;;  %v3956_v62 = vpop.permute.xlu1 %1110 }
 0x3a0   : > { %1361 = vrot.lane.b32.xlu0 %v3652_v49, %s5108_s27  ;;  %5187 = vst [vmem:[#allocation36_spill] sm:$0xff] %v3956_v62  ;;  %v1085_v62 = vld [vmem:[#allocation7 + $0x58] sm:$0xff] }
 0x3a3   : > { %1561 = vrot.lane.b32.xlu1 %v3638_v63, %s2828_s20  ;;  %v3860_v19 = vpop.permute.xlu0 %1027  ;;  %v3964_v39 = vpop.permute.xlu1 %1116 }
 0x3a4   : > { %5178 = vst [vmem:[#allocation27_spill] sm:$0xff] %v3860_v19  ;;  %1369 = vrot.lane.b32.xlu0 %v3654_v21, %s5108_s27  ;;  %s2847_s27 = smov 96  }
 0x3a7   : > { %1507 = vrot.lane.b32.xlu1 %v3648_v41, %s2841_s10  ;;  %v3866_v0 = vpop.permute.xlu0 %1029  ;;  %v3972_v34 = vpop.permute.xlu1 %1158 }
 0x3a8   : > { %1455 = vrot.lane.b32.xlu0 %v3640_v37, %s2840_s13  ;;  %v1035_v19 = vsel %vm1031_vm9, %v3841_v42, %v3866_v0  ;;  %v1039_v38 = vsel %vm1031_vm9, %v3866_v0, %v3841_v42  ;;  %v1135_v42 = vld [vmem:[#allocation7 + $0x98] sm:$0xff] }
 0x3ab   : > { %1515 = vrot.lane.b32.xlu1 %v3650_v33, %s2841_s10  ;;  %v3872_v1 = vpop.permute.xlu0 %1058  ;;  %v3980_v27 = vpop.permute.xlu1 %1166  ;;  %v1138_v33 = vld [vmem:[#allocation7 + $0xb0] sm:$0xff] }
 0x3ac   : > { %1463 = vrot.lane.b32.xlu0 %v3642_v55, %s2840_s13 }
 0x3af   : > { %1557 = vrot.lane.b32.xlu1 %v3648_v41, %s2828_s20  ;;  %v3878_v40 = vpop.permute.xlu0 %1062  ;;  %v3988_v15 = vpop.permute.xlu1 %1118 }
 0x3b0   : > { %1410 = vrot.lane.b32.xlu0 %v3652_v49, %s2827_s19  ;;  %5188 = vst [vmem:[#allocation37_spill] sm:$0xff] %v3988_v15  ;;  %v1084_v15 = vld [vmem:[#allocation7 + $0x50] sm:$0xff] }
 0x3b3   : > { %v3882_v24 = vpop.permute.xlu0 %1066  ;;  %v3996_v26 = vpop.permute.xlu1 %1206 }
 0x3b4   : > { %1418 = vrot.lane.b32.xlu0 %v3654_v21, %s2827_s19  ;;  %s2843_s19 = smov 114   ;;  %5189 = vst [vmem:[#allocation38_spill] sm:$0xff] %v3996_v26  ;;  %v1043_v26 = vld [vmem:[#allocation7 + $0x18] sm:$0xff]  ;;  %v1078_v58 = vsel %vm1072_vm10, %v3882_v24, %v3872_v1 }
 0x3b5   : > { %v1092_v43 = vmul.f32 %v1084_v15, %v1078_v58 }
 0x3b7   : > { %v3886_v18 = vpop.permute.xlu0 %1070  ;;  %v4004_v53 = vpop.permute.xlu1 %1214 }
 0x3b8   : > { %1505 = vrot.lane.b32.xlu0 %v3640_v37, %s2841_s10  ;;  %5190 = vst [vmem:[#allocation39_spill] sm:$0xff] %v4004_v53  ;;  %v1042_v53 = vld [vmem:[#allocation7 + $0x10] sm:$0xff] }
 0x3bb   : > { %v3890_v28 = vpop.permute.xlu0 %1108  ;;  %v4012_v6 = vpop.permute.xlu1 %1160 }
 0x3bc   : > { %1513 = vrot.lane.b32.xlu0 %v3642_v55, %s2841_s10  ;;  %5191 = vst [vmem:[#allocation40_spill] sm:$0xff] %v4012_v6  ;;  %v1124_v0 = vsel %vm1122_vm11, %v3890_v28, %v3964_v39  ;;  %v1128_v58 = vsel %vm1122_vm11, %v3964_v39, %v3890_v28 }
 0x3bd   : > { %v1143_v39 = vmul.f32 %v1135_v42, %v1124_v0  ;;  %v1238_v0 = vld [vmem:[#allocation7 + $0x130] sm:$0xff] }
 0x3bf   : > { %v3894_v51 = vpop.permute.xlu0 %1114  ;;  %v4020_v32 = vpop.permute.xlu1 %1168 }
 0x3c0   : > { %5179 = vst [vmem:[#allocation28_spill] sm:$0xff] %v3894_v51  ;;  %1459 = vrot.lane.b32.xlu0 %v3652_v49, %s2840_s13  ;;  %5192 = vst [vmem:[#allocation41_spill] sm:$0xff] %v4020_v32 }
 0x3c3   : > { %v3898_v45 = vpop.permute.xlu0 %1156  ;;  %v4028_v5 = vpop.permute.xlu1 %1256 }
 0x3c4   : > { %5180 = vst [vmem:[#allocation29_spill] sm:$0xff] %v3898_v45  ;;  %1467 = vrot.lane.b32.xlu0 %v3654_v21, %s2840_s13  ;;  %5194 = vst [vmem:[#allocation43_spill] sm:$0xff] %v4028_v5  ;;  %v1033_v5 = vsel %vm1031_vm9, %v3817_v57, %v3854_v12  ;;  %v1037_v45 = vsel %vm1031_vm9, %v3854_v12, %v3817_v57  ;;  %v1046_v57 = vld [vmem:[#allocation7 + $0x30] sm:$0xff]  ;;  %v1047_v12 = vld [vmem:[#allocation7 + $0x38] sm:$0xff] }
 0x3c5   : > { %v1050_v51 = vmul.f32 %v1042_v53, %v1037_v45  ;;  %v1051_v48 = vmul.f32 %v1043_v26, %v1033_v5  ;;  %v1088_v53 = vld [vmem:[#allocation7 + $0x70] sm:$0xff]  ;;  %v1089_v5 = vld [vmem:[#allocation7 + $0x78] sm:$0xff]  ;;  %v1080_v45 = vsel %vm1072_vm10, %v3886_v18, %v3878_v40  ;;  %v1055_v15 = vmul.f32 %v1047_v12, %v1035_v19 }
 0x3c6   : > { %v1096_v41 = vmul.f32 %v1088_v53, %v1080_v45 }
 0x3c7   : > { %v3902_v4 = vpop.permute.xlu0 %1164  ;;  %v4037_v32 = vpop.permute.xlu1 %1264  ;;  %v1100_v11 = vadd.f32 %v1092_v43, %v1050_v51 }
 0x3c8   : > { %5181 = vst [vmem:[#allocation30_spill] sm:$0xff] %v3902_v4  ;;  %1555 = vrot.lane.b32.xlu0 %v3640_v37, %s2828_s20  ;;  %5195 = vst [vmem:[#allocation44_spill] sm:$0xff] %v4037_v32  ;;  %v1074_v32 = vsel %vm1072_vm10, %v3872_v1, %v3882_v24  ;;  %v1076_v24 = vsel %vm1072_vm10, %v3878_v40, %v3886_v18  ;;  %v1174_v40 = vsel %vm1172_vm12, %v3972_v34, %v3980_v27 }
 0x3c9   : > { %v1093_v30 = vmul.f32 %v1085_v62, %v1074_v32  ;;  %v1134_v32 = vld [vmem:[#allocation7 + $0x90] sm:$0xff]  ;;  %v1178_v18 = vsel %vm1172_vm12, %v3980_v27, %v3972_v34  ;;  %v1054_v62 = vmul.f32 %v1046_v57, %v1039_v38  ;;  %v1097_v63 = vmul.f32 %v1089_v5, %v1076_v24  ;;  %v1189_v24 = vld [vmem:[#allocation7 + $0xf8] sm:$0xff] }
 0x3ca   : > { %v1142_v28 = vmul.f32 %v1134_v32, %v1128_v58  ;;  %v1188_v5 = vld [vmem:[#allocation7 + $0xf0] sm:$0xff]  ;;  %v1239_v58 = vld [vmem:[#allocation7 + $0x138] sm:$0xff] }
 0x3cb   : > { %v3906_v7 = vpop.permute.xlu0 %1112  ;;  %v4079_v26 = vpop.permute.xlu1 %1210  ;;  %v1101_v29 = vadd.f32 %v1093_v30, %v1051_v48  ;;  %v1193_v48 = vmul.f32 %v1185_v56, %v1174_v40  ;;  %v1104_v51 = vadd.f32 %v1096_v41, %v1054_v62  ;;  %v1105_v30 = vadd.f32 %v1097_v63, %v1055_v15  ;;  %v1235_v63 = vld [vmem:[#allocation7 + $0x118] sm:$0xff]  ;;  %v1284_v62 = vld [vmem:[#allocation7 + $0x150] sm:$0xff] }
 0x3cc   : > { %1563 = vrot.lane.b32.xlu0 %v3642_v55, %s2828_s20  ;;  %5197 = vst [vmem:[#allocation46_spill] sm:$0xff] %v4079_v26  ;;  %v1184_v26 = vld [vmem:[#allocation7 + $0xd0] sm:$0xff]  ;;  %v1150_v12 = vadd.f32 %v1142_v28, %v1100_v11  ;;  %v1285_v15 = vld [vmem:[#allocation7 + $0x158] sm:$0xff] }
 0x3cd   : > { %v1192_v43 = vmul.f32 %v1184_v26, %v1178_v18  ;;  %v1151_v53 = vadd.f32 %v1143_v39, %v1101_v29 }
 0x3cf   : > { %v3910_v35 = vpop.permute.xlu0 %1120  ;;  %v4112_v19 = vpop.permute.xlu1 %1218  ;;  %v1200_v45 = vadd.f32 %v1192_v43, %v1150_v12  ;;  %v1201_v26 = vadd.f32 %v1193_v48, %v1151_v53  ;;  %v1289_v48 = vld [vmem:[#allocation7 + $0x178] sm:$0xff]  ;;  %v1333_v53 = vld [vmem:[#allocation7 + $0x190] sm:$0xff] }
 0x3d0   : > { %1509 = vrot.lane.b32.xlu0 %v3652_v49, %s2841_s10  ;;  %v1130_v38 = vsel %vm1122_vm11, %v3910_v35, %v3906_v7 }
 0x3d1   : > { %v1146_v34 = vmul.f32 %v1138_v33, %v1130_v38 }
 0x3d3   : > { %v3914_v31 = vpop.permute.xlu0 %1208  ;;  %v1154_v11 = vadd.f32 %v1146_v34, %v1104_v51 }
 0x3d4   : > { %1517 = vrot.lane.b32.xlu0 %v3654_v21, %s2841_s10 }
 0x3d7   : > { %v3920_v20 = vpop.permute.xlu0 %1216 }
 0x3d8   : > { %1559 = vrot.lane.b32.xlu0 %v3652_v49, %s2828_s20  ;;  %v1224_v41 = vsel %vm1222_vm13, %v3914_v31, %v3920_v20  ;;  %v1228_v33 = vsel %vm1222_vm13, %v3920_v20, %v3914_v31 }
 0x3d9   : > { %v1243_v42 = vmul.f32 %v1235_v63, %v1224_v41 }
 0x3db   : > { %v3926_v23 = vpop.permute.xlu0 %1162 }
 0x3dc   : > { %1567 = vrot.lane.b32.xlu0 %v3654_v21, %s2828_s20 }
 0x3df   : > { %v3930_v16 = vpop.permute.xlu0 %1170 }
 0x3e0   : > { %1629 = vrot.lane.b32.xlu0 %v3640_v37, %s2829_s16 }
 0x3e3   : > { %v3936_v14 = vpop.permute.xlu0 %1258 }
 0x3e4   : > { %1637 = vrot.lane.b32.xlu0 %v3642_v55, %s2829_s16 }
 0x3e7   : > { %v3942_v52 = vpop.permute.xlu0 %1266 }
 0x3e8   : > { %1678 = vrot.lane.b32.xlu0 %v3640_v37, %s2842_s29  ;;  %v1274_v28 = vsel %vm1272_vm14, %v3936_v14, %v3942_v52  ;;  %v1278_v39 = vsel %vm1272_vm14, %v3942_v52, %v3936_v14  ;;  %v1251_v52 = vadd.f32 %v1243_v42, %v1201_v26  ;;  %v1387_v42 = vld [vmem:[#allocation7 + $0x1f8] sm:$0xff] }
 0x3e9   : > { %v1293_v12 = vmul.f32 %v1285_v15, %v1274_v28  ;;  %v1431_v28 = vld [vmem:[#allocation7 + $0x210] sm:$0xff] }
 0x3eb   : > { %v3946_v50 = vpop.permute.xlu0 %1212 }
 0x3ec   : > { %1686 = vrot.lane.b32.xlu0 %v3642_v55, %s2842_s29 }
 0x3ef   : > { %v3952_v59 = vpop.permute.xlu0 %1220 }
 0x3f0   : > { %1633 = vrot.lane.b32.xlu0 %v3652_v49, %s2829_s16  ;;  %v1226_v31 = vsel %vm1222_vm13, %v3946_v50, %v3952_v59  ;;  %v1230_v20 = vsel %vm1222_vm13, %v3952_v59, %v3946_v50  ;;  %v1288_v59 = vld [vmem:[#allocation7 + $0x170] sm:$0xff] }
 0x3f1   : > { %v1246_v43 = vmul.f32 %v1238_v0, %v1230_v20  ;;  %v1247_v50 = vmul.f32 %v1239_v58, %v1226_v31  ;;  %v1301_v20 = vadd.f32 %v1293_v12, %v1251_v52 }
 0x3f3   : > { %v3958_v9 = vpop.permute.xlu0 %1308 }
 0x3f4   : > { %1641 = vrot.lane.b32.xlu0 %v3654_v21, %s2829_s16 }
 0x3f7   : > { %v3962_v44 = vpop.permute.xlu0 %1316 }
 0x3f8   : > { %1728 = vrot.lane.b32.xlu0 %v3640_v37, %s2843_s19 }
 0x3fb   : > { %v3968_v54 = vpop.permute.xlu0 %1262 }
 0x3fc   : > { %1736 = vrot.lane.b32.xlu0 %v3642_v55, %s2843_s19 }
 0x3ff   : > { %v3974_v36 = vpop.permute.xlu0 %1270 }
 0x400   : > { %1682 = vrot.lane.b32.xlu0 %v3652_v49, %s2842_s29  ;;  %v1276_v51 = vsel %vm1272_vm14, %v3968_v54, %v3974_v36 }
 0x403   : > { %v3978_v25 = vpop.permute.xlu0 %1357 }
 0x404   : > { %1690 = vrot.lane.b32.xlu0 %v3654_v21, %s2842_s29 }
 0x407   : > { %v3984_v13 = vpop.permute.xlu0 %1365 }
 0x408   : > { %1778 = vrot.lane.b32.xlu0 %v3640_v37, %s2830_s17 }
 0x40b   : > { %v3990_v47 = vpop.permute.xlu0 %1312 }
 0x40c   : > { %1786 = vrot.lane.b32.xlu0 %v3642_v55, %s2830_s17 }
 0x40f   : > { %v3994_v2 = vpop.permute.xlu0 %1320 }
 0x410   : > { %1732 = vrot.lane.b32.xlu0 %v3652_v49, %s2843_s19  ;;  %v1325_v63 = vsel %vm326_vm1, %v3990_v47, %v3994_v2  ;;  %v1329_v41 = vsel %vm326_vm1, %v3994_v2, %v3990_v47  ;;  %v1376_v47 = vsel %vm367_vm0, %v3984_v13, %v3978_v25 }
 0x413   : > { %v4000_v17 = vpop.permute.xlu0 %1406 }
 0x414   : > { %1740 = vrot.lane.b32.xlu0 %v3654_v21, %s2843_s19 }
 0x417   : > { %v4006_v61 = vpop.permute.xlu0 %1414 }
 0x418   : > { %1827 = vrot.lane.b32.xlu0 %v3640_v37, %s2831_s26 }
 0x41b   : > { %v4010_v60 = vpop.permute.xlu0 %1361 }
 0x41c   : > { %1835 = vrot.lane.b32.xlu0 %v3642_v55, %s2831_s26 }
 0x41f   : > { %v4016_v8 = vpop.permute.xlu0 %1369 }
 0x420   : > { %1782 = vrot.lane.b32.xlu0 %v3652_v49, %s2830_s17  ;;  %v1374_v0 = vsel %vm367_vm0, %v4010_v60, %v4016_v8  ;;  %v1378_v58 = vsel %vm367_vm0, %v4016_v8, %v4010_v60  ;;  %v1425_v60 = vsel %vm417_vm2, %v4006_v61, %v4000_v17 }
 0x423   : > { %v4022_v3 = vpop.permute.xlu0 %1455 }
 0x424   : > { %5193 = vst [vmem:[#allocation42_spill] sm:$0xff] %v4022_v3  ;;  %1790 = vrot.lane.b32.xlu0 %v3654_v21, %s2830_s17  ;;  %v1126_v3 = vsel %vm1122_vm11, %v3906_v7, %v3910_v35  ;;  %v1176_v7 = vsel %vm1172_vm12, %v3926_v23, %v3930_v16  ;;  %v1180_v35 = vsel %vm1172_vm12, %v3930_v16, %v3926_v23 }
 0x425   : > { %v1196_v23 = vmul.f32 %v1188_v5, %v1180_v35  ;;  %v1197_v16 = vmul.f32 %v1189_v24, %v1176_v7  ;;  %v1334_v5 = vld [vmem:[#allocation7 + $0x198] sm:$0xff]  ;;  %v1323_v24 = vsel %vm326_vm1, %v3958_v9, %v3962_v44  ;;  %v1297_v7 = vmul.f32 %v1289_v48, %v1276_v51  ;;  %v1337_v35 = vld [vmem:[#allocation7 + $0x1b0] sm:$0xff] }
 0x426   : > { %v1345_v2 = vmul.f32 %v1337_v35, %v1329_v41  ;;  %v1436_v48 = vld [vmem:[#allocation7 + $0x238] sm:$0xff]  ;;  %v1485_v35 = vld [vmem:[#allocation7 + $0x270] sm:$0xff] }
 0x427   : > { %v4026_v22 = vpop.permute.xlu0 %1463  ;;  %v1204_v40 = vadd.f32 %v1196_v23, %v1154_v11  ;;  %v1382_v23 = vld [vmem:[#allocation7 + $0x1d0] sm:$0xff] }
 0x428   : > { %1876 = vrot.lane.b32.xlu0 %v3640_v37, %s2832_s12 }
 0x429   : > { %v1254_v11 = vadd.f32 %v1246_v43, %v1204_v40  ;;  %v1421_v43 = vsel %vm417_vm2, %v4000_v17, %v4006_v61 }
 0x42b   : > { %v4032_v6 = vpop.permute.xlu0 %1410 }
 0x42c   : > { %1884 = vrot.lane.b32.xlu0 %v3642_v55, %s2832_s12 }
 0x42f   : > { %v4048_v4 = vpop.permute.xlu0 %1418 }
 0x430   : > { %1831 = vrot.lane.b32.xlu0 %v3652_v49, %s2831_s26  ;;  %v1423_v51 = vsel %vm417_vm2, %v4032_v6, %v4048_v4 }
 0x433   : > { %v4068_v1 = vpop.permute.xlu0 %1505 }
 0x434   : > { %5196 = vst [vmem:[#allocation45_spill] sm:$0xff] %v4068_v1  ;;  %1839 = vrot.lane.b32.xlu0 %v3654_v21, %s2831_s26  ;;  %v1139_v1 = vld [vmem:[#allocation7 + $0xb8] sm:$0xff] }
 0x435   : > { %v1147_v27 = vmul.f32 %v1139_v1, %v1126_v3  ;;  %v1234_v3 = vld [vmem:[#allocation7 + $0x110] sm:$0xff]  ;;  %v4137_v1 = vpop.permute.xlu1 %1306 }
 0x436   : > { %v1242_v32 = vmul.f32 %v1234_v3, %v1228_v33  ;;  %v1338_v3 = vld [vmem:[#allocation7 + $0x1b8] sm:$0xff] }
 0x437   : > { %v4100_v10 = vpop.permute.xlu0 %1513  ;;  %v1155_v56 = vadd.f32 %v1147_v27, %v1105_v30  ;;  %v1280_v30 = vsel %vm1272_vm14, %v3974_v36, %v3968_v54  ;;  %v1292_v27 = vmul.f32 %v1284_v62, %v1278_v39  ;;  %v1327_v54 = vsel %vm326_vm1, %v3962_v44, %v3958_v9  ;;  %v1432_v39 = vld [vmem:[#allocation7 + $0x218] sm:$0xff] }
 0x438   : > { %1925 = vrot.lane.b32.xlu0 %v3640_v37, %s2844_s15  ;;  %v1250_v14 = vadd.f32 %v1242_v32, %v1200_v45  ;;  %v1296_v36 = vmul.f32 %v1288_v59, %v1280_v30  ;;  %v1341_v9 = vmul.f32 %v1333_v53, %v1327_v54  ;;  %v1342_v44 = vmul.f32 %v1334_v5, %v1323_v24  ;;  %v1386_v32 = vld [vmem:[#allocation7 + $0x1f0] sm:$0xff]  ;;  %v1482_v5 = vld [vmem:[#allocation7 + $0x258] sm:$0xff] }
 0x439   : > { %v1205_v18 = vadd.f32 %v1197_v16, %v1155_v56  ;;  %v4170_v34 = vpop.permute.xlu1 %1314  ;;  %v1383_v16 = vld [vmem:[#allocation7 + $0x1d8] sm:$0xff]  ;;  %v1372_v45 = vsel %vm367_vm0, %v3978_v25, %v3984_v13  ;;  %v1346_v26 = vmul.f32 %v1338_v3, %v1325_v63  ;;  %v1390_v62 = vmul.f32 %v1382_v23, %v1376_v47  ;;  %v1435_v59 = vld [vmem:[#allocation7 + $0x230] sm:$0xff] }
 0x43a   : > { %v1300_v31 = vadd.f32 %v1292_v27, %v1250_v14  ;;  %v1304_v40 = vadd.f32 %v1296_v36, %v1254_v11  ;;  %v1391_v15 = vmul.f32 %v1383_v16, %v1372_v45  ;;  %v1394_v8 = vmul.f32 %v1386_v32, %v1378_v58  ;;  %v1481_v53 = vld [vmem:[#allocation7 + $0x250] sm:$0xff]  ;;  %v1486_v3 = vld [vmem:[#allocation7 + $0x278] sm:$0xff] }
 0x43b   : > { %v4114_v57 = vpop.permute.xlu0 %1459  ;;  %v1255_v56 = vadd.f32 %v1247_v50, %v1205_v18  ;;  %v1395_v50 = vmul.f32 %v1387_v42, %v1374_v0  ;;  %v1427_v30 = vsel %vm417_vm2, %v4048_v4, %v4032_v6  ;;  %v1350_v52 = vadd.f32 %v1342_v44, %v1301_v20  ;;  %v5198_v24 = vld [vmem:[#allocation42_spill] sm:$0xff]  ;;  %v1536_v47 = vld [vmem:[#allocation7 + $0x2b8] sm:$0xff] }
 0x43c   : > { %1933 = vrot.lane.b32.xlu0 %v3642_v55, %s2844_s15  ;;  %v1349_v14 = vadd.f32 %v1341_v9, %v1300_v31  ;;  %v1353_v61 = vadd.f32 %v1345_v2, %v1304_v40  ;;  %v1439_v27 = vmul.f32 %v1431_v28, %v1425_v60  ;;  %v1440_v12 = vmul.f32 %v1432_v39, %v1421_v43  ;;  %v1535_v45 = vld [vmem:[#allocation7 + $0x2b0] sm:$0xff]  ;;  %v1532_v40 = vld [vmem:[#allocation7 + $0x298] sm:$0xff] }
 0x43d   : > { %v1305_v25 = vadd.f32 %v1297_v7, %v1255_v56  ;;  %v4210_v18 = vpop.permute.xlu1 %1260  ;;  %v1471_v54 = vsel %vm1469_vm15, %v5198_v24, %v4026_v22  ;;  %v1475_v36 = vsel %vm1469_vm15, %v4026_v22, %v5198_v24  ;;  %v1443_v6 = vmul.f32 %v1435_v59, %v1427_v30  ;;  %v1531_v20 = vld [vmem:[#allocation7 + $0x290] sm:$0xff]  ;;  %v1581_v28 = vld [vmem:[#allocation7 + $0x2d8] sm:$0xff] }
 0x43e   : > { %v1444_v4 = vmul.f32 %v1436_v48, %v1423_v51  ;;  %v1398_v11 = vadd.f32 %v1390_v62, %v1349_v14  ;;  %v1399_v22 = vadd.f32 %v1391_v15, %v1350_v52  ;;  %v1402_v56 = vadd.f32 %v1394_v8, %v1353_v61  ;;  %v1585_v48 = vld [vmem:[#allocation7 + $0x2f8] sm:$0xff] }
 0x43f   : > { %v4135_v29 = vpop.permute.xlu0 %1467  ;;  %v1354_v17 = vadd.f32 %v1346_v26, %v1305_v25  ;;  %v1489_v23 = vmul.f32 %v1481_v53, %v1475_v36  ;;  %v1490_v16 = vmul.f32 %v1482_v5, %v1471_v54  ;;  %v5199_v25 = vld [vmem:[#allocation45_spill] sm:$0xff] }
 0x440   : > { %1880 = vrot.lane.b32.xlu0 %v3652_v49, %s2832_s12  ;;  %v1473_v63 = vsel %vm1469_vm15, %v4114_v57, %v4135_v29  ;;  %v1477_v41 = vsel %vm1469_vm15, %v4135_v29, %v4114_v57  ;;  %v1447_v57 = vadd.f32 %v1439_v27, %v1398_v11  ;;  %v1448_v29 = vadd.f32 %v1440_v12, %v1399_v22  ;;  %v1610_v27 = vld [vmem:[#allocation7 + $0x338] sm:$0xff]  ;;  %v1605_v22 = vld [vmem:[#allocation7 + $0x310] sm:$0xff] }
 0x441   : > { %v1403_v9 = vadd.f32 %v1395_v50, %v1354_v17  ;;  %v4248_v44 = vpop.permute.xlu1 %1268  ;;  %v1493_v32 = vmul.f32 %v1485_v35, %v1477_v41  ;;  %v1494_v42 = vmul.f32 %v1486_v3, %v1473_v63  ;;  %v1451_v58 = vadd.f32 %v1443_v6, %v1402_v56  ;;  %v1609_v17 = vld [vmem:[#allocation7 + $0x330] sm:$0xff]  ;;  %v1606_v56 = vld [vmem:[#allocation7 + $0x318] sm:$0xff] }
 0x442   : > { %v1521_v62 = vsel %vm5112_vm8, %v5199_v25, %v4100_v10  ;;  %v1525_v15 = vsel %vm5112_vm8, %v4100_v10, %v5199_v25  ;;  %v1497_v50 = vadd.f32 %v1489_v23, %v1447_v57  ;;  %v1498_v59 = vadd.f32 %v1490_v16, %v1448_v29  ;;  %v1584_v10 = vld [vmem:[#allocation7 + $0x2f0] sm:$0xff] }
 0x443   : > { %v4158_v38 = vpop.permute.xlu0 %1555  ;;  %v1452_v31 = vadd.f32 %v1444_v4, %v1403_v9  ;;  %v1539_v51 = vmul.f32 %v1531_v20, %v1525_v15  ;;  %v1540_v30 = vmul.f32 %v1532_v40, %v1521_v62  ;;  %v1501_v14 = vadd.f32 %v1493_v32, %v1451_v58  ;;  %v1001_v62 = vld [vmem:[%s5046_s4] sm:$0xff]  ;;  %v1002_v15 = vld [vmem:[%s5046_s4 + $0x8] sm:$0xff] }
 0x444   : > { %1888 = vrot.lane.b32.xlu0 %v3654_v21, %s2832_s12  ;;  %v1617_v6 = vmul.f32 %v1609_v17, %v3652_v49  ;;  %v1618_v4 = vmul.f32 %v1610_v27, %v3654_v21  ;;  %v1613_v57 = vmul.f32 %v1605_v22, %v3640_v37  ;;  %v1614_v29 = vmul.f32 %v1606_v56, %v3642_v55 }
 0x445   : > { %v1502_v52 = vadd.f32 %v1494_v42, %v1452_v31  ;;  %v4272_v12 = vpop.permute.xlu1 %1355  ;;  %v1547_v35 = vadd.f32 %v1539_v51, %v1497_v50  ;;  %v1548_v3 = vadd.f32 %v1540_v30, %v1498_v59  ;;  %v1704_v51 = vld [vmem:[#allocation7 + $0x390] sm:$0xff]  ;;  %v1705_v30 = vld [vmem:[#allocation7 + $0x398] sm:$0xff] }
 0x447   : > { %v4188_v33 = vpop.permute.xlu0 %1563 }
 0x448   : > { %1975 = vrot.lane.b32.xlu0 %v3640_v37, %s5110_s7  ;;  %v1570_v39 = vsel %vm5109_vm3, %v4158_v38, %v4188_v33  ;;  %v1574_v43 = vsel %vm5109_vm3, %v4188_v33, %v4158_v38 }
 0x449   : > { %v1589_v5 = vmul.f32 %v1581_v28, %v1570_v39 }
 0x44b   : > { %v1510_v13 = vpop.permute.xlu0 %1509  ;;  %v1597_v23 = vadd.f32 %v1589_v5, %v1548_v3 }
 0x44c   : > { %1983 = vrot.lane.b32.xlu0 %v3642_v55, %s5110_s7 }
 0x44d   : > { %v1622_v31 = vadd.f32 %v1614_v29, %v1597_v23 }
 0x44f   : > { %v1518_v7 = vpop.permute.xlu0 %1517 }
 0x450   : > { %1929 = vrot.lane.b32.xlu0 %v3652_v49, %s2844_s15  ;;  %v1523_v2 = vsel %vm5112_vm8, %v1510_v13, %v1518_v7  ;;  %v1527_v26 = vsel %vm5112_vm8, %v1518_v7, %v1510_v13  ;;  %v1580_v13 = vld [vmem:[#allocation7 + $0x2d0] sm:$0xff]  ;;  %vm1742_vm8 = vcmp.lt.s32.totalorder %v3289_v46, 114 }
 0x451   : > { %v1543_v60 = vmul.f32 %v1535_v45, %v1527_v26  ;;  %v1544_v8 = vmul.f32 %v1536_v47, %v1523_v2  ;;  %v1588_v53 = vmul.f32 %v1580_v13, %v1574_v43  ;;  %v4288_v47 = vpop.permute.xlu1 %1363  ;;  %v1654_v2 = vld [vmem:[#allocation7 + $0x350] sm:$0xff]  ;;  %v1655_v26 = vld [vmem:[#allocation7 + $0x358] sm:$0xff] }
 0x453   : > { %v1560_v0 = vpop.permute.xlu0 %1559  ;;  %v1551_v24 = vadd.f32 %v1543_v60, %v1501_v14  ;;  %v1552_v54 = vadd.f32 %v1544_v8, %v1502_v52  ;;  %v1596_v9 = vadd.f32 %v1588_v53, %v1547_v35 }
 0x454   : > { %1937 = vrot.lane.b32.xlu0 %v3654_v21, %s2844_s15 }
 0x455   : > { %v1621_v58 = vadd.f32 %v1613_v57, %v1596_v9  ;;  %v4304_v8 = vpop.permute.xlu1 %1310 }
 0x457   : > { %v1568_v61 = vpop.permute.xlu0 %1567 }
 0x458   : > { %v1572_v38 = vsel %vm5109_vm3, %v1560_v0, %v1568_v61  ;;  %v1576_v33 = vsel %vm5109_vm3, %v1568_v61, %v1560_v0  ;;  %2025 = vrot.lane.b32.xlu0 %v3640_v37, %s2846_s14  ;;  %vm1692_vm3 = vcmp.lt.s32.totalorder %v3289_v46, 126 }
 0x459   : > { %v1592_v36 = vmul.f32 %v1584_v10, %v1576_v33  ;;  %v1593_v7 = vmul.f32 %v1585_v48, %v1572_v38  ;;  %v4315_v53 = vpop.permute.xlu1 %1318 }
 0x45b   : > { %v1600_v63 = vadd.f32 %v1592_v36, %v1551_v24  ;;  %v1601_v41 = vadd.f32 %v1593_v7, %v1552_v54  ;;  %v1630_v11 = vpop.permute.xlu0 %1629  ;;  %v1003_v54 = vld [vmem:[%s5046_s4 + $0x10] sm:$0xff]  ;;  %v1004_v36 = vld [vmem:[%s5046_s4 + $0x18] sm:$0xff] }
 0x45c   : > { %2033 = vrot.lane.b32.xlu0 %v3642_v55, %s2846_s14 }
 0x45d   : > { %v4284_v16 = vadd.f32 %v1617_v6, %v1600_v63  ;;  %v4286_v45 = vadd.f32 %v1618_v4, %v1601_v41  ;;  %v1658_v63 = vld [vmem:[#allocation7 + $0x370] sm:$0xff]  ;;  %v1659_v41 = vld [vmem:[#allocation7 + $0x378] sm:$0xff]  ;;  %v4325_v22 = vpop.permute.xlu1 %1404 }
 0x45f   : > { %v1638_v32 = vpop.permute.xlu0 %1637 }
 0x460   : > { %v1644_v42 = vsel %vm542_vm4, %v1630_v11, %v1638_v32  ;;  %v1648_v0 = vsel %vm542_vm4, %v1638_v32, %v1630_v11  ;;  %1979 = vrot.lane.b32.xlu0 %v3652_v49, %s5110_s7 }
 0x461   : > { %v1662_v20 = vmul.f32 %v1654_v2, %v1644_v42  ;;  %v1663_v40 = vmul.f32 %v1655_v26, %v1648_v0  ;;  %v986_v25 = vpop.f32.mrb[0].mxu1  ;;  %v4338_v42 = vpop.permute.xlu1 %1412  ;;  %v5200_v0 = vld [vmem:[#allocation21_spill] sm:$0xff] }
 0x462   : > { %v988_v13 = vpop.f32.mrb[1].mxu1  ;;  %v1005_v50 = vmul.f32 %v1001_v62, %v986_v25  ;;  %v5201_v62 = vld [vmem:[#allocation24_spill] sm:$0xff] }
 0x463   : > { %v1670_v28 = vadd.f32 %v1662_v20, %v1621_v58  ;;  %v1671_v39 = vadd.f32 %v1663_v40, %v1622_v31  ;;  %v1679_v43 = vpop.permute.xlu0 %1678  ;;  %v989_v60 = vpop.f32.mrb[2].mxu1  ;;  %v1754_v58 = vld [vmem:[#allocation7 + $0x3d0] sm:$0xff]  ;;  %v1755_v31 = vld [vmem:[#allocation7 + $0x3d8] sm:$0xff] }
 0x464   : > { %v1006_v59 = vmul.f32 %v1002_v15, %v989_v60  ;;  %1987 = vrot.lane.b32.xlu0 %v3654_v21, %s5110_s7  ;;  %v991_v10 = vpop.f32.mrb[3].mxu1  ;;  %s2848_s7 = smov 95   ;;  %v1708_v60 = vld [vmem:[#allocation7 + $0x3b0] sm:$0xff] }
 0x466   : > { %v1009_v48 = vpack.c.bf16 %v1006_v59, %v1005_v50  ;;  %v1709_v50 = vld [vmem:[#allocation7 + $0x3b8] sm:$0xff] }
 0x467   : > { %v1687_v14 = vpop.permute.xlu0 %1686 }
 0x468   : > { %v1694_v52 = vsel %vm1692_vm3, %v1679_v43, %v1687_v14  ;;  %v1698_v61 = vsel %vm1692_vm3, %v1687_v14, %v1679_v43  ;;  %2075 = vrot.lane.b32.xlu0 %v3640_v37, %s2847_s27  ;;  %2231 = vxpose.xlu1.c.b16.start [1/2] (short) (narrow) %v1009_v48, 32  ;;  %v5202_v43 = vld [vmem:[#allocation20_spill] sm:$0xff] }
 0x469   : > { %v1712_v17 = vmul.f32 %v1704_v51, %v1694_v52  ;;  %v1713_v27 = vmul.f32 %v1705_v30, %v1698_v61 }
 0x46b   : > { %v1720_v5 = vadd.f32 %v1712_v17, %v1670_v28  ;;  %v1721_v38 = vadd.f32 %v1713_v27, %v1671_v39  ;;  %v1634_v33 = vpop.permute.xlu0 %1633  ;;  %v994_v24 = vpop.f32.mrb[4].mxu1  ;;  %v1803_v27 = vld [vmem:[#allocation7 + $0x410] sm:$0xff] }
 0x46c   : > { %2083 = vrot.lane.b32.xlu0 %v3642_v55, %s2847_s27  ;;  %v996_v7 = vpop.f32.mrb[5].mxu1  ;;  %v1007_v4 = vmul.f32 %v1003_v54, %v994_v24  ;;  %v4350_v39 = vpop.permute.xlu1 %1359 }
 0x46d   : > { %v997_v6 = vpop.f32.mrb[6].mxu1 }
 0x46e   : > { %v1008_v35 = vmul.f32 %v1004_v36, %v997_v6  ;;  %v999_v3 = vpop.f32.mrb[7].mxu1  ;;  %v5203_v6 = vld [vmem:[#allocation25_spill] sm:$0xff] }
 0x46f   : > { %v1642_v11 = vpop.permute.xlu0 %1641 }
 0x470   : > { %v1010_v56 = vpack.c.bf16 %v1008_v35, %v1007_v4  ;;  %v1646_v9 = vsel %vm542_vm4, %v1634_v33, %v1642_v11  ;;  %v1650_v23 = vsel %vm542_vm4, %v1642_v11, %v1634_v33  ;;  %2029 = vrot.lane.b32.xlu0 %v3652_v49, %s2846_s14  ;;  %v4362_v14 = vpop.permute.xlu1 %1367  ;;  %v1759_v11 = vld [vmem:[#allocation7 + $0x3f8] sm:$0xff] }
 0x471   : > { %v1666_v2 = vmul.f32 %v1658_v63, %v1646_v9  ;;  %v1667_v26 = vmul.f32 %v1659_v41, %v1650_v23  ;;  %v1758_v41 = vld [vmem:[#allocation7 + $0x3f0] sm:$0xff] }
 0x472   : > { %2232 = vxpose.xlu1.c.b16.end [2/2] (short) (narrow) %v1010_v56, 32 }
 0x473   : > { %v1674_v57 = vadd.f32 %v1666_v2, %v4284_v16  ;;  %v1675_v29 = vadd.f32 %v1667_v26, %v4286_v45  ;;  %v1729_v32 = vpop.permute.xlu0 %1728 }
 0x474   : > { %2037 = vrot.lane.b32.xlu0 %v3654_v21, %s2846_s14  ;;  %v4370_v33 = vpop.permute.xlu1 %1453 }
 0x476   : > { %1565 = vrot.lane.b32.xlu1 %v5200_v0, %s2828_s20  ;;  %s2849_s20 = smov 94  }
 0x477   : > { %v1737_v20 = vpop.permute.xlu0 %1736 }
 0x478   : > { %v1744_v40 = vsel %vm1742_vm8, %v1729_v32, %v1737_v20  ;;  %v1748_v16 = vsel %vm1742_vm8, %v1737_v20, %v1729_v32  ;;  %2125 = vrot.lane.b32.xlu0 %v3640_v37, %s2848_s7  ;;  %v4382_v63 = vpop.permute.xlu1 %1461  ;;  %v1852_v32 = vld [vmem:[#allocation7 + $0x450] sm:$0xff] }
 0x479   : > { %v1762_v45 = vmul.f32 %v1754_v58, %v1744_v40  ;;  %v1763_v25 = vmul.f32 %v1755_v31, %v1748_v16  ;;  %v1853_v58 = vld [vmem:[#allocation7 + $0x458] sm:$0xff] }
 0x47a   : > { %1627 = vrot.lane.b32.xlu1 %v5201_v62, %s2829_s16 }
 0x47b   : > { %v1770_v15 = vadd.f32 %v1762_v45, %v1720_v5  ;;  %v1771_v13 = vadd.f32 %v1763_v25, %v1721_v38  ;;  %v1683_v28 = vpop.permute.xlu0 %1682  ;;  %v1804_v5 = vld [vmem:[#allocation7 + $0x418] sm:$0xff] }
 0x47c   : > { %2133 = vrot.lane.b32.xlu0 %v3642_v55, %s2848_s7 }
 0x47e   : > { %1635 = vrot.lane.b32.xlu1 %v5202_v43, %s2829_s16 }
 0x47f   : > { %v1691_v59 = vpop.permute.xlu0 %1690 }
 0x480   : > { %v1696_v10 = vsel %vm1692_vm3, %v1683_v28, %v1691_v59  ;;  %v1700_v48 = vsel %vm1692_vm3, %v1691_v59, %v1683_v28  ;;  %2079 = vrot.lane.b32.xlu0 %v3652_v49, %s2847_s27 }
 0x481   : > { %v1716_v51 = vmul.f32 %v1708_v60, %v1696_v10  ;;  %v1717_v30 = vmul.f32 %v1709_v50, %v1700_v48  ;;  %v1807_v60 = vld [vmem:[#allocation7 + $0x430] sm:$0xff]  ;;  %v1808_v50 = vld [vmem:[#allocation7 + $0x438] sm:$0xff] }
 0x482   : > { %1676 = vrot.lane.b32.xlu1 %v5201_v62, %s2842_s29 }
 0x483   : > { %v1724_v52 = vadd.f32 %v1716_v51, %v1674_v57  ;;  %v1725_v61 = vadd.f32 %v1717_v30, %v1675_v29  ;;  %v1779_v17 = vpop.permute.xlu0 %1778  ;;  %v4394_v29 = vpop.permute.xlu1 %1408 }
 0x484   : > { %2087 = vrot.lane.b32.xlu0 %v3654_v21, %s2847_s27 }
 0x486   : > { %1684 = vrot.lane.b32.xlu1 %v5202_v43, %s2842_s29 }
 0x487   : > { %v1787_v38 = vpop.permute.xlu0 %1786  ;;  %v4406_v25 = vpop.permute.xlu1 %1416 }
 0x488   : > { %v1793_v24 = vsel %vm5113_vm5, %v1779_v17, %v1787_v38  ;;  %v1797_v54 = vsel %vm5113_vm5, %v1787_v38, %v1779_v17  ;;  %2175 = vrot.lane.b32.xlu0 %v3640_v37, %s2849_s20 }
 0x489   : > { %v1811_v36 = vmul.f32 %v1803_v27, %v1793_v24  ;;  %v1812_v7 = vmul.f32 %v1804_v5, %v1797_v54  ;;  %v1901_v27 = vld [vmem:[#allocation7 + $0x490] sm:$0xff]  ;;  %v1902_v5 = vld [vmem:[#allocation7 + $0x498] sm:$0xff] }
 0x48a   : > { %1631 = vrot.lane.b32.xlu1 %v5203_v6, %s2829_s16 }
 0x48b   : > { %v1819_v4 = vadd.f32 %v1811_v36, %v1770_v15  ;;  %v1820_v35 = vadd.f32 %v1812_v7, %v1771_v13  ;;  %v1733_v3 = vpop.permute.xlu0 %1732 }
 0x48c   : > { %2183 = vrot.lane.b32.xlu0 %v3642_v55, %s2849_s20 }
 0x48e   : > { %1639 = vrot.lane.b32.xlu1 %v5200_v0, %s2829_s16  ;;  %s5232_s16 = smov 98  }
 0x48f   : > { %v1741_v56 = vpop.permute.xlu0 %1740 }
 0x490   : > { %v1746_v37 = vsel %vm1742_vm8, %v1733_v3, %v1741_v56  ;;  %v1750_v9 = vsel %vm1742_vm8, %v1741_v56, %v1733_v3  ;;  %2129 = vrot.lane.b32.xlu0 %v3652_v49, %s2848_s7  ;;  %v1857_v56 = vld [vmem:[#allocation7 + $0x478] sm:$0xff] }
 0x491   : > { %v1766_v23 = vmul.f32 %v1758_v41, %v1746_v37  ;;  %v1767_v2 = vmul.f32 %v1759_v11, %v1750_v9  ;;  %v1856_v11 = vld [vmem:[#allocation7 + $0x470] sm:$0xff] }
 0x492   : > { %1726 = vrot.lane.b32.xlu1 %v5201_v62, %s2843_s19 }
 0x493   : > { %v1774_v55 = vadd.f32 %v1766_v23, %v1724_v52  ;;  %v1775_v26 = vadd.f32 %v1767_v2, %v1725_v61  ;;  %v1828_v57 = vpop.permute.xlu0 %1827 }
 0x494   : > { %2137 = vrot.lane.b32.xlu0 %v3654_v21, %s2848_s7 }
 0x496   : > { %1734 = vrot.lane.b32.xlu1 %v5202_v43, %s2843_s19 }
 0x497   : > { %v1836_v31 = vpop.permute.xlu0 %1835 }
 0x498   : > { %v1842_v20 = vsel %vm642_vm6, %v1828_v57, %v1836_v31  ;;  %v1846_v40 = vsel %vm642_vm6, %v1836_v31, %v1828_v57  ;;  %2179 = vrot.lane.b32.xlu0 %v3652_v49, %s2849_s20  ;;  %v4414_v49 = vpop.permute.xlu1 %1503  ;;  %v1951_v31 = vld [vmem:[#allocation7 + $0x4d0] sm:$0xff] }
 0x499   : > { %v1860_v16 = vmul.f32 %v1852_v32, %v1842_v20  ;;  %v1861_v45 = vmul.f32 %v1853_v58, %v1846_v40  ;;  %5204 = vst [vmem:[#allocation42_spill] sm:$0xff] %v4414_v49  ;;  %v1952_v20 = vld [vmem:[#allocation7 + $0x4d8] sm:$0xff] }
 0x49a   : > { %1680 = vrot.lane.b32.xlu1 %v5203_v6, %s2842_s29 }
 0x49b   : > { %v1868_v15 = vadd.f32 %v1860_v16, %v1819_v4  ;;  %v1869_v13 = vadd.f32 %v1861_v45, %v1820_v35  ;;  %v1783_v28 = vpop.permute.xlu0 %1782 }
 0x49c   : > { %2187 = vrot.lane.b32.xlu0 %v3654_v21, %s2849_s20  ;;  %v4422_v17 = vpop.permute.xlu1 %1511 }
 0x49d   : > { %5205 = vst [vmem:[#allocation45_spill] sm:$0xff] %v4422_v17 }
 0x49e   : > { %1688 = vrot.lane.b32.xlu1 %v5200_v0, %s2842_s29 }
 0x49f   : > { %v1791_v59 = vpop.permute.xlu0 %1790 }
 0x4a0   : > { %v1795_v10 = vsel %vm5113_vm5, %v1783_v28, %v1791_v59  ;;  %v1799_v48 = vsel %vm5113_vm5, %v1791_v59, %v1783_v28  ;;  %v4432_v41 = vpop.permute.xlu1 %1457  ;;  %vm1939_vm5 = vcmp.lt.s32.totalorder %v3289_v46, 110 }
 0x4a1   : > { %v1815_v51 = vmul.f32 %v1807_v60, %v1795_v10  ;;  %v1816_v30 = vmul.f32 %v1808_v50, %v1799_v48  ;;  %v1082_v10 = vld [vmem:[#allocation7 + $0x40] sm:$0xff]  ;;  %v1083_v48 = vld [vmem:[#allocation7 + $0x48] sm:$0xff] }
 0x4a2   : > { %1776 = vrot.lane.b32.xlu1 %v5201_v62, %s2830_s17 }
 0x4a3   : > { %v1823_v21 = vadd.f32 %v1815_v51, %v1774_v55  ;;  %v1824_v52 = vadd.f32 %v1816_v30, %v1775_v26  ;;  %v1877_v61 = vpop.permute.xlu0 %1876  ;;  %v5207_v51 = vld [vmem:[#allocation33_spill] sm:$0xff]  ;;  %v5208_v30 = vld [vmem:[#allocation31_spill] sm:$0xff] }
 0x4a4   : > { %v4440_v26 = vpop.permute.xlu1 %1465 }
 0x4a6   : > { %1784 = vrot.lane.b32.xlu1 %v5202_v43, %s2830_s17 }
 0x4a7   : > { %v1885_v38 = vpop.permute.xlu0 %1884 }
 0x4a8   : > { %v1891_v24 = vsel %vm692_vm7, %v1877_v61, %v1885_v38  ;;  %v1895_v54 = vsel %vm692_vm7, %v1885_v38, %v1877_v61  ;;  %v4447_v16 = vpop.permute.xlu1 %1553  ;;  %v1086_v61 = vld [vmem:[#allocation7 + $0x60] sm:$0xff]  ;;  %v5210_v38 = vld [vmem:[#allocation34_spill] sm:$0xff] }
 0x4a9   : > { %v1909_v36 = vmul.f32 %v1901_v27, %v1891_v24  ;;  %v1910_v7 = vmul.f32 %v1902_v5, %v1895_v54  ;;  %5206 = vst [vmem:[#allocation21_spill] sm:$0xff] %v4447_v16  ;;  %v1087_v27 = vld [vmem:[#allocation7 + $0x68] sm:$0xff]  ;;  %v5209_v5 = vld [vmem:[#allocation32_spill] sm:$0xff] }
 0x4aa   : > { %1730 = vrot.lane.b32.xlu1 %v5203_v6, %s2843_s19  ;;  %v1079_v24 = vsel %vm1072_vm10, %v5210_v38, %v5209_v5  ;;  %v1040_v54 = vld [vmem:[#allocation7] sm:$0xff] }
 0x4ab   : > { %v1917_v4 = vadd.f32 %v1909_v36, %v1868_v15  ;;  %v1918_v35 = vadd.f32 %v1910_v7, %v1869_v13  ;;  %v1832_v3 = vpop.permute.xlu0 %1831  ;;  %v5211_v36 = vld [vmem:[#allocation15_spill] sm:$0xff]  ;;  %v5212_v7 = vld [vmem:[#allocation26_spill] sm:$0xff] }
 0x4ae   : > { %1738 = vrot.lane.b32.xlu1 %v5200_v0, %s2843_s19  ;;  %s5259_s19 = sshll.u32 %s3068_s30, 6 }
 0x4af   : > { %v1840_v37 = vpop.permute.xlu0 %1839 }
 0x4b0   : > { %v1844_v9 = vsel %vm642_vm6, %v1832_v3, %v1840_v37  ;;  %v1848_v23 = vsel %vm642_vm6, %v1840_v37, %v1832_v3  ;;  %v1905_v3 = vld [vmem:[#allocation7 + $0x4b0] sm:$0xff]  ;;  %v1041_v37 = vld [vmem:[#allocation7 + $0x8] sm:$0xff] }
 0x4b1   : > { %v1864_v2 = vmul.f32 %v1856_v11, %v1844_v9  ;;  %v1865_v55 = vmul.f32 %v1857_v56, %v1848_v23  ;;  %v1906_v11 = vld [vmem:[#allocation7 + $0x4b8] sm:$0xff]  ;;  %v1075_v56 = vsel %vm1072_vm10, %v5209_v5, %v5210_v38  ;;  %v1032_v9 = vsel %vm1031_vm9, %v5211_v36, %v5212_v7  ;;  %v1044_v23 = vld [vmem:[#allocation7 + $0x20] sm:$0xff] }
 0x4b2   : > { %1825 = vrot.lane.b32.xlu1 %v5201_v62, %s2831_s26 }
 0x4b3   : > { %v1872_v57 = vadd.f32 %v1864_v2, %v1823_v21  ;;  %v1873_v32 = vadd.f32 %v1865_v55, %v1824_v52  ;;  %v1926_v58 = vpop.permute.xlu0 %1925  ;;  %v1073_v21 = vsel %vm1072_vm10, %v5208_v30, %v5207_v51  ;;  %v1077_v52 = vsel %vm1072_vm10, %v5207_v51, %v5208_v30  ;;  %v1045_v2 = vld [vmem:[#allocation7 + $0x28] sm:$0xff]  ;;  %v5214_v55 = vld [vmem:[#allocation27_spill] sm:$0xff] }
 0x4b4   : > { %v1094_v51 = vmul.f32 %v1086_v61, %v1079_v24  ;;  %vm5229_vm10 = vcmask 261120  }
 0x4b6   : > { %1833 = vrot.lane.b32.xlu1 %v5202_v43, %s2831_s26 }
 0x4b7   : > { %v1934_v40 = vpop.permute.xlu0 %1933 }
 0x4b8   : > { %v1941_v45 = vsel %vm1939_vm5, %v1926_v58, %v1934_v40  ;;  %v1945_v15 = vsel %vm1939_vm5, %v1934_v40, %v1926_v58  ;;  %v5215_v58 = vld [vmem:[#allocation13_spill] sm:$0xff] }
 0x4b9   : > { %v1959_v13 = vmul.f32 %v1951_v31, %v1941_v45  ;;  %v1960_v28 = vmul.f32 %v1952_v20, %v1945_v15  ;;  %v1034_v31 = vsel %vm1031_vm9, %v5215_v58, %v5214_v55  ;;  %v1038_v20 = vsel %vm1031_vm9, %v5214_v55, %v5215_v58  ;;  %v1132_v55 = vld [vmem:[#allocation7 + $0x80] sm:$0xff] }
 0x4ba   : > { %1780 = vrot.lane.b32.xlu1 %v5203_v6, %s2830_s17  ;;  %v1090_v45 = vmul.f32 %v1082_v10, %v1077_v52  ;;  %v1091_v15 = vmul.f32 %v1083_v48, %v1073_v21  ;;  %v1052_v16 = vmul.f32 %v1044_v23, %v1038_v20  ;;  %v1133_v10 = vld [vmem:[#allocation7 + $0x88] sm:$0xff]  ;;  %v5216_v48 = vld [vmem:[#allocation28_spill] sm:$0xff]  ;;  %v5217_v21 = vld [vmem:[#allocation35_spill] sm:$0xff] }
 0x4bb   : > { %v4455_v60 = vadd.f32 %v1959_v13, %v1917_v4  ;;  %v4457_v50 = vadd.f32 %v1960_v28, %v1918_v35  ;;  %v1881_v59 = vpop.permute.xlu0 %1880  ;;  %v1036_v4 = vsel %vm1031_vm9, %v5212_v7, %v5211_v36  ;;  %v4475_v35 = vpop.permute.xlu1 %1561  ;;  %v1095_v36 = vmul.f32 %v1087_v27, %v1075_v56  ;;  %v2002_v20 = vld [vmem:[#allocation7 + $0x518] sm:$0xff] }
 0x4bc   : > { %5213 = vst [vmem:[#allocation24_spill] sm:$0xff] %v4475_v35  ;;  %v1048_v30 = vmul.f32 %v1040_v54, %v1036_v4  ;;  %v1049_v7 = vmul.f32 %v1041_v37, %v1032_v9  ;;  %v1053_v35 = vmul.f32 %v1045_v2, %v1034_v31  ;;  %v1123_v52 = vsel %vm1122_vm11, %v5217_v21, %v5216_v48  ;;  %v1136_v54 = vld [vmem:[#allocation7 + $0xa0] sm:$0xff]  ;;  %v1137_v9 = vld [vmem:[#allocation7 + $0xa8] sm:$0xff]  ;;  %v2001_v31 = vld [vmem:[#allocation7 + $0x510] sm:$0xff] }
 0x4bd   : > { %v5218_v4 = vld [vmem:[#allocation36_spill] sm:$0xff]  ;;  %vm1989_vm9 = vcmp.lt.s32.totalorder %v3289_v46, 98  ;;  %v1141_v58 = vmul.f32 %v1133_v10, %v1123_v52 }
 0x4be   : > { %1788 = vrot.lane.b32.xlu1 %v5200_v0, %s2830_s17  ;;  %v1098_v37 = vadd.f32 %v1090_v45, %v1048_v30  ;;  %v1182_v45 = vld [vmem:[#allocation7 + $0xc0] sm:$0xff]  ;;  %v5220_v30 = vld [vmem:[#allocation30_spill] sm:$0xff] }
 0x4bf   : > { %v1889_v40 = vpop.permute.xlu0 %1888  ;;  %v4517_v56 = vpop.permute.xlu1 %1507  ;;  %v5225_v52 = vld [vmem:[#allocation40_spill] sm:$0xff] }
 0x4c0   : > { %v1893_v13 = vsel %vm692_vm7, %v1881_v59, %v1889_v40  ;;  %v1897_v28 = vsel %vm692_vm7, %v1889_v40, %v1881_v59  ;;  %v1127_v59 = vsel %vm1122_vm11, %v5216_v48, %v5217_v21  ;;  %v1103_v40 = vadd.f32 %v1095_v36, %v1053_v35  ;;  %v1186_v48 = vld [vmem:[#allocation7 + $0xe0] sm:$0xff]  ;;  %v5224_v21 = vld [vmem:[#allocation41_spill] sm:$0xff] }
 0x4c1   : > { %v1913_v5 = vmul.f32 %v1905_v3, %v1893_v13  ;;  %v1914_v38 = vmul.f32 %v1906_v11, %v1897_v28  ;;  %v5219_v3 = vld [vmem:[#allocation37_spill] sm:$0xff]  ;;  %v1140_v2 = vmul.f32 %v1132_v55, %v1127_v59  ;;  %v5223_v55 = vld [vmem:[#allocation39_spill] sm:$0xff]  ;;  %v1175_v59 = vsel %vm1172_vm12, %v5225_v52, %v5224_v21 }
 0x4c2   : > { %1874 = vrot.lane.b32.xlu1 %v5201_v62, %s2832_s12  ;;  %v1129_v11 = vsel %vm1122_vm11, %v5219_v3, %v5218_v4  ;;  %v1125_v23 = vsel %vm1122_vm11, %v5218_v4, %v5219_v3  ;;  %v1183_v28 = vld [vmem:[#allocation7 + $0xc8] sm:$0xff] }
 0x4c3   : > { %v4509_v61 = vadd.f32 %v1913_v5, %v1872_v57  ;;  %v4511_v27 = vadd.f32 %v1914_v38, %v1873_v32  ;;  %v1976_v24 = vpop.permute.xlu0 %1975  ;;  %v1099_v57 = vadd.f32 %v1091_v15, %v1049_v7  ;;  %v1102_v32 = vadd.f32 %v1094_v51, %v1052_v16  ;;  %v5221_v5 = vld [vmem:[#allocation29_spill] sm:$0xff]  ;;  %v5222_v7 = vld [vmem:[#allocation38_spill] sm:$0xff] }
 0x4c4   : > { %v1144_v13 = vmul.f32 %v1136_v54, %v1129_v11  ;;  %v1173_v38 = vsel %vm1172_vm12, %v5221_v5, %v5220_v30  ;;  %v1177_v16 = vsel %vm1172_vm12, %v5220_v30, %v5221_v5  ;;  %v1145_v51 = vmul.f32 %v1137_v9, %v1125_v23  ;;  %v1232_v11 = vld [vmem:[#allocation7 + $0x100] sm:$0xff]  ;;  %v1187_v9 = vld [vmem:[#allocation7 + $0xe8] sm:$0xff] }
 0x4c5   : > { %v1227_v35 = vsel %vm1222_vm13, %v5223_v55, %v5222_v7  ;;  %v1179_v54 = vsel %vm1172_vm12, %v5224_v21, %v5225_v52  ;;  %v1148_v23 = vadd.f32 %v1140_v2, %v1098_v37  ;;  %v1149_v30 = vadd.f32 %v1141_v58, %v1099_v57  ;;  %v1283_v52 = vld [vmem:[#allocation7 + $0x148] sm:$0xff] }
 0x4c6   : > { %1882 = vrot.lane.b32.xlu1 %v5202_v43, %s2832_s12  ;;  %v1190_v5 = vmul.f32 %v1182_v45, %v1177_v16  ;;  %v1191_v49 = vmul.f32 %v1183_v28, %v1173_v38  ;;  %v1223_v17 = vsel %vm1222_vm13, %v5222_v7, %v5223_v55  ;;  %v1152_v57 = vadd.f32 %v1144_v13, %v1102_v32  ;;  %v1282_v16 = vld [vmem:[#allocation7 + $0x140] sm:$0xff] }
 0x4c7   : > { %v1984_v15 = vpop.permute.xlu0 %1983  ;;  %v1194_v2 = vmul.f32 %v1186_v48, %v1179_v54  ;;  %v1153_v58 = vadd.f32 %v1145_v51, %v1103_v40  ;;  %v1240_v45 = vmul.f32 %v1232_v11, %v1227_v35  ;;  %v1195_v28 = vmul.f32 %v1187_v9, %v1175_v59  ;;  %v5228_v40 = vld [vmem:[#allocation46_spill] sm:$0xff] }
 0x4c8   : > { %v1991_v36 = vsel %vm1989_vm9, %v1976_v24, %v1984_v15  ;;  %v1995_v10 = vsel %vm1989_vm9, %v1984_v15, %v1976_v24  ;;  %v4550_v24 = vpop.permute.xlu1 %1515  ;;  %v1233_v15 = vld [vmem:[#allocation7 + $0x108] sm:$0xff]  ;;  %v1198_v7 = vadd.f32 %v1190_v5, %v1148_v23  ;;  %v1199_v55 = vadd.f32 %v1191_v49, %v1149_v30 }
 0x4c9   : > { %v2009_v4 = vmul.f32 %v2001_v31, %v1991_v36  ;;  %v2010_v3 = vmul.f32 %v2002_v20, %v1995_v10  ;;  %v1241_v38 = vmul.f32 %v1233_v15, %v1223_v17  ;;  %v5226_v36 = vld [vmem:[#allocation43_spill] sm:$0xff]  ;;  %v5227_v10 = vld [vmem:[#allocation44_spill] sm:$0xff]  ;;  %v1229_v13 = vsel %vm1222_vm13, %v4112_v19, %v5228_v40  ;;  %v1237_v49 = vld [vmem:[#allocation7 + $0x128] sm:$0xff] }
 0x4ca   : > { %1829 = vrot.lane.b32.xlu1 %v5203_v6, %s2831_s26  ;;  %v1277_v21 = vsel %vm1272_vm14, %v5227_v10, %v5226_v36  ;;  %v1273_v32 = vsel %vm1272_vm14, %v5226_v36, %v5227_v10  ;;  %v1236_v17 = vld [vmem:[#allocation7 + $0x120] sm:$0xff]  ;;  %v1202_v35 = vadd.f32 %v1194_v2, %v1152_v57  ;;  %v1225_v48 = vsel %vm1222_vm13, %v5228_v40, %v4112_v19 }
 0x4cb   : > { %v4559_v31 = vadd.f32 %v2009_v4, %v4455_v60  ;;  %v4562_v20 = vadd.f32 %v2010_v3, %v4457_v50  ;;  %v1930_v37 = vpop.permute.xlu0 %1929  ;;  %v1955_v60 = vld [vmem:[#allocation7 + $0x4f0] sm:$0xff]  ;;  %v1956_v50 = vld [vmem:[#allocation7 + $0x4f8] sm:$0xff]  ;;  %v1203_v3 = vadd.f32 %v1195_v28, %v1153_v58  ;;  %v1290_v11 = vmul.f32 %v1282_v16, %v1277_v21  ;;  %v1286_v2 = vld [vmem:[#allocation7 + $0x160] sm:$0xff] }
 0x4cc   : > { %v4582_v59 = vpop.permute.xlu1 %1557  ;;  %v1291_v30 = vmul.f32 %v1283_v52, %v1273_v32  ;;  %v1248_v5 = vadd.f32 %v1240_v45, %v1198_v7  ;;  %v1249_v15 = vadd.f32 %v1241_v38, %v1199_v55  ;;  %v1244_v57 = vmul.f32 %v1236_v17, %v1229_v13  ;;  %v1287_v45 = vld [vmem:[#allocation7 + $0x168] sm:$0xff]  ;;  %v1331_v10 = vld [vmem:[#allocation7 + $0x180] sm:$0xff] }
 0x4cd   : > { %v1245_v19 = vmul.f32 %v1237_v49, %v1225_v48  ;;  %v1279_v36 = vsel %vm1272_vm14, %v4248_v44, %v4210_v18  ;;  %v1275_v38 = vsel %vm1272_vm14, %v4210_v18, %v4248_v44  ;;  %v1332_v21 = vld [vmem:[#allocation7 + $0x188] sm:$0xff]  ;;  %v5230_v18 = vmov 0   ;;  %v1335_v13 = vld [vmem:[#allocation7 + $0x1a0] sm:$0xff] }
 0x4ce   : > { %1837 = vrot.lane.b32.xlu1 %v5200_v0, %s2831_s26  ;;  %v1252_v7 = vadd.f32 %v1244_v57, %v1202_v35  ;;  %v1294_v55 = vmul.f32 %v1286_v2, %v1279_v36  ;;  %v1295_v52 = vmul.f32 %v1287_v45, %v1275_v38  ;;  %v1380_v35 = vld [vmem:[#allocation7 + $0x1c0] sm:$0xff]  ;;  %v1375_v49 = vsel %vm367_vm0, %v4288_v47, %v4272_v12  ;;  %v1430_v36 = vld [vmem:[#allocation7 + $0x208] sm:$0xff] }
 0x4cf   : > { %v1938_v51 = vpop.permute.xlu0 %1937  ;;  %v1253_v44 = vadd.f32 %v1245_v19, %v1203_v3  ;;  %v1384_v3 = vld [vmem:[#allocation7 + $0x1e0] sm:$0xff]  ;;  %v1388_v57 = vmul.f32 %v1380_v35, %v1375_v49  ;;  %v1420_v45 = vsel %vm417_vm2, %v4325_v22, %v4338_v42  ;;  %v1424_v38 = vsel %vm417_vm2, %v4338_v42, %v4325_v22 }
 0x4d0   : > { %v1943_v54 = vsel %vm1939_vm5, %v1930_v37, %v1938_v51  ;;  %v1947_v4 = vsel %vm1939_vm5, %v1938_v51, %v1930_v37  ;;  %v1336_v51 = vld [vmem:[#allocation7 + $0x1a8] sm:$0xff]  ;;  %v1302_v48 = vadd.f32 %v1294_v55, %v1252_v7  ;;  %v1429_v2 = vld [vmem:[#allocation7 + $0x200] sm:$0xff]  ;;  %v1438_v55 = vmul.f32 %v1430_v36, %v1420_v45 }
 0x4d1   : > { %v1963_v9 = vmul.f32 %v1955_v60, %v1943_v54  ;;  %v1964_v23 = vmul.f32 %v1956_v50, %v1947_v4  ;;  %v1298_v60 = vadd.f32 %v1290_v11, %v1248_v5  ;;  %v1299_v50 = vadd.f32 %v1291_v30, %v1249_v15  ;;  %v1381_v54 = vld [vmem:[#allocation7 + $0x1c8] sm:$0xff] }
 0x4d2   : > { %1923 = vrot.lane.b32.xlu1 %v5201_v62, %s2844_s15  ;;  %v1371_v4 = vsel %vm367_vm0, %v4272_v12, %v4288_v47  ;;  %v1377_v11 = vsel %vm367_vm0, %v4362_v14, %v4350_v39  ;;  %v1385_v30 = vld [vmem:[#allocation7 + $0x1e8] sm:$0xff]  ;;  %v1373_v5 = vsel %vm367_vm0, %v4350_v39, %v4362_v14  ;;  %vm5231_vm0 = vmmov %vm5229_vm10  ;;  %v1433_v14 = vld [vmem:[#allocation7 + $0x220] sm:$0xff]  ;;  %v1437_v7 = vmul.f32 %v1429_v2, %v1424_v38 }
 0x4d3   : > { %v4595_v37 = vadd.f32 %v1963_v9, %v4509_v61  ;;  %v4598_v58 = vadd.f32 %v1964_v23, %v4511_v27  ;;  %v4600_v28 = vpop.permute.xlu0 %2025  ;;  %v1322_v61 = vsel %vm326_vm1, %v4137_v1, %v4170_v34  ;;  %v1326_v27 = vsel %vm326_vm1, %v4170_v34, %v4137_v1  ;;  %v5239_v2 = vld [vmem:[#allocation24_spill] sm:$0xff]  ;;  %v5240_v36 = vld [vmem:[#allocation21_spill] sm:$0xff] }
 0x4d4   : > { %v2239_v16 = vpop.trf.xlu1  ;;  %v1339_v17 = vmul.f32 %v1331_v10, %v1326_v27  ;;  %v1340_v40 = vmul.f32 %v1332_v21, %v1322_v61  ;;  %v1324_v1 = vsel %vm326_vm1, %v4304_v8, %v4315_v53  ;;  %v1328_v34 = vsel %vm326_vm1, %v4315_v53, %v4304_v8  ;;  %v1434_v10 = vld [vmem:[#allocation7 + $0x228] sm:$0xff] }
 0x4d5   : > { %2522 = vmatmul.mubr.msk.bf16.vlgmr.msra.gmra.mrb[8].mxu1 %vm5229_vm10, %v2239_v16  ;;  %v1303_v53 = vadd.f32 %v1295_v52, %v1253_v44  ;;  %v1343_v9 = vmul.f32 %v1335_v13, %v1328_v34  ;;  %v1344_v23 = vmul.f32 %v1336_v51, %v1324_v1  ;;  %v1389_v19 = vmul.f32 %v1381_v54, %v1371_v4  ;;  %v1479_v44 = vld [vmem:[#allocation7 + $0x240] sm:$0xff]  ;;  %v1534_v54 = vld [vmem:[#allocation7 + $0x2a8] sm:$0xff] }
 0x4d6   : > { %1931 = vrot.lane.b32.xlu1 %v5202_v43, %s2844_s15  ;;  %2295 = vmatprep.mubr.bf16.mxu1 %v5230_v18  ;;  %v1347_v47 = vadd.f32 %v1339_v17, %v1298_v60  ;;  %v1348_v15 = vadd.f32 %v1340_v40, %v1299_v50  ;;  %v1392_v16 = vmul.f32 %v1384_v3, %v1377_v11  ;;  %v1480_v60 = vld [vmem:[#allocation7 + $0x248] sm:$0xff]  ;;  %v1483_v17 = vld [vmem:[#allocation7 + $0x260] sm:$0xff]  ;;  %vm5233_vm1 = vcmp.lt.s32.totalorder %v3289_v46, 2 }
 0x4d7   : > { %v4618_v32 = vpop.permute.xlu0 %2033  ;;  %v1393_v39 = vmul.f32 %v1385_v30, %v1373_v5  ;;  %v1422_v21 = vsel %vm417_vm2, %v4394_v29, %v4406_v25  ;;  %v1426_v61 = vsel %vm417_vm2, %v4406_v25, %v4394_v29  ;;  %v1351_v22 = vadd.f32 %v1343_v9, %v1302_v48  ;;  %v1484_v40 = vld [vmem:[#allocation7 + $0x268] sm:$0xff]  ;;  %v1533_v48 = vld [vmem:[#allocation7 + $0x2a0] sm:$0xff]  ;;  %vm5234_vm2 = vmmov %vm5233_vm1 }
 0x4d8   : > { %v2240_v8 = vpop.trf.xlu1  ;;  %v1352_v42 = vadd.f32 %v1344_v23, %v1303_v53  ;;  %v1470_v50 = vsel %vm1469_vm15, %v4370_v33, %v4382_v63  ;;  %v1474_v29 = vsel %vm1469_vm15, %v4382_v63, %v4370_v33  ;;  %v1441_v25 = vmul.f32 %v1433_v14, %v1426_v61  ;;  %v1529_v30 = vld [vmem:[#allocation7 + $0x280] sm:$0xff]  ;;  %v1530_v5 = vld [vmem:[#allocation7 + $0x288] sm:$0xff]  ;;  %vm5237_vm11 = vmmov %vm5233_vm1 }
 0x4d9   : > { %v1442_v52 = vmul.f32 %v1434_v10, %v1422_v21  ;;  %v1472_v13 = vsel %vm1469_vm15, %v4432_v41, %v4440_v26  ;;  %v1476_v51 = vsel %vm1469_vm15, %v4440_v26, %v4432_v41  ;;  %v1396_v1 = vadd.f32 %v1388_v57, %v1347_v47  ;;  %v5235_v47 = vld [vmem:[#allocation45_spill] sm:$0xff]  ;;  %vm5238_vm12 = vmmov %vm5233_vm1  ;;  %v1582_v61 = vld [vmem:[#allocation7 + $0x2e0] sm:$0xff] }
 0x4da   : > { %1878 = vrot.lane.b32.xlu1 %v5203_v6, %s2832_s12  ;;  %v1397_v34 = vadd.f32 %v1389_v19, %v1348_v15  ;;  %v1400_v35 = vadd.f32 %v1392_v16, %v1351_v22  ;;  %v1401_v49 = vadd.f32 %v1393_v39, %v1352_v42  ;;  %v1487_v33 = vmul.f32 %v1479_v44, %v1474_v29  ;;  %v5236_v15 = vld [vmem:[#allocation42_spill] sm:$0xff]  ;;  %v1579_v19 = vld [vmem:[#allocation7 + $0x2c8] sm:$0xff] }
 0x4db   : > { %v4646_v12 = vpop.permute.xlu0 %1979  ;;  %v1488_v63 = vmul.f32 %v1480_v60, %v1470_v50  ;;  %v1522_v4 = vsel %vm5233_vm1, %v4517_v56, %v4550_v24  ;;  %v1526_v41 = vsel %vm5234_vm2, %v4550_v24, %v4517_v56  ;;  %v1445_v3 = vadd.f32 %v1437_v7, %v1396_v1  ;;  %v1578_v24 = vld [vmem:[#allocation7 + $0x2c0] sm:$0xff]  ;;  %v1583_v22 = vld [vmem:[#allocation7 + $0x2e8] sm:$0xff] }
 0x4dc   : > { %v1446_v11 = vadd.f32 %v1438_v55, %v1397_v34  ;;  %v1492_v53 = vmul.f32 %v1484_v40, %v1472_v13  ;;  %v1449_v9 = vadd.f32 %v1441_v25, %v1400_v35  ;;  %v1450_v23 = vadd.f32 %v1442_v52, %v1401_v49  ;;  %v1607_v50 = vld [vmem:[#allocation7 + $0x320] sm:$0xff]  ;;  %v1608_v29 = vld [vmem:[#allocation7 + $0x328] sm:$0xff] }
 0x4dd   : > { %2523 = vmatmul.mubr.msk.bf16.gmra.mrb[12].mxu1 %vm5231_vm0, %v2240_v8  ;;  %v1491_v8 = vmul.f32 %v1483_v17, %v1476_v51  ;;  %v1520_v57 = vsel %vm5237_vm11, %v5236_v15, %v5235_v47  ;;  %v1524_v56 = vsel %vm5238_vm12, %v5235_v47, %v5236_v15  ;;  %vm5241_vm13 = vcmp.lt.s32.totalorder %v3289_v46, 1 }
 0x4de   : > { %1886 = vrot.lane.b32.xlu1 %v5200_v0, %s2832_s12  ;;  %2362 = vmatprep.mubr.bf16.mxu1 %v5230_v18  ;;  %v1569_v45 = vsel %vm5241_vm13, %v5240_v36, %v5239_v2  ;;  %vm5242_vm14 = vmmov %vm5241_vm13  ;;  %v1541_v16 = vmul.f32 %v1533_v48, %v1526_v41  ;;  %v1542_v39 = vmul.f32 %v1534_v54, %v1522_v4  ;;  %vm2039_vm0 = vcmp.lt.s32.totalorder %v3289_v46, 97 }
 0x4df   : > { %v4668_v27 = vpop.permute.xlu0 %1987  ;;  %v1573_v38 = vsel %vm5242_vm14, %v5239_v2, %v5240_v36  ;;  %v1495_v14 = vadd.f32 %v1487_v33, %v1445_v3  ;;  %v1496_v10 = vadd.f32 %v1488_v63, %v1446_v11  ;;  %v1537_v42 = vmul.f32 %v1529_v30, %v1524_v56  ;;  %vm5243_vm15 = vmmov %vm5241_vm13  ;;  %v1603_v3 = vld [vmem:[#allocation7 + $0x300] sm:$0xff] }
 0x4e0   : > { %v1538_v7 = vmul.f32 %v1530_v5, %v1520_v57  ;;  %v1499_v55 = vadd.f32 %v1491_v8, %v1449_v9  ;;  %v1500_v44 = vadd.f32 %v1492_v53, %v1450_v23  ;;  %v1586_v25 = vmul.f32 %v1578_v24, %v1573_v38  ;;  %vm5244_vm10 = vmmov %vm5241_vm13  ;;  %v1652_v30 = vld [vmem:[#allocation7 + $0x340] sm:$0xff]  ;;  %v1653_v5 = vld [vmem:[#allocation7 + $0x348] sm:$0xff] }
 0x4e1   : > { %v1587_v52 = vmul.f32 %v1579_v19, %v1569_v45  ;;  %v1615_v49 = vmul.f32 %v1607_v50, %v5203_v6  ;;  %v1616_v33 = vmul.f32 %v1608_v29, %v5200_v0  ;;  %v1545_v63 = vadd.f32 %v1537_v42, %v1495_v14  ;;  %v2051_v29 = vld [vmem:[#allocation7 + $0x550] sm:$0xff] }
 0x4e2   : > { %1973 = vrot.lane.b32.xlu1 %v5201_v62, %s5232_s16  ;;  %v1549_v13 = vadd.f32 %v1541_v16, %v1499_v55  ;;  %v1550_v51 = vadd.f32 %v1542_v39, %v1500_v44  ;;  %v1546_v48 = vadd.f32 %v1538_v7, %v1496_v10  ;;  %v1611_v47 = vmul.f32 %v1603_v3, %v5201_v62  ;;  %v2152_v3 = vld [vmem:[#allocation7 + $0x5d8] sm:$0xff] }
 0x4e3   : > { %v4696_v26 = vpop.permute.xlu0 %2075  ;;  %v1594_v11 = vadd.f32 %v1586_v25, %v1545_v63  ;;  %vm2089_vm1 = vcmp.lt.s32.totalorder %v3289_v46, 96  ;;  %v2052_v25 = vld [vmem:[#allocation7 + $0x558] sm:$0xff]  ;;  %vm2139_vm2 = vcmp.lt.s32.totalorder %v3289_v46, 95 }
 0x4e4   : > { %v1595_v8 = vadd.f32 %v1587_v52, %v1546_v48  ;;  %v2041_v52 = vsel %vm2039_vm0, %v4600_v28, %v4618_v32  ;;  %v1656_v48 = vld [vmem:[#allocation7 + $0x360] sm:$0xff] }
 0x4e5   : > { %v1619_v19 = vadd.f32 %v1611_v47, %v1594_v11 }
 0x4e6   : > { %1981 = vrot.lane.b32.xlu1 %v5202_v43, %s5232_s16 }
 0x4e7   : > { %v4716_v21 = vpop.permute.xlu0 %2083 }
 0x4e8   : > { %v1566_v60 = vpop.permute.xlu1 %1565  ;;  %v2091_v63 = vsel %vm2089_vm1, %v4696_v26, %v4716_v21 }
 0x4e9   : > { %v1571_v17 = vsel %vm5243_vm15, %v4582_v59, %v1566_v60  ;;  %v1575_v40 = vsel %vm5244_vm10, %v1566_v60, %v4582_v59  ;;  %v1604_v59 = vld [vmem:[#allocation7 + $0x308] sm:$0xff] }
 0x4ea   : > { %v1590_v1 = vmul.f32 %v1582_v61, %v1575_v40  ;;  %v1591_v34 = vmul.f32 %v1583_v22, %v1571_v17  ;;  %1927 = vrot.lane.b32.xlu1 %v5203_v6, %s2844_s15  ;;  %v1612_v15 = vmul.f32 %v1604_v59, %v5202_v43  ;;  %v1702_v61 = vld [vmem:[#allocation7 + $0x380] sm:$0xff]  ;;  %v1703_v22 = vld [vmem:[#allocation7 + $0x388] sm:$0xff]  ;;  %v2045_v17 = vsel %vm2039_vm0, %v4618_v32, %v4600_v28 }
 0x4eb   : > { %v4726_v35 = vpop.permute.xlu0 %2029  ;;  %v2095_v28 = vsel %vm2089_vm1, %v4716_v21, %v4696_v26 }
 0x4ec   : > { %v1598_v54 = vadd.f32 %v1590_v1, %v1549_v13  ;;  %v1599_v4 = vadd.f32 %v1591_v34, %v1550_v51  ;;  %v1628_v41 = vpop.permute.xlu1 %1627  ;;  %v1620_v2 = vadd.f32 %v1612_v15, %v1595_v8  ;;  %v2101_v1 = vld [vmem:[#allocation7 + $0x590] sm:$0xff]  ;;  %v2059_v34 = vmul.f32 %v2051_v29, %v2041_v52 }
 0x4ed   : > { %v2109_v26 = vmul.f32 %v2101_v1, %v2091_v63  ;;  %v2055_v63 = vld [vmem:[#allocation7 + $0x570] sm:$0xff] }
 0x4ee   : > { %1935 = vrot.lane.b32.xlu1 %v5200_v0, %s2844_s15  ;;  %v4732_v53 = vadd.f32 %v1615_v49, %v1598_v54  ;;  %v4734_v9 = vadd.f32 %v1616_v33, %v1599_v4  ;;  %v2060_v49 = vmul.f32 %v2052_v25, %v2045_v17  ;;  %v2102_v33 = vld [vmem:[#allocation7 + $0x598] sm:$0xff]  ;;  %v1657_v54 = vld [vmem:[#allocation7 + $0x368] sm:$0xff]  ;;  %v2067_v15 = vadd.f32 %v2059_v34, %v4559_v31  ;;  %v2201_v31 = vld [vmem:[#allocation7 + $0x610] sm:$0xff]  ;;  %s298_s15 = scalar_lea.vmem [#allocation8], %s5259_s19 }
 0x4ef   : > { %v4736_v23 = vpop.permute.xlu0 %2037  ;;  %v2110_v21 = vmul.f32 %v2102_v33, %v2095_v28  ;;  %v2056_v28 = vld [vmem:[#allocation7 + $0x578] sm:$0xff] }
 0x4f0   : > { %v1636_v57 = vpop.permute.xlu1 %1635 }
 0x4f1   : > { %v1643_v56 = vsel %vm542_vm4, %v1628_v41, %v1636_v57  ;;  %v1647_v24 = vsel %vm542_vm4, %v1636_v57, %v1628_v41  ;;  %v2151_v41 = vld [vmem:[#allocation7 + $0x5d0] sm:$0xff]  ;;  %v2068_v57 = vadd.f32 %v2060_v49, %v4562_v20  ;;  %v1993_v20 = vsel %vm1989_vm9, %v4646_v12, %v4668_v27 }
 0x4f2   : > { %v1660_v36 = vmul.f32 %v1652_v30, %v1643_v56  ;;  %v1661_v45 = vmul.f32 %v1653_v5, %v1647_v24  ;;  %2023 = vrot.lane.b32.xlu1 %v5201_v62, %s2846_s14 }
 0x4f3   : > { %v2126_v38 = vpop.permute.xlu0 %2125 }
 0x4f4   : > { %v1668_v16 = vadd.f32 %v1660_v36, %v1619_v19  ;;  %v1669_v39 = vadd.f32 %v1661_v45, %v1620_v2  ;;  %v1677_v14 = vpop.permute.xlu1 %1676 }
 0x4f6   : > { %2031 = vrot.lane.b32.xlu1 %v5202_v43, %s2846_s14 }
 0x4f7   : > { %v2134_v10 = vpop.permute.xlu0 %2133 }
 0x4f8   : > { %v1685_v42 = vpop.permute.xlu1 %1684  ;;  %v2141_v59 = vsel %vm2139_vm2, %v2126_v38, %v2134_v10  ;;  %v2145_v11 = vsel %vm2139_vm2, %v2134_v10, %v2126_v38  ;;  %v2117_v38 = vadd.f32 %v2109_v26, %v2067_v15  ;;  %v1753_v10 = vld [vmem:[#allocation7 + $0x3c8] sm:$0xff]  ;;  %v2105_v26 = vld [vmem:[#allocation7 + $0x5b0] sm:$0xff] }
 0x4f9   : > { %v1693_v7 = vsel %vm1692_vm3, %v1677_v14, %v1685_v42  ;;  %v1697_v55 = vsel %vm1692_vm3, %v1685_v42, %v1677_v14  ;;  %v2159_v24 = vmul.f32 %v2151_v41, %v2141_v59  ;;  %v2160_v19 = vmul.f32 %v2152_v3, %v2145_v11  ;;  %v1752_v14 = vld [vmem:[#allocation7 + $0x3c0] sm:$0xff]  ;;  %v5245_v59 = vld [vmem:[#allocation18_spill] sm:$0xff]  ;;  %v1707_v15 = vld [vmem:[#allocation7 + $0x3a8] sm:$0xff] }
 0x4fa   : > { %v1710_v44 = vmul.f32 %v1702_v61, %v1693_v7  ;;  %v1711_v60 = vmul.f32 %v1703_v22, %v1697_v55  ;;  %1977 = vrot.lane.b32.xlu1 %v5203_v6, %s5232_s16  ;;  %v2005_v61 = vld [vmem:[#allocation7 + $0x530] sm:$0xff]  ;;  %v2006_v22 = vld [vmem:[#allocation7 + $0x538] sm:$0xff] }
 0x4fb   : > { %v4756_v50 = vpop.permute.xlu0 %2079  ;;  %v2167_v42 = vadd.f32 %v2159_v24, %v2117_v38 }
 0x4fc   : > { %v4766_v40 = vadd.f32 %v1710_v44, %v1668_v16  ;;  %v4768_v13 = vadd.f32 %v1711_v60, %v1669_v39  ;;  %v1632_v51 = vpop.permute.xlu1 %1631  ;;  %v2118_v16 = vadd.f32 %v2110_v21, %v2068_v57  ;;  %v2202_v39 = vld [vmem:[#allocation7 + $0x618] sm:$0xff] }
 0x4fe   : > { %1985 = vrot.lane.b32.xlu1 %v5200_v0, %s5232_s16  ;;  %v2168_v7 = vadd.f32 %v2160_v19, %v2118_v16  ;;  %v2155_v19 = vld [vmem:[#allocation7 + $0x5f0] sm:$0xff] }
 0x4ff   : > { %v4781_v32 = vpop.permute.xlu0 %2087 }
 0x500   : > { %v1640_v4 = vpop.permute.xlu1 %1639 }
 0x501   : > { %v1645_v8 = vsel %vm542_vm4, %v1632_v51, %v1640_v4  ;;  %v1649_v30 = vsel %vm542_vm4, %v1640_v4, %v1632_v51  ;;  %vm2189_vm4 = vcmp.lt.s32.totalorder %v3289_v46, 94  ;;  %v2013_v51 = vmul.f32 %v2005_v61, %v1993_v20 }
 0x502   : > { %v1664_v5 = vmul.f32 %v1656_v48, %v1645_v8  ;;  %v1665_v47 = vmul.f32 %v1657_v54, %v1649_v30  ;;  %2073 = vrot.lane.b32.xlu1 %v5201_v62, %s2847_s27  ;;  %v2043_v48 = vsel %vm2039_vm0, %v4726_v35, %v4736_v23  ;;  %v2047_v54 = vsel %vm2039_vm0, %v4736_v23, %v4726_v35  ;;  %v5246_v8 = vld [vmem:[#allocation16_spill] sm:$0xff] }
 0x503   : > { %v2176_v56 = vpop.permute.xlu0 %2175  ;;  %v2063_v21 = vmul.f32 %v2055_v63, %v2043_v48  ;;  %v2093_v35 = vsel %vm2089_vm1, %v4756_v50, %v4781_v32  ;;  %v2097_v23 = vsel %vm2089_vm1, %v4781_v32, %v4756_v50  ;;  %v2021_v57 = vadd.f32 %v2013_v51, %v4595_v37 }
 0x504   : > { %v4796_v2 = vadd.f32 %v1664_v5, %v4732_v53  ;;  %v4799_v36 = vadd.f32 %v1665_v47, %v4734_v9  ;;  %v1727_v45 = vpop.permute.xlu1 %1726  ;;  %v1997_v53 = vsel %vm1989_vm9, %v4668_v27, %v4646_v12  ;;  %v2064_v5 = vmul.f32 %v2056_v28, %v2047_v54  ;;  %v2106_v47 = vld [vmem:[#allocation7 + $0x5b8] sm:$0xff] }
 0x505   : > { %v2014_v1 = vmul.f32 %v2006_v22, %v1997_v53  ;;  %v2113_v32 = vmul.f32 %v2105_v26, %v2093_v35  ;;  %v1757_v35 = vld [vmem:[#allocation7 + $0x3e8] sm:$0xff] }
 0x506   : > { %2081 = vrot.lane.b32.xlu1 %v5202_v43, %s2847_s27 }
 0x507   : > { %v2184_v9 = vpop.permute.xlu0 %2183 }
 0x508   : > { %v2191_v55 = vsel %vm2189_vm4, %v2176_v56, %v2184_v9  ;;  %v2195_v44 = vsel %vm2189_vm4, %v2184_v9, %v2176_v56  ;;  %v1735_v60 = vpop.permute.xlu1 %1734  ;;  %v2022_v56 = vadd.f32 %v2014_v1, %v4598_v58  ;;  %v2071_v58 = vadd.f32 %v2063_v21, %v2021_v57  ;;  %v5250_v21 = vld [vmem:[#allocation12_spill] sm:$0xff] }
 0x509   : > { %v2209_v29 = vmul.f32 %v2201_v31, %v2191_v55  ;;  %v2210_v25 = vmul.f32 %v2202_v39, %v2195_v44  ;;  %v1743_v52 = vsel %vm1742_vm8, %v1727_v45, %v1735_v60  ;;  %v1747_v12 = vsel %vm1742_vm8, %v1735_v60, %v1727_v45  ;;  %v2156_v45 = vld [vmem:[#allocation7 + $0x5f8] sm:$0xff]  ;;  %v2205_v44 = vld [vmem:[#allocation7 + $0x630] sm:$0xff] }
 0x50a   : > { %v1760_v27 = vmul.f32 %v1752_v14, %v1743_v52  ;;  %v1761_v17 = vmul.f32 %v1753_v10, %v1747_v12  ;;  %2027 = vrot.lane.b32.xlu1 %v5203_v6, %s2846_s14  ;;  %v2114_v39 = vmul.f32 %v2106_v47, %v2097_v23  ;;  %v2072_v53 = vadd.f32 %v2064_v5, %v2022_v56  ;;  %v2206_v60 = vld [vmem:[#allocation7 + $0x638] sm:$0xff]  ;;  %v1802_v52 = vld [vmem:[#allocation7 + $0x408] sm:$0xff]  ;;  %v1756_v47 = vld [vmem:[#allocation7 + $0x3e0] sm:$0xff] }
 0x50b   : > { %v2130_v34 = vpop.permute.xlu0 %2129  ;;  %v2217_v49 = vadd.f32 %v2209_v29, %v2167_v42  ;;  %v2218_v33 = vadd.f32 %v2210_v25, %v2168_v7  ;;  %v2121_v7 = vadd.f32 %v2113_v32, %v2071_v58  ;;  %v1801_v25 = vld [vmem:[#allocation7 + $0x400] sm:$0xff] }
 0x50c   : > { %v1768_v4 = vadd.f32 %v1760_v27, %v4766_v40  ;;  %v1769_v41 = vadd.f32 %v1761_v17, %v4768_v13  ;;  %v1681_v3 = vpop.permute.xlu1 %1680  ;;  %v1706_v13 = vld [vmem:[#allocation7 + $0x3a0] sm:$0xff]  ;;  %v2122_v55 = vadd.f32 %v2114_v39, %v2072_v53 }
 0x50d   : > { %v4833_v11 = vmul.f32 %v2217_v49, %v5245_v59  ;;  %v4836_v30 = vmul.f32 %v2218_v33, %v5246_v8  ;;  %v5249_v8 = vld [vmem:[#allocation14_spill] sm:$0xff] }
 0x50e   : > { %2035 = vrot.lane.b32.xlu1 %v5200_v0, %s2846_s14  ;;  %s2405_s14 = sshll.u32 %s298_s15, 4  ;;  %s4992_s14 = int_to_ptr.vmem [resolvable:$true] %s2405_s14 }
 0x50f   : > { %v2138_v40 = vpop.permute.xlu0 %2137 }
 0x510   : > { %v1689_v24 = vpop.permute.xlu1 %1688  ;;  %v2143_v38 = vsel %vm2139_vm2, %v2130_v34, %v2138_v40  ;;  %v2147_v16 = vsel %vm2139_vm2, %v2138_v40, %v2130_v34 }
 0x511   : > { %v1695_v31 = vsel %vm1692_vm3, %v1681_v3, %v1689_v24  ;;  %v1699_v50 = vsel %vm1692_vm3, %v1689_v24, %v1681_v3  ;;  %v2163_v14 = vmul.f32 %v2155_v19, %v2143_v38  ;;  %v2164_v10 = vmul.f32 %v2156_v45, %v2147_v16  ;;  %v1850_v24 = vld [vmem:[#allocation7 + $0x440] sm:$0xff]  ;;  %v1851_v19 = vld [vmem:[#allocation7 + $0x448] sm:$0xff] }
 0x512   : > { %v1714_v37 = vmul.f32 %v1706_v13, %v1695_v31  ;;  %v1715_v20 = vmul.f32 %v1707_v15, %v1699_v50  ;;  %2123 = vrot.lane.b32.xlu1 %v5201_v62, %s2848_s7  ;;  %vm5247_vm3 = vcmp.lt.s32.totalorder %v3289_v46, 113  ;;  %v5256_v46 = vld [vmem:[#allocation17_spill] sm:$0xff] }
 0x513   : > { %v2180_v9 = vpop.permute.xlu0 %2179  ;;  %v2171_v12 = vadd.f32 %v2163_v14, %v2121_v7  ;;  %v2172_v27 = vadd.f32 %v2164_v10, %v2122_v55  ;;  %vm5248_vm11 = vmmov %vm5247_vm3  ;;  %v1900_v7 = vld [vmem:[#allocation7 + $0x488] sm:$0xff] }
 0x514   : > { %v1722_v61 = vadd.f32 %v1714_v37, %v4796_v2  ;;  %v1723_v22 = vadd.f32 %v1715_v20, %v4799_v36  ;;  %v1777_v42 = vpop.permute.xlu1 %1776  ;;  %v1806_v37 = vld [vmem:[#allocation7 + $0x428] sm:$0xff]  ;;  %vm5252_vm12 = vmmov %vm5247_vm3 }
 0x516   : > { %2131 = vrot.lane.b32.xlu1 %v5202_v43, %s2848_s7 }
 0x517   : > { %v2188_v29 = vpop.permute.xlu0 %2187 }
 0x518   : > { %v2193_v17 = vsel %vm2189_vm4, %v2180_v9, %v2188_v29  ;;  %v2197_v2 = vsel %vm2189_vm4, %v2188_v29, %v2180_v9  ;;  %v1785_v36 = vpop.permute.xlu1 %1784 }
 0x519   : > { %v2213_v51 = vmul.f32 %v2205_v44, %v2193_v17  ;;  %v2214_v1 = vmul.f32 %v2206_v60, %v2197_v2  ;;  %v1792_v34 = vsel %vm5247_vm3, %v1777_v42, %v1785_v36  ;;  %v1796_v49 = vsel %vm5248_vm11, %v1785_v36, %v1777_v42  ;;  %v1899_v42 = vld [vmem:[#allocation7 + $0x480] sm:$0xff]  ;;  %v1855_v17 = vld [vmem:[#allocation7 + $0x468] sm:$0xff] }
 0x51a   : > { %v1809_v33 = vmul.f32 %v1801_v25, %v1792_v34  ;;  %v1810_v63 = vmul.f32 %v1802_v52, %v1796_v49  ;;  %2077 = vrot.lane.b32.xlu1 %v5203_v6, %s2847_s27 }
 0x51b   : > { %v2221_v28 = vadd.f32 %v2213_v51, %v2171_v12  ;;  %v2222_v48 = vadd.f32 %v2214_v1, %v2172_v27  ;;  %v1854_v27 = vld [vmem:[#allocation7 + $0x460] sm:$0xff] }
 0x51c   : > { %v1817_v54 = vadd.f32 %v1809_v33, %v1768_v4  ;;  %v1818_v3 = vadd.f32 %v1810_v63, %v1769_v41  ;;  %v1731_v59 = vpop.permute.xlu1 %1730  ;;  %v1949_v63 = vld [vmem:[#allocation7 + $0x4c0] sm:$0xff] }
 0x51d   : > { %v4875_v26 = vmul.f32 %v2221_v28, %v5249_v8  ;;  %v4878_v5 = vmul.f32 %v2222_v48, %v5250_v21  ;;  %v1950_v28 = vld [vmem:[#allocation7 + $0x4c8] sm:$0xff] }
 0x51e   : > { %2085 = vrot.lane.b32.xlu1 %v5200_v0, %s2847_s27  ;;  %s2534_s27 = sshll.u32 %s2908_s25, 10  ;;  %s2748_s25 = scalar_lea.vmem %s4992_s14, 1024 }
 0x51f   : > { %s4997_s10 = scalar_lea.hbm %s5048_s6, %s2534_s27  ;;  %p2749_p11 = scmp.ne.s32.totalorder %s4992_s14, %s2748_s25 }
 0x520   : > { %v1739_v23 = vpop.permute.xlu1 %1738 }
 0x521   : > { %v1745_v40 = vsel %vm1742_vm8, %v1731_v59, %v1739_v23  ;;  %v1749_v4 = vsel %vm1742_vm8, %v1739_v23, %v1731_v59  ;;  %vm5251_vm8 = vmmov %vm5247_vm3  ;;  %v1903_v23 = vld [vmem:[#allocation7 + $0x4a0] sm:$0xff]  ;;  %p2750_p2 = pnand %p2749_p11, %p5260_p0 }
 0x522   : > { %v1764_v41 = vmul.f32 %v1756_v47, %v1745_v40  ;;  %v1765_v13 = vmul.f32 %v1757_v35, %v1749_v4  ;;  %2173 = vrot.lane.b32.xlu1 %v5201_v62, %s2849_s20  ;;  %v1904_v40 = vld [vmem:[#allocation7 + $0x4a8] sm:$0xff] }
 0x523   : > { %p2751_p3 = pneg %p2750_p2 }
 0x524   : > { %v1772_v15 = vadd.f32 %v1764_v41, %v1722_v61  ;;  %v1773_v57 = vadd.f32 %v1765_v13, %v1723_v22  ;;  %v1826_v56 = vpop.permute.xlu1 %1825 }
 0x526   : > { %2181 = vrot.lane.b32.xlu1 %v5202_v43, %s2849_s20  ;;  %v1805_v43 = vld [vmem:[#allocation7 + $0x420] sm:$0xff] }
 0x528   : > { %v1834_v45 = vpop.permute.xlu1 %1833 }
 0x529   : > { %v1841_v38 = vsel %vm642_vm6, %v1826_v56, %v1834_v45  ;;  %v1845_v16 = vsel %vm642_vm6, %v1834_v45, %v1826_v56  ;;  %v1999_v45 = vld [vmem:[#allocation7 + $0x500] sm:$0xff] }
 0x52a   : > { %v1858_v31 = vmul.f32 %v1850_v24, %v1841_v38  ;;  %v1859_v50 = vmul.f32 %v1851_v19, %v1845_v16  ;;  %2127 = vrot.lane.b32.xlu1 %v5203_v6, %s2848_s7  ;;  %v2000_v38 = vld [vmem:[#allocation7 + $0x508] sm:$0xff] }
 0x52c   : > { %v1866_v62 = vadd.f32 %v1858_v31, %v1817_v54  ;;  %v1867_v32 = vadd.f32 %v1859_v50, %v1818_v3  ;;  %v1781_v39 = vpop.permute.xlu1 %1780 }
 0x52e   : > { %2135 = vrot.lane.b32.xlu1 %v5200_v0, %s2848_s7  ;;  %s2392_s7 = scalar_lea.sflag [#allocation4], %s3068_s30 }
 0x530   : > { %v1789_v20 = vpop.permute.xlu1 %1788 }
 0x531   : > { %v1794_v58 = vsel %vm5251_vm8, %v1781_v39, %v1789_v20  ;;  %v1798_v53 = vsel %vm5252_vm12, %v1789_v20, %v1781_v39  ;;  %v1953_v20 = vld [vmem:[#allocation7 + $0x4e0] sm:$0xff] }
 0x532   : > { %v1813_v9 = vmul.f32 %v1805_v43, %v1794_v58  ;;  %v1814_v14 = vmul.f32 %v1806_v37, %v1798_v53  ;;  %2177 = vrot.lane.b32.xlu1 %v5203_v6, %s2849_s20  ;;  %v1954_v58 = vld [vmem:[#allocation7 + $0x4e8] sm:$0xff] }
 0x534   : > { %v1821_v10 = vadd.f32 %v1813_v9, %v1772_v15  ;;  %v1822_v61 = vadd.f32 %v1814_v14, %v1773_v57  ;;  %v1875_v22 = vpop.permute.xlu1 %1874 }
 0x536   : > { %2185 = vrot.lane.b32.xlu1 %v5200_v0, %s2849_s20  ;;  %s2850_s20 = smov [#allocation8]  }
 0x537   : > { %s2752_s16 = sshll.u32 %s2850_s20, 4  ;;  %s2753_s16 = int_to_ptr.vmem [resolvable:$false] %s2752_s16 }
 0x538   : > { %v1883_v55 = vpop.permute.xlu1 %1882  ;;  %s2754_s17 = scalar_lea.vmem %s2753_s16, 2048  ;;  %p2755_p7 = scmp.lt.s32.totalorder %s4992_s14, %s2753_s16 }
 0x539   : > { %v1890_v44 = vsel %vm692_vm7, %v1875_v22, %v1883_v55  ;;  %v1894_v60 = vsel %vm692_vm7, %v1883_v55, %v1875_v22  ;;  %p2756_p9 = scmp.lt.s32.totalorder %s2754_s17, %s2748_s25 }
 0x53a   : > { %v1907_v29 = vmul.f32 %v1899_v42, %v1890_v44  ;;  %v1908_v25 = vmul.f32 %v1900_v7, %v1894_v60 }
 0x53b   : > { %p2757_p12 = por %p2756_p9, %p2755_p7 }
 0x53c   : > { %v1915_v52 = vadd.f32 %v1907_v29, %v1866_v62  ;;  %v1916_v12 = vadd.f32 %v1908_v25, %v1867_v32  ;;  %v1830_v6 = vpop.permute.xlu1 %1829 }
 0x53d   : > { %p2758_p1 = pnand %p2757_p12, %p2751_p3 }
 0x540   : > { %v1838_v2 = vpop.permute.xlu1 %1837 }
 0x541   : > { %v1843_v0 = vsel %vm642_vm6, %v1830_v6, %v1838_v2  ;;  %v1847_v36 = vsel %vm642_vm6, %v1838_v2, %v1830_v6  ;;  %v2049_v2 = vld [vmem:[#allocation7 + $0x540] sm:$0xff] }
 0x542   : > { %v1862_v51 = vmul.f32 %v1854_v27, %v1843_v0  ;;  %v1863_v1 = vmul.f32 %v1855_v17, %v1847_v36  ;;  %v2050_v0 = vld [vmem:[#allocation7 + $0x548] sm:$0xff] }
 0x544   : > { %v1870_v34 = vadd.f32 %v1862_v51, %v1821_v10  ;;  %v1871_v49 = vadd.f32 %v1863_v1, %v1822_v61  ;;  %v1924_v33 = vpop.permute.xlu1 %1923 }
 0x548   : > { %v1932_v48 = vpop.permute.xlu1 %1931 }
 0x549   : > { %v1940_v54 = vsel %vm1939_vm5, %v1924_v33, %v1932_v48  ;;  %v1944_v3 = vsel %vm1939_vm5, %v1932_v48, %v1924_v33 }
 0x54a   : > { %v1957_v59 = vmul.f32 %v1949_v63, %v1940_v54  ;;  %v1958_v8 = vmul.f32 %v1950_v28, %v1944_v3  ;;  %v2149_v54 = vld [vmem:[#allocation7 + $0x5c0] sm:$0xff]  ;;  %v2150_v3 = vld [vmem:[#allocation7 + $0x5c8] sm:$0xff] }
 0x54c   : > { %v1965_v21 = vadd.f32 %v1957_v59, %v1915_v52  ;;  %v1966_v47 = vadd.f32 %v1958_v8, %v1916_v12  ;;  %v1879_v35 = vpop.permute.xlu1 %1878 }
 0x550   : > { %v1887_v4 = vpop.permute.xlu1 %1886 }
 0x551   : > { %v1892_v41 = vsel %vm692_vm7, %v1879_v35, %v1887_v4  ;;  %v1896_v13 = vsel %vm692_vm7, %v1887_v4, %v1879_v35 }
 0x552   : > { %v1911_v15 = vmul.f32 %v1903_v23, %v1892_v41  ;;  %v1912_v57 = vmul.f32 %v1904_v40, %v1896_v13  ;;  %v2199_v13 = vld [vmem:[#allocation7 + $0x600] sm:$0xff] }
 0x554   : > { %v1919_v56 = vadd.f32 %v1911_v15, %v1870_v34  ;;  %v1920_v24 = vadd.f32 %v1912_v57, %v1871_v49  ;;  %v1974_v19 = vpop.permute.xlu1 %1973  ;;  %v2099_v34 = vld [vmem:[#allocation7 + $0x580] sm:$0xff]  ;;  %v2100_v49 = vld [vmem:[#allocation7 + $0x588] sm:$0xff] }
 0x555   : > { %v2200_v15 = vld [vmem:[#allocation7 + $0x608] sm:$0xff] }
 0x558   : > { %v1982_v16 = vpop.permute.xlu1 %1981 }
 0x559   : > { %v1990_v31 = vsel %vm1989_vm9, %v1974_v19, %v1982_v16  ;;  %v1994_v50 = vsel %vm1989_vm9, %v1982_v16, %v1974_v19 }
 0x55a   : > { %v2007_v62 = vmul.f32 %v1999_v45, %v1990_v31  ;;  %v2008_v32 = vmul.f32 %v2000_v38, %v1994_v50 }
 0x55c   : > { %v2015_v39 = vadd.f32 %v2007_v62, %v1965_v21  ;;  %v2016_v43 = vadd.f32 %v2008_v32, %v1966_v47  ;;  %v1928_v37 = vpop.permute.xlu1 %1927  ;;  %v2003_v62 = vld [vmem:[#allocation7 + $0x520] sm:$0xff] }
 0x560   : > { %v1936_v53 = vpop.permute.xlu1 %1935 }
 0x561   : > { %v1942_v9 = vsel %vm1939_vm5, %v1928_v37, %v1936_v53  ;;  %v1946_v14 = vsel %vm1939_vm5, %v1936_v53, %v1928_v37  ;;  %v2053_v53 = vld [vmem:[#allocation7 + $0x560] sm:$0xff]  ;;  %vm5257_vm5 = vcmask 261120  }
 0x562   : > { %v1961_v10 = vmul.f32 %v1953_v20, %v1942_v9  ;;  %v1962_v61 = vmul.f32 %v1954_v58, %v1946_v14  ;;  %v2004_v20 = vld [vmem:[#allocation7 + $0x528] sm:$0xff]  ;;  %v5253_v14 = vld [vmem:[#allocation22_spill] sm:$0xff]  ;;  %vm5258_vm6 = vmmov %vm5257_vm5 }
 0x564   : > { %v4930_v22 = vadd.f32 %v1961_v10, %v1919_v56  ;;  %v4932_v42 = vadd.f32 %v1962_v61, %v1920_v24  ;;  %v2024_v7 = vpop.permute.xlu1 %2023  ;;  %v5254_v61 = vld [vmem:[#allocation23_spill] sm:$0xff] }
 0x568   : > { %v2032_v55 = vpop.permute.xlu1 %2031 }
 0x569   : > { %v2040_v36 = vsel %vm2039_vm0, %v2024_v7, %v2032_v55  ;;  %v2044_v51 = vsel %vm2039_vm0, %v2032_v55, %v2024_v7 }
 0x56a   : > { %v2057_v28 = vmul.f32 %v2049_v2, %v2040_v36  ;;  %v2058_v48 = vmul.f32 %v2050_v0, %v2044_v51 }
 0x56c   : > { %v1978_v44 = vpop.permute.xlu1 %1977  ;;  %v2065_v23 = vadd.f32 %v2057_v28, %v2015_v39  ;;  %v2066_v40 = vadd.f32 %v2058_v48, %v2016_v43 }
 0x570   : > { %v1986_v60 = vpop.permute.xlu1 %1985 }
 0x571   : > { %v1992_v32 = vsel %vm1989_vm9, %v1978_v44, %v1986_v60  ;;  %v1996_v58 = vsel %vm1989_vm9, %v1986_v60, %v1978_v44  ;;  %v2104_v60 = vld [vmem:[#allocation7 + $0x5a8] sm:$0xff] }
 0x572   : > { %v2011_v55 = vmul.f32 %v2003_v62, %v1992_v32 }
 0x574   : > { %v2074_v29 = vpop.permute.xlu1 %2073 }
 0x578   : > { %v2082_v25 = vpop.permute.xlu1 %2081 }
 0x579   : > { %v2090_v33 = vsel %vm2089_vm1, %v2074_v29, %v2082_v25  ;;  %v2094_v63 = vsel %vm2089_vm1, %v2082_v25, %v2074_v29  ;;  %v2054_v29 = vld [vmem:[#allocation7 + $0x568] sm:$0xff] }
 0x57a   : > { %v2107_v21 = vmul.f32 %v2099_v34, %v2090_v33  ;;  %v2108_v47 = vmul.f32 %v2100_v49, %v2094_v63  ;;  %v2153_v34 = vld [vmem:[#allocation7 + $0x5e0] sm:$0xff]  ;;  %v2019_v33 = vadd.f32 %v2011_v55, %v4930_v22 }
 0x57b   : > { %v2636_v55 = vld [vmem:[%s5047_s5] sm:$0xff]  }
 0x57c   : > { %v2028_v52 = vpop.permute.xlu1 %2027  ;;  %v2115_v57 = vadd.f32 %v2107_v21, %v2065_v23  ;;  %v2116_v56 = vadd.f32 %v2108_v47, %v2066_v40  ;;  %v2203_v21 = vld [vmem:[#allocation7 + $0x620] sm:$0xff]  ;;  %v2204_v47 = vld [vmem:[#allocation7 + $0x628] sm:$0xff] }
 0x580   : > { %v2036_v12 = vpop.permute.xlu1 %2035 }
 0x581   : > { %v2042_v9 = vsel %vm2039_vm0, %v2028_v52, %v2036_v12  ;;  %v2046_v25 = vsel %vm2039_vm0, %v2036_v12, %v2028_v52  ;;  %v2154_v52 = vld [vmem:[#allocation7 + $0x5e8] sm:$0xff] }
 0x582   : > { %v2061_v44 = vmul.f32 %v2053_v53, %v2042_v9  ;;  %v2062_v51 = vmul.f32 %v2054_v29, %v2046_v25 }
 0x584   : > { %v2124_v6 = vpop.permute.xlu1 %2123 }
 0x588   : > { %v2132_v27 = vpop.permute.xlu1 %2131 }
 0x589   : > { %v2140_v59 = vsel %vm2139_vm2, %v2124_v6, %v2132_v27  ;;  %v2144_v8 = vsel %vm2139_vm2, %v2132_v27, %v2124_v6  ;;  %v2012_v6 = vmul.f32 %v2004_v20, %v1996_v58  ;;  %v2103_v27 = vld [vmem:[#allocation7 + $0x5a0] sm:$0xff] }
 0x58a   : > { %v2157_v4 = vmul.f32 %v2149_v54, %v2140_v59  ;;  %v2158_v41 = vmul.f32 %v2150_v3, %v2144_v8  ;;  %v2069_v3 = vadd.f32 %v2061_v44, %v2019_v33 }
 0x58b   : > { %v2020_v28 = vadd.f32 %v2012_v6, %v4932_v42 }
 0x58c   : > { %v2078_v17 = vpop.permute.xlu1 %2077  ;;  %v2165_v38 = vadd.f32 %v2157_v4, %v2115_v57  ;;  %v2166_v16 = vadd.f32 %v2158_v41, %v2116_v56 }
 0x58d   : > { %v2070_v8 = vadd.f32 %v2062_v51, %v2020_v28 }
 0x590   : > { %v2086_v1 = vpop.permute.xlu1 %2085 }
 0x591   : > { %v2092_v2 = vsel %vm2089_vm1, %v2078_v17, %v2086_v1  ;;  %v2096_v36 = vsel %vm2089_vm1, %v2086_v1, %v2078_v17 }
 0x592   : > { %v2111_v63 = vmul.f32 %v2103_v27, %v2092_v2  ;;  %v2112_v48 = vmul.f32 %v2104_v60, %v2096_v36 }
 0x594   : > { %v2174_v35 = vpop.permute.xlu1 %2173  ;;  %v2119_v1 = vadd.f32 %v2111_v63, %v2069_v3 }
 0x598   : > { %v2182_v24 = vpop.permute.xlu1 %2181 }
 0x599   : > { %v2190_v19 = vsel %vm2189_vm4, %v2174_v35, %v2182_v24  ;;  %v2194_v45 = vsel %vm2189_vm4, %v2182_v24, %v2174_v35  ;;  %v2120_v35 = vadd.f32 %v2112_v48, %v2070_v8 }
 0x59a   : > { %v2207_v31 = vmul.f32 %v2199_v13, %v2190_v19  ;;  %v2208_v50 = vmul.f32 %v2200_v15, %v2194_v45 }
 0x59c   : > { %v2128_v39 = vpop.permute.xlu1 %2127  ;;  %v2215_v43 = vadd.f32 %v2207_v31, %v2165_v38  ;;  %v2216_v37 = vadd.f32 %v2208_v50, %v2166_v16 }
 0x59e   : > { %v2223_v10 = vmul.f32 %v2215_v43, %v5253_v14  ;;  %v2224_v7 = vmul.f32 %v2216_v37, %v5254_v61 }
 0x5a0   : > { %v2136_v0 = vpop.permute.xlu1 %2135 }
 0x5a1   : > { %v2142_v49 = vsel %vm2139_vm2, %v2128_v39, %v2136_v0  ;;  %v2146_v12 = vsel %vm2139_vm2, %v2136_v0, %v2128_v39  ;;  %v5255_v39 = vld [vmem:[#allocation19_spill] sm:$0xff] }
 0x5a2   : > { %v2161_v59 = vmul.f32 %v2153_v34, %v2142_v49  ;;  %v2162_v17 = vmul.f32 %v2154_v52, %v2146_v12 }
 0x5a4   : > { %v2178_v54 = vpop.permute.xlu1 %2177  ;;  %v2169_v22 = vadd.f32 %v2161_v59, %v2119_v1  ;;  %v2170_v15 = vadd.f32 %v2162_v17, %v2120_v35 }
 0x5a8   : > { %v2186_v23 = vpop.permute.xlu1 %2185  ;;  %v2287_v40 = vpop.f32.mrb[8].mxu1 }
 0x5a9   : > { %v2192_v4 = vsel %vm2189_vm4, %v2178_v54, %v2186_v23  ;;  %v2196_v41 = vsel %vm2189_vm4, %v2186_v23, %v2178_v54  ;;  %v2288_v42 = vadd.f32 %v2287_v40, %v2223_v10  ;;  %v2289_v13 = vpop.f32.mrb[9].mxu1 }
 0x5aa   : > { %v2211_v57 = vmul.f32 %v2203_v21, %v2192_v4  ;;  %v2212_v56 = vmul.f32 %v2204_v47, %v2196_v41  ;;  %v2290_v24 = vadd.f32 %v2289_v13, %v2224_v7  ;;  %v2291_v19 = vpop.f32.mrb[10].mxu1 }
 0x5ab   : > { %v2292_v45 = vadd.f32 %v2291_v19, %v4833_v11  ;;  %v2293_v38 = vpop.f32.mrb[11].mxu1 }
 0x5ac   : > { %v2294_v16 = vadd.f32 %v2293_v38, %v4836_v30  ;;  %v2219_v31 = vadd.f32 %v2211_v57, %v2169_v22  ;;  %v2220_v50 = vadd.f32 %v2212_v56, %v2170_v15 }
 0x5ad   : > { %v2310_v62 = vpack.c.bf16 %v2292_v45, %v2288_v42 }
 0x5ae   : > { %v2311_v32 = vpack.c.bf16 %v2294_v16, %v2290_v24  ;;  %v2227_v43 = vmul.f32 %v2219_v31, %v5255_v39  ;;  %v2228_v37 = vmul.f32 %v2220_v50, %v5256_v46 }
 0x5b0   : > { %v2297_v20 = vpop.f32.mrb[12].mxu1  ;;  %2330 = vmatprep.subr.bf16.mxu1 %v2311_v32 }
 0x5b1   : > { %v2298_v58 = vadd.f32 %v2297_v20, %v2227_v43  ;;  %v2299_v53 = vpop.f32.mrb[13].mxu1  ;;  %2331 = vmatpush1.bf16.msra.mxu1 %v2310_v62 }
 0x5b2   : > { %v2300_v9 = vadd.f32 %v2299_v53, %v2228_v37  ;;  %v2301_v14 = vpop.f32.mrb[14].mxu1 }
 0x5b3   : > { %v2302_v11 = vadd.f32 %v2301_v14, %v4875_v26  ;;  %v2303_v10 = vpop.f32.mrb[15].mxu1  ;;  %v2637_v26 = vld [vmem:[%s5047_s5 + $0x8] sm:$0xff]  }
 0x5b4   : > { %v2304_v30 = vadd.f32 %v2303_v10, %v4878_v5 }
 0x5b5   : > { %v2312_v61 = vpack.c.bf16 %v2302_v11, %v2298_v58 }
 0x5b6   : > { %v2313_v7 = vpack.c.bf16 %v2304_v30, %v2300_v9 }
 0x5b8   : > { %2332 = vmatprep.subr.bf16.mxu1 %v2313_v7 }
 0x5b9   : > { %2333 = vmatpush1.bf16.msra.mxu1 %v2312_v61 }
 0x5bc   : > { %2526 = vmatmul.mubr.msk.bf16.vlgmr.msra.gmra.mrb[16].mxu1 %vm5257_vm5, %v2636_v55 }
 0x5bd   : > { %2372 = vmatprep.mubr.bf16.mxu1 %v5230_v18 }
 0x5c4   : > { %2527 = vmatmul.mubr.msk.bf16.gmra.mrb[20].mxu1 %vm5258_vm6, %v2637_v26 }
 0x68f   : > { %v2364_v5 = vpop.f32.mrb[16].mxu1 }
 0x690   : > { %2383 = vst [vmem:[%s298_s15] sm:$0xff] %v2364_v5  ;;  %v2366_v29 = vpop.f32.mrb[17].mxu1 }
 0x691   : > { %2384 = vst [vmem:[%s298_s15 + $0x8] sm:$0xff] %v2366_v29  ;;  %v2368_v25 = vpop.f32.mrb[18].mxu1 }
 0x692   : > { %2385 = vst [vmem:[%s298_s15 + $0x10] sm:$0xff] %v2368_v25  ;;  %v2370_v6 = vpop.f32.mrb[19].mxu1 }
 0x693   : > { %2386 = vst [vmem:[%s298_s15 + $0x18] sm:$0xff] %v2370_v6 }
 0x697   : > { %v2374_v18 = vpop.f32.mrb[20].mxu1 }
 0x698   : > { %2387 = vst [vmem:[%s298_s15 + $0x20] sm:$0xff] %v2374_v18  ;;  %v2376_v27 = vpop.f32.mrb[21].mxu1 }
 0x699   : > { %2388 = vst [vmem:[%s298_s15 + $0x28] sm:$0xff] %v2376_v27  ;;  %v2378_v2 = vpop.f32.mrb[22].mxu1 }
 0x69a   : > { %2389 = vst [vmem:[%s298_s15 + $0x30] sm:$0xff] %v2378_v2  ;;  %v2380_v0 = vpop.f32.mrb[23].mxu1 }
 0x69b   : > { %2390 = vst [vmem:[%s298_s15 + $0x38] sm:$0xff] %v2380_v0 }
 0x69c   : > { %2761 = shalt.err (!%p2758_p1)
}
 0x69d   : > { %s2762_s26 = scalar_lea.hbm %s4997_s10, 1024  ;;  %s2766_s19 = scalar_lea.hbm %s5048_s6, 2048 }
 0x69e   : > { %p2763_p13 = scmp.ne.s32.totalorder %s4997_s10, %s2762_s26  ;;  %p2767_p4 = scmp.lt.u32.totalorder %s4997_s10, %s5048_s6 }
 0x69f   : > { %p2768_p5 = scmp.lt.u32.totalorder %s2766_s19, %s2762_s26  ;;  %p2770_p11 = scmp.lt.u32.totalorder %s2762_s26, %s4997_s10 }
 0x6a0   : > { %p2764_p6 = pnand %p2763_p13, %p5260_p0 }
 0x6a1   : > { %p2769_p8 = por %p2768_p5, %p2767_p4 }
 0x6a2   : > { %p2765_p10 = pneg %p2764_p6 }
 0x6a3   : > { %p2771_p2 = por %p2770_p11, %p2769_p8 }
 0x6a5   : > { %p2772_p3 = pnand %p2771_p2, %p2765_p10 }
 0x6a7   : > { %2775 = shalt.err (!%p2772_p3)
}
 0x6a8   : > { %s2851_s18 = smov 256   ;;  %s5261_s13 = smov 16  }
 0x6a9   : > { %2545 = dma.vmem_to_hbm [thread:$0]  (%p5260_p0), %s4992_s14, 1024, %s4997_s10, %s2392_s7, %s2851_s18, %s2851_s18, %s5261_s13  }
 0x6aa PF: > { %s2420_s25 = sand.u32 1, %s2806_s21   ;;  %p5262_p7 = scmp.ne.s32.totalorder %s5119_s28, 0 }
 0x6ab   : > { %p5263_p9 = scmp.ge.s32.totalorder %s2818_s24, 2  ;;  %s2421_s20 = scalar_lea.sflag [#allocation4], %s2420_s25 }
 0x6ad   : > { %p2559_p12 = pnand %p5263_p9, %p5262_p7 }
 0x6af   : > { %2801 = dma.done.wait (!%p2559_p12), %s2421_s20, 1024  }
 0x6b0   : > { %2803 = vsyncadd (!%p2559_p12), %s2421_s20, 4294966272  ;;  %p20_p1 = scmp.ge.s32.totalorder %s3003_s8, 4   ;;  %s5264_s21 = smov %s2810_s22 }
 0x6b1   : > { %s5265_s22 = smov %s2814_s23  ;;  %s5266_s23 = smov %s3019_s11 }
 0x6b2   : > { %s5267_s24 = smov %s3003_s8  ;;  %22 = sbr.rel (!%p20_p1) target bundleno = 6 (0x6), region = 129 }
 0x6b9   :  { %2426 = vsyncpa [#allocation3], 1 }
 0x6ba   :  { %2428 = vsyncpa [#allocation3 + $0x1], 1 }
 0x6bb   :  { %2429 = vsyncpa [#allocation6], 1 }
 0x6bc   :  { %2430 = vsyncpa [#allocation4], 1 }
 0x6bd   :  { %2432 = vsyncpa [#allocation4 + $0x1], 1 }

</bundles_post_ra>
